<compile_context>
chip_gen: v5e
topology: v5e:2x2
jax: 0.10.0
libtpu: 0.0.40
codegen_flags: <defaults>
</compile_context>

<pallas_src>
import functools
import math

import numpy as np
import jax
import jax.numpy as jnp
from jax import lax
from jax.experimental import pallas as pl
from jax.experimental.pallas import tpu as pltpu


OUT_PAD = 128  # lane-dense output slab; the real out_dim (=5) is sliced outside.


# ----------------------------------------------------------------------------
# Fused kernel
# ----------------------------------------------------------------------------
def fused_forward_kernel(
    # batch-blocked, (batch, seq)-flattened inputs: rows = BN*S
    geom_ref, attr_ref, cg_ref, ca_ref,
    # per-(layer, batch-element) AdaLayerNorm modulation (broadcast over S here)
    scale_ref, shift_ref,
    # embedding weights (grid-invariant)
    gw_ref, gb_ref, tw_ref, tb_ref, ewg_ref, ewa_ref, eb_ref,
    # per-layer attention weights (streamed along the layer grid axis)
    wqkv_ref, bqkv_ref, wo_ref, bo_ref,
    # per-layer norm2 + FFN weights
    g2_ref, be2_ref, w1_ref, b1_ref, w2_ref, b2_ref,
    # final norm + lane-padded output projection (grid-invariant)
    fg_ref, fb_ref, lw_ref, lb_ref,
    # output (lane-dense slab)
    out_ref,
    # VMEM-resident activation (persists across the layer grid axis) and the
    # per-step attention-output assembly slab
    x_ref, ao_ref,
    *, nhead, bn, seq, cdt):
  l = pl.program_id(1)
  n_layers = pl.num_programs(1)
  M, D = x_ref.shape                       # M = bn * seq
  dh = D // nhead
  inv_sqrt_dh = 1.0 / math.sqrt(dh)

  def mm(a, b):
    # operands are pre-cast to the compute dtype; accumulate in f32 on the MXU
    return jnp.dot(a, b, preferred_element_type=jnp.float32)

  # ---- embedding: only on the first layer step of each batch block ----------
  @pl.when(l == 0)
  def _embed():
    g = geom_ref[...].astype(jnp.float32)            # (M, 4)
    a = attr_ref[...].astype(jnp.float32)            # (M, 1)
    gw = gw_ref[...]                                 # (4, L)
    # geom_embed (K=4 contraction as broadcast MACs) + cond_enc(geom flags)
    ge = (gb_ref[...] + cg_ref[...]
          + g[:, 0:1] * gw[0:1, :] + g[:, 1:2] * gw[1:2, :]
          + g[:, 2:3] * gw[2:3, :] + g[:, 3:4] * gw[3:4, :])
    # type_embed (Linear(1, L)) + cond_enc(attr flag)
    ae = tb_ref[...] + a * tw_ref[...] + ca_ref[...]
    # elem_embed with split weight: concat([ge, ae]) @ We == ge@We_g + ae@We_a
    x_ref[...] = mm(ge, ewg_ref[...]) + mm(ae, ewa_ref[...]) + eb_ref[...]

  x = x_ref[...]                                     # (M, D) f32

  # ---- AdaLayerNorm: LN(no affine) * (1 + scale) + shift --------------------
  mu = jnp.mean(x, axis=-1, keepdims=True)
  var = jnp.mean((x - mu) ** 2, axis=-1, keepdims=True)
  xn = (x - mu) * lax.rsqrt(var + 1e-5)
  sc = scale_ref[...].reshape(bn, D)                 # per-batch-element rows
  sh = shift_ref[...].reshape(bn, D)
  h = (xn.reshape(bn, seq, D) * (1.0 + sc[:, None, :])
       + sh[:, None, :]).reshape(M, D)

  # ---- multi-head self-attention ---------------------------------------------
  h_c = h.astype(cdt)                                # cast activation once
  qkv = mm(h_c, wqkv_ref[0]) + bqkv_ref[0]           # (M, 3D) f32, fused bias
  for hd in range(nhead):                            # tiny per-head softmax core
    q3 = qkv[:, hd * dh:(hd + 1) * dh].reshape(bn, seq, dh).astype(cdt)
    k3 = qkv[:, D + hd * dh:D + (hd + 1) * dh].reshape(bn, seq, dh).astype(cdt)
    v3 = qkv[:, 2 * D + hd * dh:2 * D + (hd + 1) * dh].reshape(bn, seq, dh).astype(cdt)
    s = jnp.einsum('bqd,bkd->bqk', q3, k3,
                   preferred_element_type=jnp.float32) * inv_sqrt_dh
    s = s - jnp.max(s, axis=-1, keepdims=True)
    e = jnp.exp(s)
    p = e * pl.reciprocal(jnp.sum(e, axis=-1, keepdims=True), approx=True)
    oh = jnp.einsum('bqk,bkd->bqd', p.astype(cdt), v3,
                    preferred_element_type=jnp.float32)
    ao_ref[:, hd * dh:(hd + 1) * dh] = oh.reshape(M, dh)
  # single wide (M,D)x(D,D) out-projection
  attn = mm(ao_ref[...].astype(cdt), wo_ref[0]) + bo_ref[0]
  x2 = h + attn                                      # dropout1: identity (eval)

  # ---- norm2 (affine LayerNorm) + FFN (relu) --------------------------------
  mu2 = jnp.mean(x2, axis=-1, keepdims=True)
  var2 = jnp.mean((x2 - mu2) ** 2, axis=-1, keepdims=True)
  h2 = (x2 - mu2) * lax.rsqrt(var2 + 1e-5) * g2_ref[0] + be2_ref[0]
  ff = jnp.maximum(mm(h2.astype(cdt), w1_ref[0]) + b1_ref[0], 0.0)
  ff = mm(ff.astype(cdt), w2_ref[0]) + b2_ref[0]
  x_new = x2 + ff                                    # dropout/dropout2: identity
  x_ref[...] = x_new

  # ---- final encoder LayerNorm + output Linear (lane-padded) ----------------
  @pl.when(l == n_layers - 1)
  def _final():
    mu3 = jnp.mean(x_new, axis=-1, keepdims=True)
    var3 = jnp.mean((x_new - mu3) ** 2, axis=-1, keepdims=True)
    hf = (x_new - mu3) * lax.rsqrt(var3 + 1e-5) * fg_ref[...] + fb_ref[...]
    out_ref[...] = (mm(hf, lw_ref[...]) + lb_ref[...]).astype(out_ref.dtype)


# ----------------------------------------------------------------------------
# Device-aware tiling heuristics
# ----------------------------------------------------------------------------
def _num_tensorcores():
  """TensorCores per device that the 'parallel' grid axis can shard across."""
  try:
    kind = jax.devices()[0].device_kind.lower()
  except Exception:
    return 1
  if 'v7' in kind:                    # v7x: 2 TCs / chip
    return 2
  if ('v4' in kind) or ('v5p' in kind):   # megacore chips
    return 2
  return 1                            # v5e / v6e: single TC


def _vmem_limit_bytes():
  try:
    kind = jax.devices()[0].device_kind.lower()
  except Exception:
    return None
  if 'v7' in kind:
    return 48 << 20                   # v7x: 64 MiB physical per TC; headroom
  return 96 << 20                     # v4/v5e/v5p/v6e: 128 MiB physical


def _pick_batch_block(N, S, num_tc=1, target_rows=1024):
  """Batch elements per grid program.  Single-TC chips want one (or few) big
  batch blocks (amortize grid-step overhead, no re-streaming of layer weights);
  2-TC chips want NB to be a multiple of num_tc so the parallel batch axis
  shards across cores.  Row blocks stay sublane-aligned unless NB == 1."""
  cands = []
  for bn in range(1, N + 1):
    if N % bn:
      continue
    rows = bn * S
    nb = N // bn
    if rows % 8 != 0 and nb != 1:
      continue
    if rows > target_rows and bn != 1:
      continue
    cands.append(bn)
  if not cands:
    return N
  if num_tc >= 2:
    multi = [bn for bn in cands if (N // bn) % num_tc == 0]
    if multi:
      return max(multi)
  return max(cands)


# ----------------------------------------------------------------------------
# Wrapper-side parameter re-layout + glue
# ----------------------------------------------------------------------------
def pack_fused_params(params, compute_dtype):
  """Stack per-layer tensors along a leading layer axis (natural (D,3D)/(D,D)
  layouts, no head splitting), split elem_embed weight, pad the output
  projection to a lane-dense 128-wide slab.  Streamed matmul weights are cast
  to `compute_dtype` (bf16 for production); biases / norms stay f32."""
  L = params['geom_w'].shape[1]
  D = params['elem_w'].shape[1]
  out_dim = params['lin_w'].shape[1]
  layers = params['layers']

  def stack(key, dt=jnp.float32):
    return jnp.stack([lp[key] for lp in layers], axis=0).astype(dt)

  lw = jnp.zeros((D, OUT_PAD), jnp.float32).at[:, :out_dim].set(params['lin_w'])
  lb = jnp.zeros((1, OUT_PAD), jnp.float32).at[:, :out_dim].set(params['lin_b'])

  fp = {
      'geom_w': params['geom_w'], 'geom_b': params['geom_b'],
      'type_w': params['type_w'], 'type_b': params['type_b'],
      'elem_wg': params['elem_w'][:L], 'elem_wa': params['elem_w'][L:],
      'elem_b': params['elem_b'],
      'wqkv': stack('wqkv', compute_dtype), 'bqkv': stack('bqkv'),
      'wo': stack('wo', compute_dtype), 'bo': stack('bo'),
      'g2': stack('g2'), 'be2': stack('be2'),
      'w1': stack('w1', compute_dtype), 'b1': stack('b1'),
      'w2': stack('w2', compute_dtype), 'b2': stack('b2'),
      'fin_g': params['fin_g'], 'fin_b': params['fin_b'],
      'lin_w_pad': lw, 'lin_b_pad': lb,
  }
  return fp, out_dim


def ada_scale_shift_all(t, layers, D):
  """AdaLayerNorm conditioning for ALL layers in one batched op.
  Returns (scale, shift), each (NL, N, D)."""
  HI = jax.lax.Precision.HIGHEST
  w1 = jnp.stack([lp['ada_w1'] for lp in layers])    # (NL, 1, D/2)
  b1 = jnp.stack([lp['ada_b1'] for lp in layers])    # (NL, D/2)
  w2 = jnp.stack([lp['ada_w2'] for lp in layers])    # (NL, D/2, D)
  b2 = jnp.stack([lp['ada_b2'] for lp in layers])    # (NL, D)
  w3 = jnp.stack([lp['ada_w3'] for lp in layers])    # (NL, D, 2D)
  b3 = jnp.stack([lp['ada_b3'] for lp in layers])    # (NL, 2D)
  h = jnp.maximum(t[None, :, None] * w1[:, 0][:, None, :] + b1[:, None, :], 0.0)
  h = jnp.einsum('lnd,lde->lne', h, w2, precision=HI) + b2[:, None, :]
  h = h * jax.nn.sigmoid(h)                          # SiLU
  e = jnp.einsum('lnd,lde->lne', h, w3, precision=HI) + b3[:, None, :]
  return e[..., :D], e[..., D:]


def layoutdm_forward(geom, attr, cond_flags, t, params, nhead,
                     compute_dtype=jnp.float32):
  N, S, _ = geom.shape
  L = params['geom_w'].shape[1]
  D = params['elem_w'].shape[1]
  F = params['layers'][0]['w1'].shape[1]
  NL = len(params['layers'])

  fp, out_dim = pack_fused_params(params, compute_dtype)

  # cond_enc is an nn.Embedding: 6-row table gather done in JAX glue.
  table = params['cond_enc']
  cg = table[jnp.sum(cond_flags[:, :, :4], axis=-1)]           # (N, S, L)
  ca = table[cond_flags[:, :, -1]]                              # (N, S, L)

  # AdaLayerNorm scale/shift for every layer, batched; kept per-batch-element
  # (broadcast over S happens inside the kernel).
  scale, shift = ada_scale_shift_all(t, params['layers'], D)    # (NL, N, D)

  # Flatten (N, S) -> rows so in-kernel matmuls see M = BN * S.
  geom2 = geom.reshape(N * S, 4).astype(jnp.float32)
  attr2 = attr.reshape(N * S, 1).astype(jnp.float32)
  cg2 = cg.reshape(N * S, L)
  ca2 = ca.reshape(N * S, L)

  num_tc = _num_tensorcores()
  BN = _pick_batch_block(N, S, num_tc=num_tc)
  NB = N // BN
  BM = BN * S

  scale4 = scale.reshape(NL, NB, BN, D)
  shift4 = shift.reshape(NL, NB, BN, D)

  row = lambda last: pl.BlockSpec((BM, last), lambda b, l: (b, 0))
  lay3 = lambda a, c: pl.BlockSpec((1, a, c), lambda b, l: (l, 0, 0))
  const = lambda a, c: pl.BlockSpec((a, c), lambda b, l: (0, 0))
  modspec = pl.BlockSpec((1, 1, BN, D), lambda b, l: (l, b, 0, 0))

  in_specs = [
      row(4), row(1), row(L), row(L),                            # geom, attr, cg, ca
      modspec, modspec,                                          # scale, shift
      const(4, L), const(1, L), const(1, L), const(1, L),        # geom_w/b, type_w/b
      const(L, D), const(L, D), const(1, D),                     # elem_wg/wa/b
      lay3(D, 3 * D), lay3(1, 3 * D),                            # wqkv, bqkv (fused)
      lay3(D, D), lay3(1, D),                                    # wo, bo
      lay3(1, D), lay3(1, D),                                    # g2, be2
      lay3(D, F), lay3(1, F), lay3(F, D), lay3(1, D),            # w1, b1, w2, b2
      const(1, D), const(1, D),                                  # fin_g, fin_b
      const(D, OUT_PAD), const(1, OUT_PAD),                      # lin_w_pad, lin_b_pad
  ]

  out_full = pl.pallas_call(
      functools.partial(fused_forward_kernel, nhead=nhead, bn=BN, seq=S,
                        cdt=compute_dtype),
      out_shape=jax.ShapeDtypeStruct((N * S, OUT_PAD), jnp.float32),
      grid=(NB, NL),
      in_specs=in_specs,
      out_specs=pl.BlockSpec((BM, OUT_PAD), lambda b, l: (b, 0)),
      scratch_shapes=[pltpu.VMEM((BM, D), jnp.float32),    # resident activation
                      pltpu.VMEM((BM, D), jnp.float32)],   # attn-output slab
      compiler_params=pltpu.CompilerParams(
          dimension_semantics=("parallel", "arbitrary"),
          vmem_limit_bytes=_vmem_limit_bytes()),
  )(geom2, attr2, cg2, ca2, scale4, shift4,
    fp['geom_w'], fp['geom_b'], fp['type_w'], fp['type_b'],
    fp['elem_wg'], fp['elem_wa'], fp['elem_b'],
    fp['wqkv'], fp['bqkv'], fp['wo'], fp['bo'],
    fp['g2'], fp['be2'],
    fp['w1'], fp['b1'], fp['w2'], fp['b2'],
    fp['fin_g'], fp['fin_b'], fp['lin_w_pad'], fp['lin_b_pad'])

  return out_full[:, :out_dim].reshape(N, S, out_dim)


# ----------------------------------------------------------------------------
# Pure-JAX reference (same math, no Pallas)
# ----------------------------------------------------------------------------
def reference_forward(geom, attr, cond_flags, t, params, nhead):
  HI = jax.lax.Precision.HIGHEST

  def mm(a, b):
    return jnp.dot(a, b, precision=HI)

  def ln(x, eps=1e-5):
    mu = jnp.mean(x, axis=-1, keepdims=True)
    var = jnp.mean((x - mu) ** 2, axis=-1, keepdims=True)
    return (x - mu) / jnp.sqrt(var + eps)

  table = params['cond_enc']
  cg = table[jnp.sum(cond_flags[:, :, :4], axis=-1)]
  ca = table[cond_flags[:, :, -1]]
  ge = mm(geom, params['geom_w']) + params['geom_b'] + cg
  ae = mm(attr, params['type_w']) + params['type_b'] + ca
  x = mm(jnp.concatenate([ge, ae], axis=-1), params['elem_w']) + params['elem_b']
  N, S, D = x.shape
  dh = D // nhead
  scale_all, shift_all = ada_scale_shift_all(t, params['layers'], D)
  for li, lp in enumerate(params['layers']):
    scale = scale_all[li][:, None, :]
    shift = shift_all[li][:, None, :]
    h = ln(x) * (1.0 + scale) + shift
    qkv = mm(h, lp['wqkv']) + lp['bqkv']
    q, k, v = qkv[..., :D], qkv[..., D:2 * D], qkv[..., 2 * D:]
    q = q.reshape(N, S, nhead, dh).transpose(0, 2, 1, 3)
    k = k.reshape(N, S, nhead, dh).transpose(0, 2, 1, 3)
    v = v.reshape(N, S, nhead, dh).transpose(0, 2, 1, 3)
    s = jnp.einsum('nhqd,nhkd->nhqk', q, k, precision=HI) / math.sqrt(dh)
    p = jax.nn.softmax(s, axis=-1)
    a = jnp.einsum('nhqk,nhkd->nhqd', p, v, precision=HI)
    a = a.transpose(0, 2, 1, 3).reshape(N, S, D)
    a = mm(a, lp['wo']) + lp['bo']
    x = h + a                                   # residual from normalized h (norm_first)
    h2 = ln(x) * lp['g2'] + lp['be2']
    ff = jnp.maximum(mm(h2, lp['w1']) + lp['b1'], 0.0)
    ff = mm(ff, lp['w2']) + lp['b2']
    x = x + ff
  h = ln(x) * params['fin_g'] + params['fin_b']
  return mm(h, params['lin_w']) + params['lin_b']


# ----------------------------------------------------------------------------
# Deterministic synthetic parameters
# ----------------------------------------------------------------------------
def init_params(key, L, D, F, num_layers, out_dim):
  keys = iter(jax.random.split(key, 16 + 32 * num_layers))

  def w(shape, s=0.05):
    return s * jax.random.normal(next(keys), shape, jnp.float32)

  p = {
      'geom_w': w((4, L)), 'geom_b': w((1, L), 0.01),
      'type_w': w((1, L)), 'type_b': w((1, L), 0.01),
      'cond_enc': w((6, L)),
      'elem_w': w((2 * L, D)), 'elem_b': w((1, D), 0.01),
      'fin_g': 1.0 + w((1, D), 0.01), 'fin_b': w((1, D), 0.01),
      'lin_w': w((D, out_dim)), 'lin_b': w((1, out_dim), 0.01),
      'layers': [],
  }
  for _ in range(num_layers):
    lp = {
        'ada_w1': w((1, D // 2)), 'ada_b1': w((D // 2,), 0.01),
        'ada_w2': w((D // 2, D)), 'ada_b2': w((D,), 0.01),
        'ada_w3': w((D, 2 * D)), 'ada_b3': w((2 * D,), 0.01),
        'wqkv': w((D, 3 * D)), 'bqkv': w((1, 3 * D), 0.01),
        'wo': w((D, D)), 'bo': w((1, D), 0.01),
        'w1': w((D, F)), 'b1': w((1, F), 0.01),
        'w2': w((F, D)), 'b2': w((1, D), 0.01),
        'g2': 1.0 + w((1, D), 0.01), 'be2': w((1, D), 0.01),
    }
    p['layers'].append(lp)
  return p


# ----------------------------------------------------------------------------
if __name__ == "__main__":
  # Small but structurally faithful hyperparameters.
  L = 32            # latent_dim
  D = 64            # d_model
  H = 4             # nhead
  F = 128           # dim_feedforward
  NL = 2            # num_layers
  out_dim = 4 + 1   # geom_dim + attr_dim (continuous -> attr_dim = 1)
  N, S = 4, 8       # batch / sequence

  key = jax.random.PRNGKey(0)
  kp, kg, ka, kc, kt = jax.random.split(key, 5)
  params = init_params(kp, L, D, F, NL, out_dim)

  geom = jax.random.normal(kg, (N, S, 4), jnp.float32)
  attr = jax.random.normal(ka, (N, S, 1), jnp.float32)
  cond_flags = jax.random.randint(kc, (N, S, 1), 0, 6, jnp.int32)
  t = jax.random.uniform(kt, (N,), jnp.float32)   # diffusion timestep per batch

  ref = reference_forward(geom, attr, cond_flags, t, params, H)

  # f32 path: tight numerical check against the pure-JAX reference.
  out = layoutdm_forward(geom, attr, cond_flags, t, params, H,
                         compute_dtype=jnp.float32)
  out = jax.block_until_ready(out)
  assert out.shape == (N, S, out_dim)
  assert bool(jnp.all(jnp.isfinite(out)))
  np.testing.assert_allclose(np.asarray(out), np.asarray(ref), rtol=2e-2, atol=2e-2)

  # bf16 weight-streaming path (production config on v6e/v7x): loose check.
  out_bf16 = layoutdm_forward(geom, attr, cond_flags, t, params, H,
                              compute_dtype=jnp.bfloat16)
  out_bf16 = jax.block_until_ready(out_bf16)
  assert bool(jnp.all(jnp.isfinite(out_bf16)))
  np.testing.assert_allclose(np.asarray(out_bf16), np.asarray(ref),
                             rtol=1e-1, atol=1e-1)

  print("KERNEL_OK")
</pallas_src>

<mosaic_0001>
module attributes {stable_mosaic.version = 11 : i64} {
  func.func @fused_forward_kernel(%arg0: i32, %arg1: i32, %arg2: memref<32x4xf32, #tpu.memory_space<vmem>>, %arg3: memref<32x1xf32, #tpu.memory_space<vmem>>, %arg4: memref<32x32xf32, #tpu.memory_space<vmem>>, %arg5: memref<32x32xf32, #tpu.memory_space<vmem>>, %arg6: memref<1x1x4x64xf32, #tpu.memory_space<vmem>>, %arg7: memref<1x1x4x64xf32, #tpu.memory_space<vmem>>, %arg8: memref<4x32xf32, #tpu.memory_space<vmem>>, %arg9: memref<1x32xf32, #tpu.memory_space<vmem>>, %arg10: memref<1x32xf32, #tpu.memory_space<vmem>>, %arg11: memref<1x32xf32, #tpu.memory_space<vmem>>, %arg12: memref<32x64xf32, #tpu.memory_space<vmem>>, %arg13: memref<32x64xf32, #tpu.memory_space<vmem>>, %arg14: memref<1x64xf32, #tpu.memory_space<vmem>>, %arg15: memref<1x64x192xf32, #tpu.memory_space<vmem>>, %arg16: memref<1x1x192xf32, #tpu.memory_space<vmem>>, %arg17: memref<1x64x64xf32, #tpu.memory_space<vmem>>, %arg18: memref<1x1x64xf32, #tpu.memory_space<vmem>>, %arg19: memref<1x1x64xf32, #tpu.memory_space<vmem>>, %arg20: memref<1x1x64xf32, #tpu.memory_space<vmem>>, %arg21: memref<1x64x128xf32, #tpu.memory_space<vmem>>, %arg22: memref<1x1x128xf32, #tpu.memory_space<vmem>>, %arg23: memref<1x128x64xf32, #tpu.memory_space<vmem>>, %arg24: memref<1x1x64xf32, #tpu.memory_space<vmem>>, %arg25: memref<1x64xf32, #tpu.memory_space<vmem>>, %arg26: memref<1x64xf32, #tpu.memory_space<vmem>>, %arg27: memref<64x128xf32, #tpu.memory_space<vmem>>, %arg28: memref<1x128xf32, #tpu.memory_space<vmem>>, %arg29: memref<32x128xf32, #tpu.memory_space<vmem>>, %arg30: memref<32x64xf32, #tpu.memory_space<vmem>>, %arg31: memref<32x64xf32, #tpu.memory_space<vmem>>) attributes {dimension_semantics = [#tpu.dimension_semantics<parallel>, #tpu.dimension_semantics<arbitrary>], iteration_bounds = array<i64: 1, 2>, scalar_prefetch = 0 : i64, scratch_operands = 2 : i64, tpu.core_type = #tpu.core_type<tc>, window_params = [{transform_indices = @transform_0, window_bounds = array<i64: 32, 4>}, {transform_indices = @transform_1, window_bounds = array<i64: 32, 1>}, {transform_indices = @transform_2, window_bounds = array<i64: 32, 32>}, {transform_indices = @transform_3, window_bounds = array<i64: 32, 32>}, {transform_indices = @transform_4, window_bounds = array<i64: 1, 1, 4, 64>}, {transform_indices = @transform_5, window_bounds = array<i64: 1, 1, 4, 64>}, {pipeline_mode = #tpu.pipeline_mode<synchronous>, transform_indices = @transform_6, window_bounds = array<i64: 4, 32>}, {pipeline_mode = #tpu.pipeline_mode<synchronous>, transform_indices = @transform_7, window_bounds = array<i64: 1, 32>}, {pipeline_mode = #tpu.pipeline_mode<synchronous>, transform_indices = @transform_8, window_bounds = array<i64: 1, 32>}, {pipeline_mode = #tpu.pipeline_mode<synchronous>, transform_indices = @transform_9, window_bounds = array<i64: 1, 32>}, {pipeline_mode = #tpu.pipeline_mode<synchronous>, transform_indices = @transform_10, window_bounds = array<i64: 32, 64>}, {pipeline_mode = #tpu.pipeline_mode<synchronous>, transform_indices = @transform_11, window_bounds = array<i64: 32, 64>}, {pipeline_mode = #tpu.pipeline_mode<synchronous>, transform_indices = @transform_12, window_bounds = array<i64: 1, 64>}, {transform_indices = @transform_13, window_bounds = array<i64: 1, 64, 192>}, {transform_indices = @transform_14, window_bounds = array<i64: 1, 1, 192>}, {transform_indices = @transform_15, window_bounds = array<i64: 1, 64, 64>}, {transform_indices = @transform_16, window_bounds = array<i64: 1, 1, 64>}, {transform_indices = @transform_17, window_bounds = array<i64: 1, 1, 64>}, {transform_indices = @transform_18, window_bounds = array<i64: 1, 1, 64>}, {transform_indices = @transform_19, window_bounds = array<i64: 1, 64, 128>}, {transform_indices = @transform_20, window_bounds = array<i64: 1, 1, 128>}, {transform_indices = @transform_21, window_bounds = array<i64: 1, 128, 64>}, {transform_indices = @transform_22, window_bounds = array<i64: 1, 1, 64>}, {pipeline_mode = #tpu.pipeline_mode<synchronous>, transform_indices = @transform_23, window_bounds = array<i64: 1, 64>}, {pipeline_mode = #tpu.pipeline_mode<synchronous>, transform_indices = @transform_24, window_bounds = array<i64: 1, 64>}, {pipeline_mode = #tpu.pipeline_mode<synchronous>, transform_indices = @transform_25, window_bounds = array<i64: 64, 128>}, {pipeline_mode = #tpu.pipeline_mode<synchronous>, transform_indices = @transform_26, window_bounds = array<i64: 1, 128>}, {transform_indices = @transform_27, window_bounds = array<i64: 32, 128>}]} {
    %c0_i32 = arith.constant 0 : i32
    %0 = arith.cmpi eq, %arg1, %c0_i32 : i32
    %1 = arith.extui %0 : i1 to i32
    %c0_i32_0 = arith.constant 0 : i32
    %2 = arith.cmpi ne, %1, %c0_i32_0 : i32
    scf.if %2 {
      %c0_85 = arith.constant 0 : index
      %c0_86 = arith.constant 0 : index
      %187 = vector.load %arg2[%c0_85, %c0_86] : memref<32x4xf32, #tpu.memory_space<vmem>>, vector<32x4xf32>
      %c0_87 = arith.constant 0 : index
      %c0_88 = arith.constant 0 : index
      %188 = vector.load %arg3[%c0_87, %c0_88] : memref<32x1xf32, #tpu.memory_space<vmem>>, vector<32x1xf32>
      %c0_89 = arith.constant 0 : index
      %c0_90 = arith.constant 0 : index
      %189 = vector.load %arg8[%c0_89, %c0_90] : memref<4x32xf32, #tpu.memory_space<vmem>>, vector<4x32xf32>
      %c0_91 = arith.constant 0 : index
      %c0_92 = arith.constant 0 : index
      %190 = vector.load %arg9[%c0_91, %c0_92] : memref<1x32xf32, #tpu.memory_space<vmem>>, vector<1x32xf32>
      %c0_93 = arith.constant 0 : index
      %c0_94 = arith.constant 0 : index
      %191 = vector.load %arg4[%c0_93, %c0_94] : memref<32x32xf32, #tpu.memory_space<vmem>>, vector<32x32xf32>
      %192 = vector.broadcast %190 : vector<1x32xf32> to vector<32x32xf32>
      %193 = arith.addf %192, %191 : vector<32x32xf32>
      %194 = vector.extract_strided_slice %187 {offsets = [0, 0], sizes = [32, 1], strides = [1, 1]} : vector<32x4xf32> to vector<32x1xf32>
      %195 = vector.extract_strided_slice %189 {offsets = [0, 0], sizes = [1, 32], strides = [1, 1]} : vector<4x32xf32> to vector<1x32xf32>
      %196 = vector.broadcast %194 : vector<32x1xf32> to vector<32x32xf32>
      %197 = vector.broadcast %195 : vector<1x32xf32> to vector<32x32xf32>
      %198 = arith.mulf %196, %197 : vector<32x32xf32>
      %199 = arith.addf %193, %198 : vector<32x32xf32>
      %200 = vector.extract_strided_slice %187 {offsets = [0, 1], sizes = [32, 1], strides = [1, 1]} : vector<32x4xf32> to vector<32x1xf32>
      %201 = vector.extract_strided_slice %189 {offsets = [1, 0], sizes = [1, 32], strides = [1, 1]} : vector<4x32xf32> to vector<1x32xf32>
      %202 = vector.broadcast %200 : vector<32x1xf32> to vector<32x32xf32>
      %203 = vector.broadcast %201 : vector<1x32xf32> to vector<32x32xf32>
      %204 = arith.mulf %202, %203 : vector<32x32xf32>
      %205 = arith.addf %199, %204 : vector<32x32xf32>
      %206 = vector.extract_strided_slice %187 {offsets = [0, 2], sizes = [32, 1], strides = [1, 1]} : vector<32x4xf32> to vector<32x1xf32>
      %207 = vector.extract_strided_slice %189 {offsets = [2, 0], sizes = [1, 32], strides = [1, 1]} : vector<4x32xf32> to vector<1x32xf32>
      %208 = vector.broadcast %206 : vector<32x1xf32> to vector<32x32xf32>
      %209 = vector.broadcast %207 : vector<1x32xf32> to vector<32x32xf32>
      %210 = arith.mulf %208, %209 : vector<32x32xf32>
      %211 = arith.addf %205, %210 : vector<32x32xf32>
      %212 = vector.extract_strided_slice %187 {offsets = [0, 3], sizes = [32, 1], strides = [1, 1]} : vector<32x4xf32> to vector<32x1xf32>
      %213 = vector.extract_strided_slice %189 {offsets = [3, 0], sizes = [1, 32], strides = [1, 1]} : vector<4x32xf32> to vector<1x32xf32>
      %214 = vector.broadcast %212 : vector<32x1xf32> to vector<32x32xf32>
      %215 = vector.broadcast %213 : vector<1x32xf32> to vector<32x32xf32>
      %216 = arith.mulf %214, %215 : vector<32x32xf32>
      %217 = arith.addf %211, %216 : vector<32x32xf32>
      %c0_95 = arith.constant 0 : index
      %c0_96 = arith.constant 0 : index
      %218 = vector.load %arg11[%c0_95, %c0_96] : memref<1x32xf32, #tpu.memory_space<vmem>>, vector<1x32xf32>
      %c0_97 = arith.constant 0 : index
      %c0_98 = arith.constant 0 : index
      %219 = vector.load %arg10[%c0_97, %c0_98] : memref<1x32xf32, #tpu.memory_space<vmem>>, vector<1x32xf32>
      %220 = vector.broadcast %188 : vector<32x1xf32> to vector<32x32xf32>
      %221 = vector.broadcast %219 : vector<1x32xf32> to vector<32x32xf32>
      %222 = arith.mulf %220, %221 : vector<32x32xf32>
      %223 = vector.broadcast %218 : vector<1x32xf32> to vector<32x32xf32>
      %224 = arith.addf %223, %222 : vector<32x32xf32>
      %c0_99 = arith.constant 0 : index
      %c0_100 = arith.constant 0 : index
      %225 = vector.load %arg5[%c0_99, %c0_100] : memref<32x32xf32, #tpu.memory_space<vmem>>, vector<32x32xf32>
      %226 = arith.addf %224, %225 : vector<32x32xf32>
      %c0_101 = arith.constant 0 : index
      %c0_102 = arith.constant 0 : index
      %227 = vector.load %arg12[%c0_101, %c0_102] : memref<32x64xf32, #tpu.memory_space<vmem>>, vector<32x64xf32>
      %cst_103 = arith.constant dense<0.000000e+00> : vector<32x64xf32>
      %228 = tpu.matmul %217, %227, %cst_103 {dimension_numbers = #tpu.dot_dimension_numbers<[1], [0], [0], [1], [0, 0, 1, 1], [], []>} : vector<32x32xf32>, vector<32x64xf32>, vector<32x64xf32> -> vector<32x64xf32>
      %c0_104 = arith.constant 0 : index
      %c0_105 = arith.constant 0 : index
      %229 = vector.load %arg13[%c0_104, %c0_105] : memref<32x64xf32, #tpu.memory_space<vmem>>, vector<32x64xf32>
      %cst_106 = arith.constant dense<0.000000e+00> : vector<32x64xf32>
      %230 = tpu.matmul %226, %229, %cst_106 {dimension_numbers = #tpu.dot_dimension_numbers<[1], [0], [0], [1], [0, 0, 1, 1], [], []>} : vector<32x32xf32>, vector<32x64xf32>, vector<32x64xf32> -> vector<32x64xf32>
      %231 = arith.addf %228, %230 : vector<32x64xf32>
      %c0_107 = arith.constant 0 : index
      %c0_108 = arith.constant 0 : index
      %232 = vector.load %arg14[%c0_107, %c0_108] : memref<1x64xf32, #tpu.memory_space<vmem>>, vector<1x64xf32>
      %233 = vector.broadcast %232 : vector<1x64xf32> to vector<32x64xf32>
      %234 = arith.addf %231, %233 : vector<32x64xf32>
      %c0_109 = arith.constant 0 : index
      %c0_110 = arith.constant 0 : index
      %235 = vector.load %arg30[%c0_109, %c0_110] : memref<32x64xf32, #tpu.memory_space<vmem>>, vector<32x64xf32>
      tpu.vector_store %arg30[%c0_109, %c0_110], %234 {strides = array<i32>} : memref<32x64xf32, #tpu.memory_space<vmem>>, vector<32x64xf32>,
    } else {
    }
    %c0 = arith.constant 0 : index
    %c0_1 = arith.constant 0 : index
    %3 = vector.load %arg30[%c0, %c0_1] : memref<32x64xf32, #tpu.memory_space<vmem>>, vector<32x64xf32>
    %cst = arith.constant dense<0.000000e+00> : vector<32xf32>
    %4 = vector.multi_reduction <add>, %3, %cst [1] : vector<32x64xf32> to vector<32xf32>
    %5 = vector.shape_cast %4 : vector<32xf32> to vector<32x1xf32>
    %cst_2 = arith.constant 6.400000e+01 : f32
    %6 = vector.broadcast %cst_2 : f32 to vector<32x1xf32>
    %7 = arith.divf %5, %6 : vector<32x1xf32>
    %8 = vector.broadcast %7 : vector<32x1xf32> to vector<32x64xf32>
    %9 = arith.subf %3, %8 : vector<32x64xf32>
    %10 = arith.mulf %9, %9 : vector<32x64xf32>
    %cst_3 = arith.constant dense<0.000000e+00> : vector<32xf32>
    %11 = vector.multi_reduction <add>, %10, %cst_3 [1] : vector<32x64xf32> to vector<32xf32>
    %12 = vector.shape_cast %11 : vector<32xf32> to vector<32x1xf32>
    %cst_4 = arith.constant 6.400000e+01 : f32
    %13 = vector.broadcast %cst_4 : f32 to vector<32x1xf32>
    %14 = arith.divf %12, %13 : vector<32x1xf32>
    %15 = vector.broadcast %7 : vector<32x1xf32> to vector<32x64xf32>
    %16 = arith.subf %3, %15 : vector<32x64xf32>
    %cst_5 = arith.constant 9.99999974E-6 : f32
    %17 = vector.broadcast %cst_5 : f32 to vector<32x1xf32>
    %18 = arith.addf %14, %17 : vector<32x1xf32>
    %19 = math.rsqrt %18 : vector<32x1xf32>
    %20 = vector.broadcast %19 : vector<32x1xf32> to vector<32x64xf32>
    %21 = arith.mulf %16, %20 : vector<32x64xf32>
    %c0_6 = arith.constant 0 : index
    %c0_7 = arith.constant 0 : index
    %c0_8 = arith.constant 0 : index
    %c0_9 = arith.constant 0 : index
    %22 = vector.load %arg6[%c0_6, %c0_7, %c0_8, %c0_9] : memref<1x1x4x64xf32, #tpu.memory_space<vmem>>, vector<1x1x4x64xf32>
    %23 = vector.shape_cast %22 : vector<1x1x4x64xf32> to vector<4x64xf32>
    %c0_10 = arith.constant 0 : index
    %c0_11 = arith.constant 0 : index
    %c0_12 = arith.constant 0 : index
    %c0_13 = arith.constant 0 : index
    %24 = vector.load %arg7[%c0_10, %c0_11, %c0_12, %c0_13] : memref<1x1x4x64xf32, #tpu.memory_space<vmem>>, vector<1x1x4x64xf32>
    %25 = vector.shape_cast %24 : vector<1x1x4x64xf32> to vector<4x64xf32>
    %26 = vector.shape_cast %21 : vector<32x64xf32> to vector<4x8x64xf32>
    %27 = vector.shape_cast %23 : vector<4x64xf32> to vector<4x1x64xf32>
    %cst_14 = arith.constant 1.000000e+00 : f32
    %28 = vector.broadcast %cst_14 : f32 to vector<4x1x64xf32>
    %29 = arith.addf %28, %27 : vector<4x1x64xf32>
    %30 = vector.broadcast %29 : vector<4x1x64xf32> to vector<4x8x64xf32>
    %31 = arith.mulf %26, %30 : vector<4x8x64xf32>
    %32 = vector.shape_cast %25 : vector<4x64xf32> to vector<4x1x64xf32>
    %33 = vector.broadcast %32 : vector<4x1x64xf32> to vector<4x8x64xf32>
    %34 = arith.addf %31, %33 : vector<4x8x64xf32>
    %35 = vector.shape_cast %34 : vector<4x8x64xf32> to vector<32x64xf32>
    %c0_15 = arith.constant 0 : index
    %c0_16 = arith.constant 0 : index
    %c0_17 = arith.constant 0 : index
    %36 = vector.load %arg15[%c0_15, %c0_16, %c0_17] : memref<1x64x192xf32, #tpu.memory_space<vmem>>, vector<1x64x192xf32>
    %37 = vector.shape_cast %36 : vector<1x64x192xf32> to vector<64x192xf32>
    %cst_18 = arith.constant dense<0.000000e+00> : vector<32x192xf32>
    %38 = tpu.matmul %35, %37, %cst_18 {dimension_numbers = #tpu.dot_dimension_numbers<[1], [0], [0], [1], [0, 0, 1, 1], [], []>} : vector<32x64xf32>, vector<64x192xf32>, vector<32x192xf32> -> vector<32x192xf32>
    %c0_19 = arith.constant 0 : index
    %c0_20 = arith.constant 0 : index
    %c0_21 = arith.constant 0 : index
    %39 = vector.load %arg16[%c0_19, %c0_20, %c0_21] : memref<1x1x192xf32, #tpu.memory_space<vmem>>, vector<1x1x192xf32>
    %40 = vector.shape_cast %39 : vector<1x1x192xf32> to vector<1x192xf32>
    %41 = vector.broadcast %40 : vector<1x192xf32> to vector<32x192xf32>
    %42 = arith.addf %38, %41 : vector<32x192xf32>
    %43 = vector.extract_strided_slice %42 {offsets = [0, 0], sizes = [32, 16], strides = [1, 1]} : vector<32x192xf32> to vector<32x16xf32>
    %44 = vector.shape_cast %43 : vector<32x16xf32> to vector<4x8x16xf32>
    %45 = vector.extract_strided_slice %42 {offsets = [0, 64], sizes = [32, 16], strides = [1, 1]} : vector<32x192xf32> to vector<32x16xf32>
    %46 = vector.shape_cast %45 : vector<32x16xf32> to vector<4x8x16xf32>
    %47 = vector.extract_strided_slice %42 {offsets = [0, 128], sizes = [32, 16], strides = [1, 1]} : vector<32x192xf32> to vector<32x16xf32>
    %48 = vector.shape_cast %47 : vector<32x16xf32> to vector<4x8x16xf32>
    "tpu.trace_start"() <{level = 10 : i32, message = "bqd,bkd->bqk"}> : () -> ()
    %cst_22 = arith.constant dense<0.000000e+00> : vector<4x8x8xf32>
    %49 = tpu.matmul %44, %46, %cst_22 {dimension_numbers = #tpu.dot_dimension_numbers<[2], [2], [1], [1], [0, 0, 0, 1, 1, 1], [0], [0]>} : vector<4x8x16xf32>, vector<4x8x16xf32>, vector<4x8x8xf32> -> vector<4x8x8xf32>
    "tpu.trace_stop"() : () -> ()
    %cst_23 = arith.constant 2.500000e-01 : f32
    %50 = vector.broadcast %cst_23 : f32 to vector<4x8x8xf32>
    %51 = arith.mulf %49, %50 : vector<4x8x8xf32>
    %cst_24 = arith.constant dense<0xFF800000> : vector<4x8xf32>
    %52 = vector.multi_reduction <maximumf>, %51, %cst_24 [2] : vector<4x8x8xf32> to vector<4x8xf32>
    %53 = vector.shape_cast %52 : vector<4x8xf32> to vector<4x8x1xf32>
    %54 = vector.broadcast %53 : vector<4x8x1xf32> to vector<4x8x8xf32>
    %55 = arith.subf %51, %54 : vector<4x8x8xf32>
    %56 = math.exp %55 : vector<4x8x8xf32>
    %cst_25 = arith.constant dense<0.000000e+00> : vector<4x8xf32>
    %57 = vector.multi_reduction <add>, %56, %cst_25 [2] : vector<4x8x8xf32> to vector<4x8xf32>
    %58 = vector.shape_cast %57 : vector<4x8xf32> to vector<4x8x1xf32>
    %59 = tpu.reciprocal %58 {approx = true} : vector<4x8x1xf32> -> vector<4x8x1xf32>
    %60 = vector.broadcast %59 : vector<4x8x1xf32> to vector<4x8x8xf32>
    %61 = arith.mulf %56, %60 : vector<4x8x8xf32>
    "tpu.trace_start"() <{level = 10 : i32, message = "bqk,bkd->bqd"}> : () -> ()
    %cst_26 = arith.constant dense<0.000000e+00> : vector<4x8x16xf32>
    %62 = tpu.matmul %61, %48, %cst_26 {dimension_numbers = #tpu.dot_dimension_numbers<[2], [1], [1], [2], [0, 0, 0, 1, 1, 2], [0], [0]>} : vector<4x8x8xf32>, vector<4x8x16xf32>, vector<4x8x16xf32> -> vector<4x8x16xf32>
    "tpu.trace_stop"() : () -> ()
    %63 = vector.shape_cast %62 : vector<4x8x16xf32> to vector<32x16xf32>
    %c0_27 = arith.constant 0 : index
    %c0_28 = arith.constant 0 : index
    %64 = vector.load %arg31[%c0_27, %c0_28] : memref<32x64xf32, #tpu.memory_space<vmem>>, vector<32x16xf32>
    tpu.vector_store %arg31[%c0_27, %c0_28], %63 {strides = array<i32>} : memref<32x64xf32, #tpu.memory_space<vmem>>, vector<32x16xf32>,
    %65 = vector.extract_strided_slice %42 {offsets = [0, 16], sizes = [32, 16], strides = [1, 1]} : vector<32x192xf32> to vector<32x16xf32>
    %66 = vector.shape_cast %65 : vector<32x16xf32> to vector<4x8x16xf32>
    %67 = vector.extract_strided_slice %42 {offsets = [0, 80], sizes = [32, 16], strides = [1, 1]} : vector<32x192xf32> to vector<32x16xf32>
    %68 = vector.shape_cast %67 : vector<32x16xf32> to vector<4x8x16xf32>
    %69 = vector.extract_strided_slice %42 {offsets = [0, 144], sizes = [32, 16], strides = [1, 1]} : vector<32x192xf32> to vector<32x16xf32>
    %70 = vector.shape_cast %69 : vector<32x16xf32> to vector<4x8x16xf32>
    "tpu.trace_start"() <{level = 10 : i32, message = "bqd,bkd->bqk"}> : () -> ()
    %cst_29 = arith.constant dense<0.000000e+00> : vector<4x8x8xf32>
    %71 = tpu.matmul %66, %68, %cst_29 {dimension_numbers = #tpu.dot_dimension_numbers<[2], [2], [1], [1], [0, 0, 0, 1, 1, 1], [0], [0]>} : vector<4x8x16xf32>, vector<4x8x16xf32>, vector<4x8x8xf32> -> vector<4x8x8xf32>
    "tpu.trace_stop"() : () -> ()
    %cst_30 = arith.constant 2.500000e-01 : f32
    %72 = vector.broadcast %cst_30 : f32 to vector<4x8x8xf32>
    %73 = arith.mulf %71, %72 : vector<4x8x8xf32>
    %cst_31 = arith.constant dense<0xFF800000> : vector<4x8xf32>
    %74 = vector.multi_reduction <maximumf>, %73, %cst_31 [2] : vector<4x8x8xf32> to vector<4x8xf32>
    %75 = vector.shape_cast %74 : vector<4x8xf32> to vector<4x8x1xf32>
    %76 = vector.broadcast %75 : vector<4x8x1xf32> to vector<4x8x8xf32>
    %77 = arith.subf %73, %76 : vector<4x8x8xf32>
    %78 = math.exp %77 : vector<4x8x8xf32>
    %cst_32 = arith.constant dense<0.000000e+00> : vector<4x8xf32>
    %79 = vector.multi_reduction <add>, %78, %cst_32 [2] : vector<4x8x8xf32> to vector<4x8xf32>
    %80 = vector.shape_cast %79 : vector<4x8xf32> to vector<4x8x1xf32>
    %81 = tpu.reciprocal %80 {approx = true} : vector<4x8x1xf32> -> vector<4x8x1xf32>
    %82 = vector.broadcast %81 : vector<4x8x1xf32> to vector<4x8x8xf32>
    %83 = arith.mulf %78, %82 : vector<4x8x8xf32>
    "tpu.trace_start"() <{level = 10 : i32, message = "bqk,bkd->bqd"}> : () -> ()
    %cst_33 = arith.constant dense<0.000000e+00> : vector<4x8x16xf32>
    %84 = tpu.matmul %83, %70, %cst_33 {dimension_numbers = #tpu.dot_dimension_numbers<[2], [1], [1], [2], [0, 0, 0, 1, 1, 2], [0], [0]>} : vector<4x8x8xf32>, vector<4x8x16xf32>, vector<4x8x16xf32> -> vector<4x8x16xf32>
    "tpu.trace_stop"() : () -> ()
    %85 = vector.shape_cast %84 : vector<4x8x16xf32> to vector<32x16xf32>
    %c0_34 = arith.constant 0 : index
    %c16 = arith.constant 16 : index
    %86 = vector.load %arg31[%c0_34, %c16] : memref<32x64xf32, #tpu.memory_space<vmem>>, vector<32x16xf32>
    tpu.vector_store %arg31[%c0_34, %c16], %85 {strides = array<i32>} : memref<32x64xf32, #tpu.memory_space<vmem>>, vector<32x16xf32>,
    %87 = vector.extract_strided_slice %42 {offsets = [0, 32], sizes = [32, 16], strides = [1, 1]} : vector<32x192xf32> to vector<32x16xf32>
    %88 = vector.shape_cast %87 : vector<32x16xf32> to vector<4x8x16xf32>
    %89 = vector.extract_strided_slice %42 {offsets = [0, 96], sizes = [32, 16], strides = [1, 1]} : vector<32x192xf32> to vector<32x16xf32>
    %90 = vector.shape_cast %89 : vector<32x16xf32> to vector<4x8x16xf32>
    %91 = vector.extract_strided_slice %42 {offsets = [0, 160], sizes = [32, 16], strides = [1, 1]} : vector<32x192xf32> to vector<32x16xf32>
    %92 = vector.shape_cast %91 : vector<32x16xf32> to vector<4x8x16xf32>
    "tpu.trace_start"() <{level = 10 : i32, message = "bqd,bkd->bqk"}> : () -> ()
    %cst_35 = arith.constant dense<0.000000e+00> : vector<4x8x8xf32>
    %93 = tpu.matmul %88, %90, %cst_35 {dimension_numbers = #tpu.dot_dimension_numbers<[2], [2], [1], [1], [0, 0, 0, 1, 1, 1], [0], [0]>} : vector<4x8x16xf32>, vector<4x8x16xf32>, vector<4x8x8xf32> -> vector<4x8x8xf32>
    "tpu.trace_stop"() : () -> ()
    %cst_36 = arith.constant 2.500000e-01 : f32
    %94 = vector.broadcast %cst_36 : f32 to vector<4x8x8xf32>
    %95 = arith.mulf %93, %94 : vector<4x8x8xf32>
    %cst_37 = arith.constant dense<0xFF800000> : vector<4x8xf32>
    %96 = vector.multi_reduction <maximumf>, %95, %cst_37 [2] : vector<4x8x8xf32> to vector<4x8xf32>
    %97 = vector.shape_cast %96 : vector<4x8xf32> to vector<4x8x1xf32>
    %98 = vector.broadcast %97 : vector<4x8x1xf32> to vector<4x8x8xf32>
    %99 = arith.subf %95, %98 : vector<4x8x8xf32>
    %100 = math.exp %99 : vector<4x8x8xf32>
    %cst_38 = arith.constant dense<0.000000e+00> : vector<4x8xf32>
    %101 = vector.multi_reduction <add>, %100, %cst_38 [2] : vector<4x8x8xf32> to vector<4x8xf32>
    %102 = vector.shape_cast %101 : vector<4x8xf32> to vector<4x8x1xf32>
    %103 = tpu.reciprocal %102 {approx = true} : vector<4x8x1xf32> -> vector<4x8x1xf32>
    %104 = vector.broadcast %103 : vector<4x8x1xf32> to vector<4x8x8xf32>
    %105 = arith.mulf %100, %104 : vector<4x8x8xf32>
    "tpu.trace_start"() <{level = 10 : i32, message = "bqk,bkd->bqd"}> : () -> ()
    %cst_39 = arith.constant dense<0.000000e+00> : vector<4x8x16xf32>
    %106 = tpu.matmul %105, %92, %cst_39 {dimension_numbers = #tpu.dot_dimension_numbers<[2], [1], [1], [2], [0, 0, 0, 1, 1, 2], [0], [0]>} : vector<4x8x8xf32>, vector<4x8x16xf32>, vector<4x8x16xf32> -> vector<4x8x16xf32>
    "tpu.trace_stop"() : () -> ()
    %107 = vector.shape_cast %106 : vector<4x8x16xf32> to vector<32x16xf32>
    %c0_40 = arith.constant 0 : index
    %c32 = arith.constant 32 : index
    %108 = vector.load %arg31[%c0_40, %c32] : memref<32x64xf32, #tpu.memory_space<vmem>>, vector<32x16xf32>
    tpu.vector_store %arg31[%c0_40, %c32], %107 {strides = array<i32>} : memref<32x64xf32, #tpu.memory_space<vmem>>, vector<32x16xf32>,
    %109 = vector.extract_strided_slice %42 {offsets = [0, 48], sizes = [32, 16], strides = [1, 1]} : vector<32x192xf32> to vector<32x16xf32>
    %110 = vector.shape_cast %109 : vector<32x16xf32> to vector<4x8x16xf32>
    %111 = vector.extract_strided_slice %42 {offsets = [0, 112], sizes = [32, 16], strides = [1, 1]} : vector<32x192xf32> to vector<32x16xf32>
    %112 = vector.shape_cast %111 : vector<32x16xf32> to vector<4x8x16xf32>
    %113 = vector.extract_strided_slice %42 {offsets = [0, 176], sizes = [32, 16], strides = [1, 1]} : vector<32x192xf32> to vector<32x16xf32>
    %114 = vector.shape_cast %113 : vector<32x16xf32> to vector<4x8x16xf32>
    "tpu.trace_start"() <{level = 10 : i32, message = "bqd,bkd->bqk"}> : () -> ()
    %cst_41 = arith.constant dense<0.000000e+00> : vector<4x8x8xf32>
    %115 = tpu.matmul %110, %112, %cst_41 {dimension_numbers = #tpu.dot_dimension_numbers<[2], [2], [1], [1], [0, 0, 0, 1, 1, 1], [0], [0]>} : vector<4x8x16xf32>, vector<4x8x16xf32>, vector<4x8x8xf32> -> vector<4x8x8xf32>
    "tpu.trace_stop"() : () -> ()
    %cst_42 = arith.constant 2.500000e-01 : f32
    %116 = vector.broadcast %cst_42 : f32 to vector<4x8x8xf32>
    %117 = arith.mulf %115, %116 : vector<4x8x8xf32>
    %cst_43 = arith.constant dense<0xFF800000> : vector<4x8xf32>
    %118 = vector.multi_reduction <maximumf>, %117, %cst_43 [2] : vector<4x8x8xf32> to vector<4x8xf32>
    %119 = vector.shape_cast %118 : vector<4x8xf32> to vector<4x8x1xf32>
    %120 = vector.broadcast %119 : vector<4x8x1xf32> to vector<4x8x8xf32>
    %121 = arith.subf %117, %120 : vector<4x8x8xf32>
    %122 = math.exp %121 : vector<4x8x8xf32>
    %cst_44 = arith.constant dense<0.000000e+00> : vector<4x8xf32>
    %123 = vector.multi_reduction <add>, %122, %cst_44 [2] : vector<4x8x8xf32> to vector<4x8xf32>
    %124 = vector.shape_cast %123 : vector<4x8xf32> to vector<4x8x1xf32>
    %125 = tpu.reciprocal %124 {approx = true} : vector<4x8x1xf32> -> vector<4x8x1xf32>
    %126 = vector.broadcast %125 : vector<4x8x1xf32> to vector<4x8x8xf32>
    %127 = arith.mulf %122, %126 : vector<4x8x8xf32>
    "tpu.trace_start"() <{level = 10 : i32, message = "bqk,bkd->bqd"}> : () -> ()
    %cst_45 = arith.constant dense<0.000000e+00> : vector<4x8x16xf32>
    %128 = tpu.matmul %127, %114, %cst_45 {dimension_numbers = #tpu.dot_dimension_numbers<[2], [1], [1], [2], [0, 0, 0, 1, 1, 2], [0], [0]>} : vector<4x8x8xf32>, vector<4x8x16xf32>, vector<4x8x16xf32> -> vector<4x8x16xf32>
    "tpu.trace_stop"() : () -> ()
    %129 = vector.shape_cast %128 : vector<4x8x16xf32> to vector<32x16xf32>
    %c0_46 = arith.constant 0 : index
    %c48 = arith.constant 48 : index
    %130 = vector.load %arg31[%c0_46, %c48] : memref<32x64xf32, #tpu.memory_space<vmem>>, vector<32x16xf32>
    tpu.vector_store %arg31[%c0_46, %c48], %129 {strides = array<i32>} : memref<32x64xf32, #tpu.memory_space<vmem>>, vector<32x16xf32>,
    %c0_47 = arith.constant 0 : index
    %c0_48 = arith.constant 0 : index
    %131 = vector.load %arg31[%c0_47, %c0_48] : memref<32x64xf32, #tpu.memory_space<vmem>>, vector<32x64xf32>
    %c0_49 = arith.constant 0 : index
    %c0_50 = arith.constant 0 : index
    %c0_51 = arith.constant 0 : index
    %132 = vector.load %arg17[%c0_49, %c0_50, %c0_51] : memref<1x64x64xf32, #tpu.memory_space<vmem>>, vector<1x64x64xf32>
    %133 = vector.shape_cast %132 : vector<1x64x64xf32> to vector<64x64xf32>
    %cst_52 = arith.constant dense<0.000000e+00> : vector<32x64xf32>
    %134 = tpu.matmul %131, %133, %cst_52 {dimension_numbers = #tpu.dot_dimension_numbers<[1], [0], [0], [1], [0, 0, 1, 1], [], []>} : vector<32x64xf32>, vector<64x64xf32>, vector<32x64xf32> -> vector<32x64xf32>
    %c0_53 = arith.constant 0 : index
    %c0_54 = arith.constant 0 : index
    %c0_55 = arith.constant 0 : index
    %135 = vector.load %arg18[%c0_53, %c0_54, %c0_55] : memref<1x1x64xf32, #tpu.memory_space<vmem>>, vector<1x1x64xf32>
    %136 = vector.shape_cast %135 : vector<1x1x64xf32> to vector<1x64xf32>
    %137 = vector.broadcast %136 : vector<1x64xf32> to vector<32x64xf32>
    %138 = arith.addf %134, %137 : vector<32x64xf32>
    %139 = arith.addf %35, %138 : vector<32x64xf32>
    %cst_56 = arith.constant dense<0.000000e+00> : vector<32xf32>
    %140 = vector.multi_reduction <add>, %139, %cst_56 [1] : vector<32x64xf32> to vector<32xf32>
    %141 = vector.shape_cast %140 : vector<32xf32> to vector<32x1xf32>
    %cst_57 = arith.constant 6.400000e+01 : f32
    %142 = vector.broadcast %cst_57 : f32 to vector<32x1xf32>
    %143 = arith.divf %141, %142 : vector<32x1xf32>
    %144 = vector.broadcast %143 : vector<32x1xf32> to vector<32x64xf32>
    %145 = arith.subf %139, %144 : vector<32x64xf32>
    %146 = arith.mulf %145, %145 : vector<32x64xf32>
    %cst_58 = arith.constant dense<0.000000e+00> : vector<32xf32>
    %147 = vector.multi_reduction <add>, %146, %cst_58 [1] : vector<32x64xf32> to vector<32xf32>
    %148 = vector.shape_cast %147 : vector<32xf32> to vector<32x1xf32>
    %cst_59 = arith.constant 6.400000e+01 : f32
    %149 = vector.broadcast %cst_59 : f32 to vector<32x1xf32>
    %150 = arith.divf %148, %149 : vector<32x1xf32>
    %151 = vector.broadcast %143 : vector<32x1xf32> to vector<32x64xf32>
    %152 = arith.subf %139, %151 : vector<32x64xf32>
    %cst_60 = arith.constant 9.99999974E-6 : f32
    %153 = vector.broadcast %cst_60 : f32 to vector<32x1xf32>
    %154 = arith.addf %150, %153 : vector<32x1xf32>
    %155 = math.rsqrt %154 : vector<32x1xf32>
    %156 = vector.broadcast %155 : vector<32x1xf32> to vector<32x64xf32>
    %157 = arith.mulf %152, %156 : vector<32x64xf32>
    %c0_61 = arith.constant 0 : index
    %c0_62 = arith.constant 0 : index
    %c0_63 = arith.constant 0 : index
    %158 = vector.load %arg19[%c0_61, %c0_62, %c0_63] : memref<1x1x64xf32, #tpu.memory_space<vmem>>, vector<1x1x64xf32>
    %159 = vector.shape_cast %158 : vector<1x1x64xf32> to vector<1x64xf32>
    %160 = vector.broadcast %159 : vector<1x64xf32> to vector<32x64xf32>
    %161 = arith.mulf %157, %160 : vector<32x64xf32>
    %c0_64 = arith.constant 0 : index
    %c0_65 = arith.constant 0 : index
    %c0_66 = arith.constant 0 : index
    %162 = vector.load %arg20[%c0_64, %c0_65, %c0_66] : memref<1x1x64xf32, #tpu.memory_space<vmem>>, vector<1x1x64xf32>
    %163 = vector.shape_cast %162 : vector<1x1x64xf32> to vector<1x64xf32>
    %164 = vector.broadcast %163 : vector<1x64xf32> to vector<32x64xf32>
    %165 = arith.addf %161, %164 : vector<32x64xf32>
    %c0_67 = arith.constant 0 : index
    %c0_68 = arith.constant 0 : index
    %c0_69 = arith.constant 0 : index
    %166 = vector.load %arg21[%c0_67, %c0_68, %c0_69] : memref<1x64x128xf32, #tpu.memory_space<vmem>>, vector<1x64x128xf32>
    %167 = vector.shape_cast %166 : vector<1x64x128xf32> to vector<64x128xf32>
    %cst_70 = arith.constant dense<0.000000e+00> : vector<32x128xf32>
    %168 = tpu.matmul %165, %167, %cst_70 {dimension_numbers = #tpu.dot_dimension_numbers<[1], [0], [0], [1], [0, 0, 1, 1], [], []>} : vector<32x64xf32>, vector<64x128xf32>, vector<32x128xf32> -> vector<32x128xf32>
    %c0_71 = arith.constant 0 : index
    %c0_72 = arith.constant 0 : index
    %c0_73 = arith.constant 0 : index
    %169 = vector.load %arg22[%c0_71, %c0_72, %c0_73] : memref<1x1x128xf32, #tpu.memory_space<vmem>>, vector<1x1x128xf32>
    %170 = vector.shape_cast %169 : vector<1x1x128xf32> to vector<1x128xf32>
    %171 = vector.broadcast %170 : vector<1x128xf32> to vector<32x128xf32>
    %172 = arith.addf %168, %171 : vector<32x128xf32>
    %cst_74 = arith.constant 0.000000e+00 : f32
    %173 = vector.broadcast %cst_74 : f32 to vector<32x128xf32>
    %174 = arith.maximumf %172, %173 : vector<32x128xf32>
    %c0_75 = arith.constant 0 : index
    %c0_76 = arith.constant 0 : index
    %c0_77 = arith.constant 0 : index
    %175 = vector.load %arg23[%c0_75, %c0_76, %c0_77] : memref<1x128x64xf32, #tpu.memory_space<vmem>>, vector<1x128x64xf32>
    %176 = vector.shape_cast %175 : vector<1x128x64xf32> to vector<128x64xf32>
    %cst_78 = arith.constant dense<0.000000e+00> : vector<32x64xf32>
    %177 = tpu.matmul %174, %176, %cst_78 {dimension_numbers = #tpu.dot_dimension_numbers<[1], [0], [0], [1], [0, 0, 1, 1], [], []>} : vector<32x128xf32>, vector<128x64xf32>, vector<32x64xf32> -> vector<32x64xf32>
    %c0_79 = arith.constant 0 : index
    %c0_80 = arith.constant 0 : index
    %c0_81 = arith.constant 0 : index
    %178 = vector.load %arg24[%c0_79, %c0_80, %c0_81] : memref<1x1x64xf32, #tpu.memory_space<vmem>>, vector<1x1x64xf32>
    %179 = vector.shape_cast %178 : vector<1x1x64xf32> to vector<1x64xf32>
    %180 = vector.broadcast %179 : vector<1x64xf32> to vector<32x64xf32>
    %181 = arith.addf %177, %180 : vector<32x64xf32>
    %182 = arith.addf %139, %181 : vector<32x64xf32>
    %c0_82 = arith.constant 0 : index
    %c0_83 = arith.constant 0 : index
    %183 = vector.load %arg30[%c0_82, %c0_83] : memref<32x64xf32, #tpu.memory_space<vmem>>, vector<32x64xf32>
    tpu.vector_store %arg30[%c0_82, %c0_83], %182 {strides = array<i32>} : memref<32x64xf32, #tpu.memory_space<vmem>>, vector<32x64xf32>,
    %c1_i32 = arith.constant 1 : i32
    %184 = arith.cmpi eq, %arg1, %c1_i32 : i32
    %185 = arith.extui %184 : i1 to i32
    %c0_i32_84 = arith.constant 0 : i32
    %186 = arith.cmpi ne, %185, %c0_i32_84 : i32
    scf.if %186 {
      %cst_85 = arith.constant dense<0.000000e+00> : vector<32xf32>
      %187 = vector.multi_reduction <add>, %182, %cst_85 [1] : vector<32x64xf32> to vector<32xf32>
      %188 = vector.shape_cast %187 : vector<32xf32> to vector<32x1xf32>
      %cst_86 = arith.constant 6.400000e+01 : f32
      %189 = vector.broadcast %cst_86 : f32 to vector<32x1xf32>
      %190 = arith.divf %188, %189 : vector<32x1xf32>
      %191 = vector.broadcast %190 : vector<32x1xf32> to vector<32x64xf32>
      %192 = arith.subf %182, %191 : vector<32x64xf32>
      %193 = arith.mulf %192, %192 : vector<32x64xf32>
      %cst_87 = arith.constant dense<0.000000e+00> : vector<32xf32>
      %194 = vector.multi_reduction <add>, %193, %cst_87 [1] : vector<32x64xf32> to vector<32xf32>
      %195 = vector.shape_cast %194 : vector<32xf32> to vector<32x1xf32>
      %cst_88 = arith.constant 6.400000e+01 : f32
      %196 = vector.broadcast %cst_88 : f32 to vector<32x1xf32>
      %197 = arith.divf %195, %196 : vector<32x1xf32>
      %198 = vector.broadcast %190 : vector<32x1xf32> to vector<32x64xf32>
      %199 = arith.subf %182, %198 : vector<32x64xf32>
      %cst_89 = arith.constant 9.99999974E-6 : f32
      %200 = vector.broadcast %cst_89 : f32 to vector<32x1xf32>
      %201 = arith.addf %197, %200 : vector<32x1xf32>
      %202 = math.rsqrt %201 : vector<32x1xf32>
      %203 = vector.broadcast %202 : vector<32x1xf32> to vector<32x64xf32>
      %204 = arith.mulf %199, %203 : vector<32x64xf32>
      %c0_90 = arith.constant 0 : index
      %c0_91 = arith.constant 0 : index
      %205 = vector.load %arg25[%c0_90, %c0_91] : memref<1x64xf32, #tpu.memory_space<vmem>>, vector<1x64xf32>
      %206 = vector.broadcast %205 : vector<1x64xf32> to vector<32x64xf32>
      %207 = arith.mulf %204, %206 : vector<32x64xf32>
      %c0_92 = arith.constant 0 : index
      %c0_93 = arith.constant 0 : index
      %208 = vector.load %arg26[%c0_92, %c0_93] : memref<1x64xf32, #tpu.memory_space<vmem>>, vector<1x64xf32>
      %209 = vector.broadcast %208 : vector<1x64xf32> to vector<32x64xf32>
      %210 = arith.addf %207, %209 : vector<32x64xf32>
      %c0_94 = arith.constant 0 : index
      %c0_95 = arith.constant 0 : index
      %211 = vector.load %arg27[%c0_94, %c0_95] : memref<64x128xf32, #tpu.memory_space<vmem>>, vector<64x128xf32>
      %cst_96 = arith.constant dense<0.000000e+00> : vector<32x128xf32>
      %212 = tpu.matmul %210, %211, %cst_96 {dimension_numbers = #tpu.dot_dimension_numbers<[1], [0], [0], [1], [0, 0, 1, 1], [], []>} : vector<32x64xf32>, vector<64x128xf32>, vector<32x128xf32> -> vector<32x128xf32>
      %c0_97 = arith.constant 0 : index
      %c0_98 = arith.constant 0 : index
      %213 = vector.load %arg28[%c0_97, %c0_98] : memref<1x128xf32, #tpu.memory_space<vmem>>, vector<1x128xf32>
      %214 = vector.broadcast %213 : vector<1x128xf32> to vector<32x128xf32>
      %215 = arith.addf %212, %214 : vector<32x128xf32>
      %c0_99 = arith.constant 0 : index
      %c0_100 = arith.constant 0 : index
      %216 = vector.load %arg29[%c0_99, %c0_100] : memref<32x128xf32, #tpu.memory_space<vmem>>, vector<32x128xf32>
      tpu.vector_store %arg29[%c0_99, %c0_100], %215 {strides = array<i32>} : memref<32x128xf32, #tpu.memory_space<vmem>>, vector<32x128xf32>,
    } else {
    }
    return
  }
  func.func @transform_0(%arg0: i32, %arg1: i32) -> (i32, i32) {
    %c0_i32 = arith.constant 0 : i32
    %c0_i32_0 = arith.constant 0 : i32
    return %arg0, %c0_i32 : i32, i32
  }
  func.func @transform_1(%arg0: i32, %arg1: i32) -> (i32, i32) {
    %c0_i32 = arith.constant 0 : i32
    %c0_i32_0 = arith.constant 0 : i32
    return %arg0, %c0_i32 : i32, i32
  }
  func.func @transform_2(%arg0: i32, %arg1: i32) -> (i32, i32) {
    %c0_i32 = arith.constant 0 : i32
    %c0_i32_0 = arith.constant 0 : i32
    return %arg0, %c0_i32 : i32, i32
  }
  func.func @transform_3(%arg0: i32, %arg1: i32) -> (i32, i32) {
    %c0_i32 = arith.constant 0 : i32
    %c0_i32_0 = arith.constant 0 : i32
    return %arg0, %c0_i32 : i32, i32
  }
  func.func @transform_4(%arg0: i32, %arg1: i32) -> (i32, i32, i32, i32) {
    %c0_i32 = arith.constant 0 : i32
    %c0_i32_0 = arith.constant 0 : i32
    %c0_i32_1 = arith.constant 0 : i32
    return %arg1, %arg0, %c0_i32, %c0_i32_0 : i32, i32, i32, i32
  }
  func.func @transform_5(%arg0: i32, %arg1: i32) -> (i32, i32, i32, i32) {
    %c0_i32 = arith.constant 0 : i32
    %c0_i32_0 = arith.constant 0 : i32
    %c0_i32_1 = arith.constant 0 : i32
    return %arg1, %arg0, %c0_i32, %c0_i32_0 : i32, i32, i32, i32
  }
  func.func @transform_6(%arg0: i32, %arg1: i32) -> (i32, i32) {
    %c0_i32 = arith.constant 0 : i32
    %c0_i32_0 = arith.constant 0 : i32
    %c0_i32_1 = arith.constant 0 : i32
    return %c0_i32, %c0_i32_0 : i32, i32
  }
  func.func @transform_7(%arg0: i32, %arg1: i32) -> (i32, i32) {
    %c0_i32 = arith.constant 0 : i32
    %c0_i32_0 = arith.constant 0 : i32
    %c0_i32_1 = arith.constant 0 : i32
    return %c0_i32, %c0_i32_0 : i32, i32
  }
  func.func @transform_8(%arg0: i32, %arg1: i32) -> (i32, i32) {
    %c0_i32 = arith.constant 0 : i32
    %c0_i32_0 = arith.constant 0 : i32
    %c0_i32_1 = arith.constant 0 : i32
    return %c0_i32, %c0_i32_0 : i32, i32
  }
  func.func @transform_9(%arg0: i32, %arg1: i32) -> (i32, i32) {
    %c0_i32 = arith.constant 0 : i32
    %c0_i32_0 = arith.constant 0 : i32
    %c0_i32_1 = arith.constant 0 : i32
    return %c0_i32, %c0_i32_0 : i32, i32
  }
  func.func @transform_10(%arg0: i32, %arg1: i32) -> (i32, i32) {
    %c0_i32 = arith.constant 0 : i32
    %c0_i32_0 = arith.constant 0 : i32
    %c0_i32_1 = arith.constant 0 : i32
    return %c0_i32, %c0_i32_0 : i32, i32
  }
  func.func @transform_11(%arg0: i32, %arg1: i32) -> (i32, i32) {
    %c0_i32 = arith.constant 0 : i32
    %c0_i32_0 = arith.constant 0 : i32
    %c0_i32_1 = arith.constant 0 : i32
    return %c0_i32, %c0_i32_0 : i32, i32
  }
  func.func @transform_12(%arg0: i32, %arg1: i32) -> (i32, i32) {
    %c0_i32 = arith.constant 0 : i32
    %c0_i32_0 = arith.constant 0 : i32
    %c0_i32_1 = arith.constant 0 : i32
    return %c0_i32, %c0_i32_0 : i32, i32
  }
  func.func @transform_13(%arg0: i32, %arg1: i32) -> (i32, i32, i32) {
    %c0_i32 = arith.constant 0 : i32
    %c0_i32_0 = arith.constant 0 : i32
    %c0_i32_1 = arith.constant 0 : i32
    return %arg1, %c0_i32, %c0_i32_0 : i32, i32, i32
  }
  func.func @transform_14(%arg0: i32, %arg1: i32) -> (i32, i32, i32) {
    %c0_i32 = arith.constant 0 : i32
    %c0_i32_0 = arith.constant 0 : i32
    %c0_i32_1 = arith.constant 0 : i32
    return %arg1, %c0_i32, %c0_i32_0 : i32, i32, i32
  }
  func.func @transform_15(%arg0: i32, %arg1: i32) -> (i32, i32, i32) {
    %c0_i32 = arith.constant 0 : i32
    %c0_i32_0 = arith.constant 0 : i32
    %c0_i32_1 = arith.constant 0 : i32
    return %arg1, %c0_i32, %c0_i32_0 : i32, i32, i32
  }
  func.func @transform_16(%arg0: i32, %arg1: i32) -> (i32, i32, i32) {
    %c0_i32 = arith.constant 0 : i32
    %c0_i32_0 = arith.constant 0 : i32
    %c0_i32_1 = arith.constant 0 : i32
    return %arg1, %c0_i32, %c0_i32_0 : i32, i32, i32
  }
  func.func @transform_17(%arg0: i32, %arg1: i32) -> (i32, i32, i32) {
    %c0_i32 = arith.constant 0 : i32
    %c0_i32_0 = arith.constant 0 : i32
    %c0_i32_1 = arith.constant 0 : i32
    return %arg1, %c0_i32, %c0_i32_0 : i32, i32, i32
  }
  func.func @transform_18(%arg0: i32, %arg1: i32) -> (i32, i32, i32) {
    %c0_i32 = arith.constant 0 : i32
    %c0_i32_0 = arith.constant 0 : i32
    %c0_i32_1 = arith.constant 0 : i32
    return %arg1, %c0_i32, %c0_i32_0 : i32, i32, i32
  }
  func.func @transform_19(%arg0: i32, %arg1: i32) -> (i32, i32, i32) {
    %c0_i32 = arith.constant 0 : i32
    %c0_i32_0 = arith.constant 0 : i32
    %c0_i32_1 = arith.constant 0 : i32
    return %arg1, %c0_i32, %c0_i32_0 : i32, i32, i32
  }
  func.func @transform_20(%arg0: i32, %arg1: i32) -> (i32, i32, i32) {
    %c0_i32 = arith.constant 0 : i32
    %c0_i32_0 = arith.constant 0 : i32
    %c0_i32_1 = arith.constant 0 : i32
    return %arg1, %c0_i32, %c0_i32_0 : i32, i32, i32
  }
  func.func @transform_21(%arg0: i32, %arg1: i32) -> (i32, i32, i32) {
    %c0_i32 = arith.constant 0 : i32
    %c0_i32_0 = arith.constant 0 : i32
    %c0_i32_1 = arith.constant 0 : i32
    return %arg1, %c0_i32, %c0_i32_0 : i32, i32, i32
  }
  func.func @transform_22(%arg0: i32, %arg1: i32) -> (i32, i32, i32) {
    %c0_i32 = arith.constant 0 : i32
    %c0_i32_0 = arith.constant 0 : i32
    %c0_i32_1 = arith.constant 0 : i32
    return %arg1, %c0_i32, %c0_i32_0 : i32, i32, i32
  }
  func.func @transform_23(%arg0: i32, %arg1: i32) -> (i32, i32) {
    %c0_i32 = arith.constant 0 : i32
    %c0_i32_0 = arith.constant 0 : i32
    %c0_i32_1 = arith.constant 0 : i32
    return %c0_i32, %c0_i32_0 : i32, i32
  }
  func.func @transform_24(%arg0: i32, %arg1: i32) -> (i32, i32) {
    %c0_i32 = arith.constant 0 : i32
    %c0_i32_0 = arith.constant 0 : i32
    %c0_i32_1 = arith.constant 0 : i32
    return %c0_i32, %c0_i32_0 : i32, i32
  }
  func.func @transform_25(%arg0: i32, %arg1: i32) -> (i32, i32) {
    %c0_i32 = arith.constant 0 : i32
    %c0_i32_0 = arith.constant 0 : i32
    %c0_i32_1 = arith.constant 0 : i32
    return %c0_i32, %c0_i32_0 : i32, i32
  }
  func.func @transform_26(%arg0: i32, %arg1: i32) -> (i32, i32) {
    %c0_i32 = arith.constant 0 : i32
    %c0_i32_0 = arith.constant 0 : i32
    %c0_i32_1 = arith.constant 0 : i32
    return %c0_i32, %c0_i32_0 : i32, i32
  }
  func.func @transform_27(%arg0: i32, %arg1: i32) -> (i32, i32) {
    %c0_i32 = arith.constant 0 : i32
    %c0_i32_0 = arith.constant 0 : i32
    return %arg0, %c0_i32 : i32, i32
  }
}

</mosaic_0001>

<bundles_post_ra>
// kernel: tpu_custom_call.1
= control target key start
LH: loop header
LB: loop body
LE: loop exit
PB: predicated region body
PF: predicated region fallthrough
CT: control target
= control target key end

     0   :  { %s5669_s0 = inlined_call_operand.vmem [shape: f32[32,4], index: 0, kind: input, shape index: {}]   ;;  %s5670_s1 = inlined_call_operand.vmem [shape: f32[32,1], index: 1, kind: input, shape index: {}]   ;;  %s5671_s2 = inlined_call_operand.hbm [shape: f32[32,32], index: 2, kind: input, shape index: {}]   ;;  %s5672_s3 = inlined_call_operand.hbm [shape: f32[32,32], index: 3, kind: input, shape index: {}]   ;;  %s5673_s4 = inlined_call_operand.hbm [shape: f32[2,1,4,64], index: 4, kind: input, shape index: {}]   ;;  %s5674_s5 = inlined_call_operand.vmem [shape: f32[2,1,4,64], index: 5, kind: input, shape index: {}]   ;;  %s5675_s6 = inlined_call_operand.hbm [shape: f32[4,32], index: 6, kind: input, shape index: {}]   ;;  %s5676_s7 = inlined_call_operand.hbm [shape: f32[1,32], index: 7, kind: input, shape index: {}]   ;;  %s5677_s8 = inlined_call_operand.hbm [shape: f32[1,32], index: 8, kind: input, shape index: {}]   ;;  %s5678_s9 = inlined_call_operand.hbm [shape: f32[1,32], index: 9, kind: input, shape index: {}]   ;;  %s5679_s10 = inlined_call_operand.hbm [shape: f32[32,64], index: 10, kind: input, shape index: {}]   ;;  %s5680_s11 = inlined_call_operand.hbm [shape: f32[32,64], index: 11, kind: input, shape index: {}]   ;;  %s5681_s12 = inlined_call_operand.hbm [shape: f32[1,64], index: 12, kind: input, shape index: {}]   ;;  %s5682_s13 = inlined_call_operand.vmem [shape: f32[2,64,192], index: 13, kind: input, shape index: {}]   ;;  %s5683_s14 = inlined_call_operand.vmem [shape: f32[2,1,192], index: 14, kind: input, shape index: {}]   ;;  %s5684_s15 = inlined_call_operand.vmem [shape: f32[2,64,64], index: 15, kind: input, shape index: {}]   ;;  %s5685_s16 = inlined_call_operand.vmem [shape: f32[2,1,64], index: 16, kind: input, shape index: {}]   ;;  %s5686_s17 = inlined_call_operand.vmem [shape: f32[2,1,64], index: 17, kind: input, shape index: {}]   ;;  %s5687_s18 = inlined_call_operand.vmem [shape: f32[2,1,64], index: 18, kind: input, shape index: {}]   ;;  %s5688_s19 = inlined_call_operand.hbm [shape: f32[2,64,128], index: 19, kind: input, shape index: {}]   ;;  %s5689_s20 = inlined_call_operand.vmem [shape: f32[2,1,128], index: 20, kind: input, shape index: {}]   ;;  %s5690_s21 = inlined_call_operand.vmem [shape: f32[2,128,64], index: 21, kind: input, shape index: {}]   ;;  %s5691_s22 = inlined_call_operand.vmem [shape: f32[2,1,64], index: 22, kind: input, shape index: {}]   ;;  %s5692_s23 = inlined_call_operand.vmem [shape: f32[1,64], index: 23, kind: input, shape index: {}]   ;;  %s5693_s24 = inlined_call_operand.hbm [shape: f32[1,64], index: 24, kind: input, shape index: {}]   ;;  %s5694_s25 = inlined_call_operand.vmem [shape: f32[64,128], index: 25, kind: input, shape index: {}]   ;;  %s5695_s26 = inlined_call_operand.vmem [shape: f32[1,128], index: 26, kind: input, shape index: {}]   ;;  %s5696_s27 = inlined_call_operand.hbm [shape: f32[32,128], index: 27, kind: output, shape index: {}]  }
   0x1   :  { %5707 = sst [smem:[#allocation40_spill]] %s5669_s0 }
   0x2   :  { %5708 = sst [smem:[#allocation41_spill]] %s5670_s1 }
   0x3   :  { %5709 = sst [smem:[#allocation42_spill]] %s5671_s2 }
   0x4   :  { %5710 = sst [smem:[#allocation43_spill]] %s5672_s3 }
   0x5   :  { %5711 = sst [smem:[#allocation44_spill]] %s5673_s4 }
   0x6   :  { %5712 = sst [smem:[#allocation45_spill]] %s5674_s5 }
   0x7   :  { %5713 = sst [smem:[#allocation46_spill]] %s5675_s6 }
   0x8   :  { %5714 = sst [smem:[#allocation47_spill]] %s5676_s7 }
   0x9   :  { %5715 = sst [smem:[#allocation48_spill]] %s5677_s8 }
   0xa   :  { %5716 = sst [smem:[#allocation49_spill]] %s5678_s9 }
   0xb   :  { %5717 = sst [smem:[#allocation50_spill]] %s5679_s10 }
   0xc   :  { %5718 = sst [smem:[#allocation51_spill]] %s5680_s11 }
   0xd   :  { %5719 = sst [smem:[#allocation52_spill]] %s5681_s12 }
   0xe   :  { %5720 = sst [smem:[#allocation53_spill]] %s5682_s13 }
   0xf   :  { %5721 = sst [smem:[#allocation54_spill]] %s5683_s14 }
  0x10   :  { %5722 = sst [smem:[#allocation55_spill]] %s5684_s15 }
  0x11   :  { %5723 = sst [smem:[#allocation56_spill]] %s5685_s16 }
  0x12   :  { %5724 = sst [smem:[#allocation57_spill]] %s5686_s17 }
  0x13   :  { %5725 = sst [smem:[#allocation58_spill]] %s5687_s18 }
  0x14   :  { %5726 = sst [smem:[#allocation59_spill]] %s5688_s19 }
  0x15   :  { %5727 = sst [smem:[#allocation60_spill]] %s5689_s20 }
  0x16   :  { %5728 = sst [smem:[#allocation61_spill]] %s5690_s21 }
  0x17   :  { %5729 = sst [smem:[#allocation62_spill]] %s5691_s22 }
  0x18   :  { %5730 = sst [smem:[#allocation63_spill]] %s5692_s23 }
  0x19   :  { %5731 = sst [smem:[#allocation64_spill]] %s5693_s24 }
  0x1a   :  { %5732 = sst [smem:[#allocation65_spill]] %s5694_s25 }
  0x1b   :  { %5733 = sst [smem:[#allocation66_spill]] %s5695_s26 }
  0x1c   :  { %5734 = sst [smem:[#allocation67_spill]] %s5696_s27 }
  0x1d   :  { %32 = vsyncpa [#allocation5], 0 }
  0x1e   :  { %33 = vsyncpa [#allocation8], 0 }
  0x1f   :  { %34 = vsyncpa [#allocation12], 0 }
  0x20   :  { %35 = vsyncpa [#allocation15], 0 }
  0x21   :  { %36 = vsyncpa [#allocation18], 0 }
  0x22   :  { %37 = vsyncpa [#allocation21], 0 }
  0x23   :  { %39 = vsyncpa [#allocation21 + $0x1], 0 }
  0x24   :  { %40 = vsyncpa [#allocation6], 0  ;;  %s4826_s7 = smov 0   ;;  %s4828_s4 = smov 0  }
  0x25   :  { %s4830_s8 = smov 0   ;;  %s4832_s30 = smov 0  }
  0x26   :  { %s4834_s9 = smov 0   ;;  %s4836_s5 = smov 0  }
  0x27 LB: > { %5735 = sst [smem:[#allocation34_spill]] %s4641_s4  ;;  %s4857_s28 = sadd.s32 4294967295, %s4657_s5   ;;  %s4657_s5 = sphi %s4836_s5, %s46_s5   ;;  %s4653_s9 = sphi %s4834_s9, %s5788_s9   ;;  %s4649_s30 = sphi %s4832_s30, %s5787_s30   ;;  %s4645_s8 = sphi %s4830_s8, %s5786_s8   ;;  %s4641_s4 = sphi %s4828_s4, %s5785_s4   ;;  %s4637_s7 = sphi %s4826_s7, %s5784_s7  }
  0x28   : > { %5736 = sst [smem:[#allocation35_spill]] %s4645_s8  ;;  %p3681_p0 = scmp.ge.s32.totalorder %s4657_s5, 1 }
  0x29   : > { %5737 = sst [smem:[#allocation36_spill]] %s4653_s9  ;;  %p185_p1 = scmp.eq.s32.totalorder %s4857_s28, 0 }
  0x2a   : > { %5738 = sst [smem:[#allocation37_spill]] %s4657_s5  ;;  %p740_p2 = scmp.lt.s32.totalorder %s4657_s5, 3 }
  0x2b   : > { %s5739_s29 = sld [smem:[#allocation42_spill]]  ;;  %s4659_s11 = smov [#allocation4]  }
  0x2c   : > { %p4865_p3 = pnand %p3681_p0, %p740_p2  ;;  %s774_s2 = sshll.u32 %s4659_s11, 4  ;;  %s775_s2 = int_to_ptr.vmem [resolvable:$true] %s774_s2 }
  0x2d   : > { %s5742_s0 = sld [smem:[#allocation43_spill]]  ;;  %s5701_s23 = smov 8  }
  0x2e   : > { %p3903_p4 = pneg %p4865_p3  ;;  %s4662_s11 = smov [#allocation7]  }
  0x2f   : > { %s791_s25 = sshll.u32 %s4662_s11, 4  ;;  %s5743_s20 = sld [smem:[#allocation47_spill]]  ;;  %s792_s25 = int_to_ptr.vmem [resolvable:$true] %s791_s25 }
  0x30   : > { %p4873_p5 = pnand %p3903_p4, %p185_p1  ;;  %s4663_s16 = smov [#allocation11]  }
  0x31   : > { %s772_s1 = sshll.u32 %s5739_s29, 4  ;;  %s5700_s29 = smov 128   ;;  %s773_s1 = int_to_ptr.hbm [resolvable:$true] %s772_s1 }
  0x32   : > { %3906 = dma.hbm_to_vmem [thread:$0]  (!%p4873_p5), %s773_s1, 512, %s775_s2, [#allocation5], %s5700_s29, %s5700_s29, %s5701_s23  }
  0x33   : > { %s789_s10 = sshll.u32 %s5742_s0, 4  ;;  %s5744_s0 = sld [smem:[#allocation49_spill]]  ;;  %s790_s10 = int_to_ptr.hbm [resolvable:$true] %s789_s10 }
  0x34   : > { %3909 = dma.hbm_to_vmem [thread:$0]  (!%p4873_p5), %s790_s10, 512, %s792_s25, [#allocation8], %s5700_s29, %s5700_s29, %s5701_s23  }
  0x35   : > { %s816_s18 = sshll.u32 %s5743_s20, 4  ;;  %s818_s1 = sshll.u32 %s4663_s16, 4  ;;  %s817_s18 = int_to_ptr.hbm [resolvable:$true] %s816_s18  ;;  %s819_s1 = int_to_ptr.vmem [resolvable:$true] %s818_s1 }
  0x36   : > { %3915 = dma.hbm_to_vmem [thread:$0]  (!%p4873_p5), %s817_s18, 16, %s819_s1, [#allocation12]  }
  0x37   : > { %s4664_s21 = smov [#allocation14]   ;;  %s5745_s11 = sld [smem:[#allocation51_spill]] }
  0x38   : > { %s842_s20 = sshll.u32 %s4664_s21, 4  ;;  %s5746_s24 = sld [smem:[#allocation64_spill]]  ;;  %s843_s20 = int_to_ptr.vmem [resolvable:$true] %s842_s20 }
  0x39   : > { %s840_s17 = sshll.u32 %s5744_s0, 4  ;;  %s4665_s16 = smov [#allocation17]   ;;  %s841_s17 = int_to_ptr.hbm [resolvable:$true] %s840_s17 }
  0x3a   : > { %3921 = dma.hbm_to_vmem [thread:$0]  (!%p4873_p5), %s841_s17, 16, %s843_s20, [#allocation15]  }
  0x3b   : > { %s867_s27 = sshll.u32 %s4665_s16, 4  ;;  %s4666_s18 = smov [#allocation22]   ;;  %s868_s27 = int_to_ptr.vmem [resolvable:$true] %s867_s27 }
  0x3c   : > { %s897_s0 = sshll.u32 %s4666_s18, 4  ;;  %s5747_s22 = sld [smem:[#allocation46_spill]]  ;;  %s898_s0 = int_to_ptr.vmem [resolvable:$true] %s897_s0 }
  0x3d   : > { %s865_s15 = sshll.u32 %s5745_s11, 4  ;;  %s5748_s11 = sld [smem:[#allocation48_spill]]  ;;  %s866_s15 = int_to_ptr.hbm [resolvable:$true] %s865_s15 }
  0x3e   : > { %s895_s26 = sshll.u32 %s5746_s24, 4  ;;  %s4667_s10 = smov [#allocation10]   ;;  %s896_s26 = int_to_ptr.hbm [resolvable:$true] %s895_s26 }
  0x3f   : > { %3927 = dma.hbm_to_vmem [thread:$0]  (!%p4873_p5), %s866_s15, 512, %s868_s27, [#allocation18], %s5700_s29, %s5700_s29, %s5701_s23  }
  0x40   : > { %3933 = dma.hbm_to_vmem [thread:$0]  (!%p4873_p5), %s896_s26, 16, %s898_s0, [#allocation21]  }
  0x41   : > { %s806_s16 = sshll.u32 %s4667_s10, 4  ;;  %s4668_s15 = smov [#allocation13]   ;;  %s807_s16 = int_to_ptr.vmem [resolvable:$true] %s806_s16 }
  0x42   : > { %s804_s17 = sshll.u32 %s5747_s22, 4  ;;  %s830_s27 = sshll.u32 %s4668_s15, 4  ;;  %s805_s17 = int_to_ptr.hbm [resolvable:$true] %s804_s17  ;;  %s831_s27 = int_to_ptr.vmem [resolvable:$true] %s830_s27 }
  0x43   : > { %s828_s25 = sshll.u32 %s5748_s11, 4  ;;  %s5749_s21 = sld [smem:[#allocation50_spill]]  ;;  %s829_s25 = int_to_ptr.hbm [resolvable:$true] %s828_s25 }
  0x44   : > { %3912 = dma.hbm_to_vmem [thread:$0]  (!%p4873_p5), %s805_s17, 64, %s807_s16, [#allocation8]  }
  0x45   : > { %3918 = dma.hbm_to_vmem [thread:$0]  (!%p4873_p5), %s829_s25, 16, %s831_s27, [#allocation12]  }
  0x46   : > { %s5750_s12 = sld [smem:[#allocation52_spill]]  ;;  %s4669_s20 = smov [#allocation16]  }
  0x47   : > { %s853_s2 = sshll.u32 %s4669_s20, 4  ;;  %s4670_s11 = smov [#allocation19]   ;;  %s854_s2 = int_to_ptr.vmem [resolvable:$true] %s853_s2 }
  0x48   : > { %s882_s25 = sshll.u32 %s4670_s11, 4  ;;  %s55_s10 = sadd.s32 1, %s4653_s9  ;;  %s883_s25 = int_to_ptr.vmem [resolvable:$true] %s882_s25 }
  0x49   : > { %s851_s26 = sshll.u32 %s5749_s21, 4  ;;  %s171_s16 = sadd.s32 1, %s4645_s8  ;;  %s852_s26 = int_to_ptr.hbm [resolvable:$true] %s851_s26 }
  0x4a   : > { %3924 = dma.hbm_to_vmem [thread:$0]  (!%p4873_p5), %s852_s26, 512, %s854_s2, [#allocation15], %s5700_s29, %s5700_s29, %s5701_s23  }
  0x4b   : > { %p56_p6 = scmp.ge.s32.totalorder %s55_s10, 2  ;;  %p178_p7 = scmp.ne.s32.totalorder %s4645_s8, %s4641_s4 }
  0x4c   : > { %s880_s17 = sshll.u32 %s5750_s12, 4  ;;  %p179_p8 = scmp.eq.s32.totalorder %s4657_s5, 0  ;;  %s881_s17 = int_to_ptr.hbm [resolvable:$true] %s880_s17 }
  0x4d   : > { %3930 = dma.hbm_to_vmem [thread:$0]  (!%p4873_p5), %s881_s17, 16, %s883_s25, [#allocation18]  }
  0x4e   : > { %p184_p9 = scmp.ne.s32.totalorder %s4641_s4, %s4637_s7  ;;  %s5790_s10 = smov (%p56_p6, %s55_s10), 0 }
  0x4f   : > { %5751 = sst [smem:[#allocation38_spill]] %s5790_s10  ;;  %p4945_p10 = por %p179_p8, %p178_p7 }
  0x50   : > { %p4951_p11 = por %p185_p1, %p184_p9  ;;  %s166_s27 = ssub.s32 %s4653_s9, %s5790_s10 }
  0x51   : > { %p3951_p12 = scmp.lt.s32.totalorder %s4657_s5, 2  ;;  %p169_p13 = scmp.eq.s32.totalorder %s166_s27, 0 }
  0x52   : > { %s914_s18 = sand.u32 1, %s4657_s5   ;;  %s916_s7 = sand.u32 1, %s4645_s8  }
  0x53   : > { %s4961_s1 = scalar_select %p169_p13, %s4645_s8, %s171_s16  }
  0x54   : > { %s3695_s21 = sshll.u32 %s916_s7, 2  ;;  %s3696_s26 = sshll.u32 %s4653_s9, 2 }
  0x55   : > { %5754 = sst [smem:[#allocation39_spill]] %s4961_s1  ;;  %s918_s11 = scalar_lea.vmem [#allocation9], %s3695_s21 }
  0x56   : > { %s5755_s17 = sld [smem:[#allocation44_spill]]  ;;  %s927_s25 = sshll.u32 %s918_s11, 4  ;;  %s928_s25 = int_to_ptr.vmem [resolvable:$true] %s927_s25 }
  0x57   : > { %p3935_p0 = pnand %p3951_p12, %p4945_p10  ;;  %s3697_s29 = sshll.u32 %s916_s7, 6 }
  0x58   : > { %s3803_s27 = sshll.u32 %s4653_s9, 6  ;;  %s915_s23 = scalar_lea.sflag [#allocation5], %s914_s18 }
  0x59   : > { %s989_s16 = scalar_lea.vmem [#allocation20], %s3697_s29  ;;  %s5756_s19 = sld [smem:[#allocation59_spill]] }
  0x5a   : > { %s997_s12 = sshll.u32 %s989_s16, 4  ;;  %s986_s21 = scalar_lea.sflag [#allocation21], %s914_s18  ;;  %s998_s12 = int_to_ptr.vmem [resolvable:$true] %s997_s12 }
  0x5b   : > { %s5757_s0 = smov 8   ;;  %s5758_s22 = smov 128  }
  0x5c   : > { %s923_s20 = scalar_lea.hbm %s5755_s17, %s3696_s26 }
  0x5d   : > { %s925_s2 = sshll.u32 %s923_s20, 4  ;;  %1029 = sbr.rel (%p4865_p3) target bundleno = 3951 (0xf6f), region = 128  ;;  %s926_s2 = int_to_ptr.hbm [resolvable:$true] %s925_s2 }
  0x5e   : > { %3937 = dma.hbm_to_vmem [thread:$0]  (!%p3935_p0), %s926_s2, 64, %s928_s25, %s915_s23  }
  0x5f   : > { %s994_s1 = scalar_lea.hbm %s5756_s19, %s3803_s27 }
  0x60   : > { %s995_s26 = sshll.u32 %s994_s1, 4  ;;  %s996_s26 = int_to_ptr.hbm [resolvable:$true] %s995_s26 }
  0x61   : > { %3940 = dma.hbm_to_vmem [thread:$0]  (!%p3935_p0), %s996_s26, 1024, %s998_s12, %s986_s21, %s5758_s22, %s5758_s22, %s5757_s0  }
  0x62   : > { %4596 = dma.done.wait (%p185_p1), [#allocation5], 512  }
  0x63   : > { %4598 = vsyncadd (%p185_p1), [#allocation5], 4294966784 }
  0x64   : > { %4600 = dma.done.wait (%p185_p1), [#allocation8], 512  }
  0x65   : > { %4602 = vsyncadd (%p185_p1), [#allocation8], 4294966784  ;;  %s1041_s23 = sand.u32 1, %s4857_s28   ;;  %s1043_s12 = sand.u32 1, %s4641_s4  }
  0x66   : > { %s4990_s24 = sshll.u32 %s1043_s12, 2  ;;  %s1042_s6 = scalar_lea.sflag [#allocation5], %s1041_s23 }
  0x67   : > { %4604 = dma.done.wait (%p4951_p11), %s1042_s6, 64  }
  0x68   : > { %4606 = vsyncadd (%p4951_p11), %s1042_s6, 4294967232 }
  0x69   : > { %4608 = dma.done.wait (%p185_p1), [#allocation8], 64  }
  0x6a   : > { %4610 = vsyncadd (%p185_p1), [#allocation8], 4294967232 }
  0x6b   : > { %4612 = dma.done.wait (%p185_p1), [#allocation12], 32  }
  0x6c   : > { %4614 = vsyncadd (%p185_p1), [#allocation12], 4294967264 }
  0x6d   : > { %4616 = dma.done.wait (%p185_p1), [#allocation15], 528  }
  0x6e   : > { %4618 = vsyncadd (%p185_p1), [#allocation15], 4294966768 }
  0x6f   : > { %4620 = dma.done.wait (%p185_p1), [#allocation18], 528  }
  0x70   : > { %4622 = vsyncadd (%p185_p1), [#allocation18], 4294966768  ;;  %s3711_s10 = sshll.u32 %s1043_s12, 6  ;;  %s1087_s15 = scalar_lea.sflag [#allocation21], %s1041_s23 }
  0x71   : > { %s5013_s18 = scalar_lea.vmem [#allocation20], %s3711_s10 }
  0x72   : > { %4624 = dma.done.wait (%p4951_p11), %s1087_s15, 1024  }
  0x73   : > { %4626 = vsyncadd (%p4951_p11), %s1087_s15, 4294966272 }
  0x74   : > { %4628 = dma.done.wait (%p185_p1), [#allocation21], 16  }
  0x75   : > { %4630 = vsyncadd (%p185_p1), [#allocation21], 4294967280  ;;  %p1232_p2 = scmp.lt.s32.totalorder %s4649_s30, 1  ;;  %s5759_s2 = sld [smem:[#allocation45_spill]] }
  0x76   : > { %s5760_s13 = sld [smem:[#allocation53_spill]]  ;;  %p3721_p1 = scmp.ne.s32.totalorder %s4649_s30, 0 }
  0x77   : > { %s5025_s7 = scalar_select %p1232_p2, %s4649_s30, 1 }
  0x78   : > { %s5761_s14 = sld [smem:[#allocation54_spill]] }
  0x79   : > { %s3713_s3 = sshll.u32 %s5025_s7, 2  ;;  %s3804_s1 = sshll.u32 %s5025_s7, 7 }
  0x7a   : > { %s3716_s26 = sshll.u32 %s5025_s7, 1  ;;  %s3805_s21 = sshll.u32 %s5025_s7, 6 }
  0x7b   : > { %s5032_s11 = scalar_lea.vmem %s5759_s2, %s3713_s3  ;;  %s5762_s10 = sld [smem:[#allocation55_spill]] }
  0x7c   : > { %s5037_s16 = scalar_lea.vmem %s5760_s13, %s3804_s1  ;;  %s5763_s20 = sld [smem:[#allocation56_spill]] }
  0x7d   : > { %s5764_s27 = sld [smem:[#allocation57_spill]] }
  0x7e   : > { %s5044_s23 = scalar_lea.vmem %s5761_s14, %s3716_s26  ;;  %s5765_s8 = sld [smem:[#allocation58_spill]] }
  0x7f   : > { %s5766_s22 = sld [smem:[#allocation60_spill]] }
  0x80   : > { %s5768_s3 = sld [smem:[#allocation62_spill]] }
  0x81   : > { %s5049_s15 = scalar_lea.vmem %s5762_s10, %s3805_s21  ;;  %s5767_s21 = sld [smem:[#allocation61_spill]] }
  0x82   : > { %s1255_s2 = scalar_lea.vmem %s5763_s20, %s5025_s7  ;;  %s5769_s19 = sld [smem:[#allocation40_spill]] (!%p3721_p1) }
  0x83   : > { %s1258_s13 = scalar_lea.vmem %s5764_s27, %s5025_s7  ;;  %1277 = sbr.rel (%p3721_p1) target bundleno = 450 (0x1c2), region = 180 }
  0x84   : > { %s1261_s4 = scalar_lea.vmem %s5765_s8, %s5025_s7  ;;  %s5770_s27 = sld [smem:[#allocation41_spill]] (!%p3721_p1) }
  0x85   : > { %s1264_s14 = scalar_lea.vmem %s5766_s22, %s5025_s7 }
  0x86   : > { %s1272_s20 = scalar_lea.vmem %s5768_s3, %s5025_s7 }
  0x87   : > { %s5070_s6 = scalar_lea.vmem %s5767_s21, %s3804_s1 }
  0x88   : > { %v1280_v0 = vld [vmem:[%s5769_s19 + $0x10] sm:$0xff]  ;;  %v4671_v1 = vmov 2   ;;  %v4672_v2 = vmov 0   ;;  %v1278_v3 = vld [vmem:[%s5769_s19] sm:$0xff]  ;;  %v1281_v5 = vld [vmem:[%s5769_s19 + $0x18] sm:$0xff]  ;;  %v4673_v6 = vmov 3  }
  0x89   : > { %4040 = vset.pattern.permute.xlu1 %v4671_v1  ;;  %4039 = vset.pattern.permute.xlu0 %v4672_v2  ;;  %v4674_v7 = vmov 1   ;;  %v1279_v9 = vld [vmem:[%s5769_s19 + $0x8] sm:$0xff]  ;;  %v1452_v15 = vld [vmem:[#allocation17 + $0x8] sm:$0xff]  ;;  %v1451_v16 = vld [vmem:[#allocation17] sm:$0xff]  ;;  %vm1455_vm0 = vcmask 261120   ;;  %vm1546_vm1 = vcmask 523264  }
  0x8a   : > { %1362 = vperm.xlu1 %4040, %v1280_v0   ;;  %1311 = vperm.xlu0 %4039, %v1280_v0   ;;  %v1284_v4 = vld [vmem:[%s5770_s27 + $0x10] sm:$0xff]  ;;  %v1282_v8 = vld [vmem:[%s5770_s27] sm:$0xff]  ;;  %v1285_v10 = vld [vmem:[%s5770_s27 + $0x18] sm:$0xff] }
  0x8b   : > { %4042 = vset.pattern.permute.xlu2 %v4672_v2  ;;  %v1283_v11 = vld [vmem:[%s5770_s27 + $0x8] sm:$0xff]  ;;  %v1448_v20 = vld [vmem:[#allocation16 + $0x8] sm:$0xff]  ;;  %v1447_v21 = vld [vmem:[#allocation16] sm:$0xff] }
  0x8c   : > { %1301 = vperm.xlu2 %4042, %v1278_v3   ;;  %v1454_v12 = vld [vmem:[#allocation17 + $0x18] sm:$0xff]  ;;  %v1453_v14 = vld [vmem:[#allocation17 + $0x10] sm:$0xff]  ;;  %v1442_v51 = vld [vmem:[#allocation7 + $0x18] sm:$0xff] }
  0x8d   : > { %3807 = vmatpush.msra.mxu2 %v1454_v12  ;;  %1480 = vmatpush.msra.mxu0 %v1454_v12  ;;  %v1450_v18 = vld [vmem:[#allocation16 + $0x18] sm:$0xff]  ;;  %v1449_v19 = vld [vmem:[#allocation16 + $0x10] sm:$0xff]  ;;  %v1291_v55 = vld [vmem:[#allocation4 + $0x18] sm:$0xff] }
  0x8e   : > { %3811 = vmatpush.msra.mxu3 %v1450_v18  ;;  %1521 = vmatpush.msra.mxu1 %v1450_v18  ;;  %v4057_v25 = vld [vmem:[#allocation13] ss:$0 sm:$0xff]  ;;  %v4058_v27 = vld [vmem:[#allocation14] ss:$0 sm:$0xff]  ;;  %v1439_v29 = vld [vmem:[#allocation7] sm:$0xff] }
  0x8f   : > { %3808 = vmatpush.msra.mxu2 %v1453_v14  ;;  %1481 = vmatpush.msra.mxu0 %v1453_v14  ;;  %v1286_v33 = vld [vmem:[#allocation10] sm:$0xf]  ;;  %v1290_v34 = vld [vmem:[#allocation4 + $0x10] sm:$0xff]  ;;  %v5103_v37 = vld [vmem:[#allocation11] ss:$0 sm:$0xff] }
  0x90   : > { %3812 = vmatpush.msra.mxu3 %v1449_v19  ;;  %1522 = vmatpush.msra.mxu1 %v1449_v19  ;;  %v5105_v38 = vperm.slane %v1286_v33, 0  ;;  %v1441_v39 = vld [vmem:[#allocation7 + $0x10] sm:$0xff]  ;;  %v1297_v41 = vadd.f32 %v5103_v37, %v1290_v34  ;;  %v1369_v47 = vperm.slane %v1286_v33, 2  ;;  %v1344_v49 = vperm.slane %v1286_v33, 1  ;;  %v1288_v59 = vld [vmem:[#allocation4] sm:$0xff]  ;;  %v1440_v19 = vld [vmem:[#allocation7 + $0x8] sm:$0xff] }
  0x91   : > { %3809 = vmatpush.msra.mxu2 %v1452_v15  ;;  %1482 = vmatpush.msra.mxu0 %v1452_v15  ;;  %v1394_v53 = vperm.slane %v1286_v33, 3  ;;  %v1298_v61 = vadd.f32 %v5103_v37, %v1291_v55 }
  0x92   : > { %4041 = vset.pattern.permute.xlu1 %v4672_v2  ;;  %4047 = vset.pattern.permute.xlu0 %v4671_v1 }
  0x93   : > { %1417 = vperm.xlu1 %4041, %v1284_v4   ;;  %1366 = vperm.xlu0 %4047, %v1281_v5  }
  0x94   : > { %4043 = vset.pattern.permute.xlu2 %v4673_v6  ;;  %3810 = vmatpush.msra.mxu2 %v1451_v16 }
  0x95   : > { %1387 = vperm.xlu2 %4043, %v1280_v0   ;;  %1483 = vmatpush.msra.mxu0 %v1451_v16 }
  0x96   : > { %3813 = vmatpush.msra.mxu3 %v1448_v20  ;;  %1523 = vmatpush.msra.mxu1 %v1448_v20 }
  0x98   : > { %3814 = vmatpush.msra.mxu3 %v1447_v21  ;;  %1524 = vmatpush.msra.mxu1 %v1447_v21 }
  0x9b   : > { %1316 = vperm.xlu1 %4041, %v1281_v5   ;;  %4048 = vset.pattern.permute.xlu0 %v4674_v7 }
  0x9c   : > { %1337 = vperm.xlu0 %4048, %v1280_v0  }
  0x9d   : > { %4044 = vset.pattern.permute.xlu2 %v4674_v7 }
  0x9e   : > { %1329 = vperm.xlu2 %4044, %v1278_v3  }
  0xa3   : > { %4045 = vset.pattern.permute.xlu1 %v4671_v1 }
  0xa4   : > { %1341 = vperm.xlu0 %4048, %v1281_v5   ;;  %1354 = vperm.xlu1 %4045, %v1278_v3  }
  0xa6   : > { %4046 = vset.pattern.permute.xlu2 %v4672_v2 }
  0xa7   : > { %1407 = vperm.xlu2 %4046, %v1282_v8  }
  0xac   : > { %4049 = vset.pattern.permute.xlu1 %v4673_v6  ;;  %1333 = vperm.xlu0 %4048, %v1279_v9  }
  0xad   : > { %1379 = vperm.xlu1 %4049, %v1278_v3  }
  0xaf   : > { %1422 = vperm.xlu2 %4046, %v1285_v10  }
  0xb4   : > { %4055 = vset.pattern.permute.xlu0 %v4672_v2 }
  0xb5   : > { %4050 = vset.pattern.permute.xlu1 %v4672_v2 }
  0xb6   : > { %1306 = vperm.xlu1 %4050, %v1279_v9  }
  0xb7   : > { %4051 = vset.pattern.permute.xlu2 %v4673_v6 }
  0xb8   : > { %1391 = vperm.xlu2 %4051, %v1281_v5  }
  0xbe   : > { %4052 = vset.pattern.permute.xlu1 %v4671_v1 }
  0xbf   : > { %1358 = vperm.xlu1 %4052, %v1279_v9  }
  0xc0   : > { %4053 = vset.pattern.permute.xlu2 %v4672_v2  ;;  %v1295_v2 = vadd.f32 %v5103_v37, %v1288_v59 }
  0xc1   : > { %1412 = vperm.xlu2 %4053, %v1283_v11  }
  0xc7   : > { %4054 = vset.pattern.permute.xlu1 %v4673_v6 }
  0xc8   : > { %1383 = vperm.xlu1 %4054, %v1279_v9  }
  0xe6   : > { %v5101_v13 = vpop.permute.xlu2 %1301 }
  0xe7   : > { %v1320_v3 = vmul.f32 %v5105_v38, %v5101_v13 }
  0xe9   : > { %v1324_v11 = vadd.f32 %v1320_v3, %v1295_v2 }
  0xef   : > { %v1388_v17 = vpop.permute.xlu2 %1387 }
  0xf0   : > { %v1397_v60 = vmul.f32 %v1394_v53, %v1388_v17 }
  0xf8   : > { %v1330_v22 = vpop.permute.xlu2 %1329 }
  0xf9   : > { %v1345_v12 = vmul.f32 %v1344_v49, %v1330_v22 }
  0xfb   : > { %v1349_v20 = vadd.f32 %v1345_v12, %v1324_v11 }
  0xfc   : > { %v1363_v23 = vpop.permute.xlu1 %1362  ;;  %v1312_v24 = vpop.permute.xlu0 %1311 }
  0xfd   : > { %v1322_v42 = vmul.f32 %v5105_v38, %v1312_v24  ;;  %v1372_v57 = vmul.f32 %v1369_v47, %v1363_v23 }
  0xff   : > { %v1326_v48 = vadd.f32 %v1322_v42, %v1297_v41 }
 0x101   : > { %v1408_v26 = vpop.permute.xlu2 %1407 }
 0x102   : > { %v1428_v28 = vmul.f32 %v4057_v25, %v1408_v26 }
 0x104   : > { %v1435_v30 = vadd.f32 %v4058_v27, %v1428_v28 }
 0x105   : > { %v1418_v31 = vpop.permute.xlu1 %1417  ;;  %v1367_v32 = vpop.permute.xlu0 %1366 }
 0x106   : > { %v1430_v35 = vmul.f32 %v4057_v25, %v1418_v31  ;;  %v1443_v36 = vadd.f32 %v1439_v29, %v1435_v30  ;;  %v1373_v6 = vmul.f32 %v1369_v47, %v1367_v32  ;;  %v1289_v29 = vld [vmem:[#allocation4 + $0x8] sm:$0xff] }
 0x107   : > { %v1296_v30 = vadd.f32 %v5103_v37, %v1289_v29 }
 0x108   : > { %v1437_v40 = vadd.f32 %v4058_v27, %v1430_v35  ;;  %3722 = vmatmul.msk.f32.vlgmr.msra.gmra.mxu0 %vm1455_vm0, %v1443_v36 }
 0x109   : > { %v1423_v43 = vpop.permute.xlu2 %1422 }
 0x10a   : > { %v1445_v44 = vadd.f32 %v1441_v39, %v1437_v40  ;;  %v1431_v45 = vmul.f32 %v4057_v25, %v1423_v43  ;;  %v4059_v43 = vld [vmem:[#allocation19] ss:$0 sm:$0xff] }
 0x10c   : > { %3724 = vmatmul.msk.f32.vlgmr.msra.gmra.mxu2 %vm1455_vm0, %v1445_v44  ;;  %v1438_v46 = vadd.f32 %v4058_v27, %v1431_v45 }
 0x10d   : > { %v1317_v50 = vpop.permute.xlu1 %1316 }
 0x10e   : > { %v1338_v52 = vpop.permute.xlu0 %1337  ;;  %v1446_v56 = vadd.f32 %v1442_v51, %v1438_v46  ;;  %v1323_v62 = vmul.f32 %v5105_v38, %v1317_v50 }
 0x10f   : > { %v1347_v54 = vmul.f32 %v1344_v49, %v1338_v52 }
 0x110   : > { %v1327_v7 = vadd.f32 %v1323_v62, %v1298_v61 }
 0x111   : > { %v1351_v58 = vadd.f32 %v1347_v54, %v1326_v48 }
 0x112   : > { %v1392_v0 = vpop.permute.xlu2 %1391 }
 0x113   : > { %v1376_v63 = vadd.f32 %v1372_v57, %v1351_v58  ;;  %v1398_v10 = vmul.f32 %v1394_v53, %v1392_v0 }
 0x114   : > { %3725 = vmatmul.msk.f32.gmra.mxu2 %vm1455_vm0, %v1446_v56 }
 0x115   : > { %v1401_v1 = vadd.f32 %v1397_v60, %v1376_v63 }
 0x116   : > { %v1342_v4 = vpop.permute.xlu0 %1341  ;;  %v1355_v5 = vpop.permute.xlu1 %1354 }
 0x117   : > { %v1348_v8 = vmul.f32 %v1344_v49, %v1342_v4  ;;  %3728 = vmatmul.msk.f32.vlgmr.msra.gmra.mxu3 %vm1455_vm0, %v1401_v1  ;;  %v1370_v16 = vmul.f32 %v1369_v47, %v1355_v5 }
 0x119   : > { %v1352_v9 = vadd.f32 %v1348_v8, %v1327_v7  ;;  %v1374_v23 = vadd.f32 %v1370_v16, %v1349_v20 }
 0x11b   : > { %v1377_v14 = vadd.f32 %v1373_v6, %v1352_v9  ;;  %v1413_v15 = vpop.permute.xlu2 %1412 }
 0x11c   : > { %v1429_v17 = vmul.f32 %v4057_v25, %v1413_v15 }
 0x11d   : > { %v1402_v18 = vadd.f32 %v1398_v10, %v1377_v14 }
 0x11e   : > { %v1436_v21 = vadd.f32 %v4058_v27, %v1429_v17  ;;  %v1334_v32 = vpop.permute.xlu0 %1333 }
 0x11f   : > { %v1380_v13 = vpop.permute.xlu1 %1379  ;;  %3729 = vmatmul.msk.f32.gmra.mxu3 %vm1455_vm0, %v1402_v18  ;;  %v1346_v33 = vmul.f32 %v1344_v49, %v1334_v32 }
 0x120   : > { %v1395_v24 = vmul.f32 %v1394_v53, %v1380_v13  ;;  %v1444_v26 = vadd.f32 %v1440_v19, %v1436_v21 }
 0x122   : > { %v1399_v28 = vadd.f32 %v1395_v24, %v1374_v23  ;;  %3723 = vmatmul.msk.f32.gmra.mxu0 %vm1455_vm0, %v1444_v26 }
 0x124   : > { %3726 = vmatmul.msk.f32.vlgmr.msra.gmra.mxu1 %vm1455_vm0, %v1399_v28 }
 0x128   : > { %v1307_v22 = vpop.permute.xlu1 %1306 }
 0x129   : > { %v1321_v25 = vmul.f32 %v5105_v38, %v1307_v22 }
 0x12b   : > { %v1325_v27 = vadd.f32 %v1321_v25, %v1296_v30 }
 0x12d   : > { %v1350_v35 = vadd.f32 %v1346_v33, %v1325_v27 }
 0x131   : > { %v1359_v31 = vpop.permute.xlu1 %1358 }
 0x132   : > { %v1371_v34 = vmul.f32 %v1369_v47, %v1359_v31 }
 0x134   : > { %v1375_v39 = vadd.f32 %v1371_v34, %v1350_v35 }
 0x13a   : > { %v1384_v36 = vpop.permute.xlu1 %1383 }
 0x13b   : > { %v1396_v40 = vmul.f32 %v1394_v53, %v1384_v36 }
 0x13d   : > { %v1400_v41 = vadd.f32 %v1396_v40, %v1375_v39 }
 0x13f   : > { %3727 = vmatmul.msk.f32.gmra.mxu1 %vm1455_vm0, %v1400_v41 }
 0x185   : > { %v1485_v38 = vpop.f32.mrf.mxu0 }
 0x18f   : > { %v1491_v42 = vpop.f32.mrf.mxu2 }
 0x197   : > { %v1494_v46 = vpop.f32.mrf.mxu2 }
 0x19a   : > { %v1532_v44 = vpop.f32.mrf.mxu3 }
 0x19b   : > { %v1533_v45 = vadd.f32 %v1532_v44, %v1491_v42 }
 0x19d   : > { %v1544_v37 = vadd.f32 %v4059_v43, %v1533_v45 }
 0x19f   : > { %1549 = vst.msk [vmem:[#allocation2 + $0x10] sm:$0xff] %vm1546_vm1, %v1544_v37  ;;  %v1488_v53 = vpop.f32.mrf.mxu0 }
 0x1a1   : > { %v1526_v48 = vpop.f32.mrf.mxu1 }
 0x1a2   : > { %v1527_v49 = vadd.f32 %v1526_v48, %v1485_v38  ;;  %v1535_v47 = vpop.f32.mrf.mxu3 }
 0x1a3   : > { %v1536_v50 = vadd.f32 %v1535_v47, %v1494_v46 }
 0x1a4   : > { %v1542_v51 = vadd.f32 %v4059_v43, %v1527_v49 }
 0x1a5   : > { %v1545_v52 = vadd.f32 %v4059_v43, %v1536_v50 }
 0x1a6   : > { %1547 = vst.msk [vmem:[#allocation2] sm:$0xff] %vm1546_vm1, %v1542_v51 }
 0x1a7   : > { %1550 = vst.msk [vmem:[#allocation2 + $0x18] sm:$0xff] %vm1546_vm1, %v1545_v52 }
 0x1bc   : > { %v1529_v54 = vpop.f32.mrf.mxu1 }
 0x1bd   : > { %v1530_v55 = vadd.f32 %v1529_v54, %v1488_v53 }
 0x1bf   : > { %v1543_v56 = vadd.f32 %v4059_v43, %v1530_v55 }
 0x1c1   : > { %1548 = vst.msk [vmem:[#allocation2 + $0x8] sm:$0xff] %vm1546_vm1, %v1543_v56 }
 0x1c2 PF: > { %v1553_v57 = vld [vmem:[#allocation2 + $0x10] sm:$0xff]  ;;  %vm1555_vm2 = vcmask 523264   ;;  %v1551_v58 = vld [vmem:[#allocation2] sm:$0xff]  ;;  %v1554_v61 = vld [vmem:[#allocation2 + $0x18] sm:$0xff]  ;;  %v4675_v1 = vmov 64.0   ;;  %vm1791_vm0 = vcmask 130048  }
 0x1c3   : > { %v1562_v59 = vsel %vm1555_vm2, %v1553_v57, 0.0  ;;  %v1556_v60 = vsel %vm1555_vm2, %v1551_v58, 0.0  ;;  %v1565_v63 = vsel %vm1555_vm2, %v1554_v61, 0.0  ;;  %4090 = vrcp.f32 %v4675_v1  ;;  %v1710_v30 = vld [vmem:[%s5037_s16 + $0x70] sm:$0xff]  ;;  %v1711_v25 = vld [vmem:[%s5037_s16 + $0x78] sm:$0xff]  ;;  %v1708_v31 = vld [vmem:[%s5037_s16 + $0x60] sm:$0xff] }
 0x1c4   : > { %1563 = vadd.xlane.f32.xlu1 %v1562_v59  ;;  %1557 = vadd.xlane.f32.xlu0 %v1556_v60  ;;  %v1709_v32 = vld [vmem:[%s5037_s16 + $0x68] sm:$0xff]  ;;  %v1706_v27 = vld [vmem:[%s5037_s16 + $0x50] sm:$0xff]  ;;  %v1707_v33 = vld [vmem:[%s5037_s16 + $0x58] sm:$0xff]  ;;  %vm1901_vm1 = vcmask 64512   ;;  %s4679_s8 = smov 32   ;;  %s4680_s9 = smov 96  }
 0x1c5   : > { %1738 = vmatpush.msra.mxu0 %v1710_v30  ;;  %1767 = vmatpush.msra.mxu1 %v1711_v25  ;;  %v1704_v34 = vld [vmem:[%s5037_s16 + $0x40] sm:$0xff]  ;;  %v1705_v35 = vld [vmem:[%s5037_s16 + $0x48] sm:$0xff]  ;;  %v1702_v36 = vld [vmem:[%s5037_s16 + $0x30] sm:$0xff]  ;;  %s4681_s5 = smov 16   ;;  %s4682_s1 = smov 80  }
 0x1c6   : > { %v1703_v39 = vld [vmem:[%s5037_s16 + $0x38] sm:$0xff]  ;;  %v1700_v40 = vld [vmem:[%s5037_s16 + $0x20] sm:$0xff]  ;;  %v1701_v41 = vld [vmem:[%s5037_s16 + $0x28] sm:$0xff]  ;;  %p3794_p3 = scmp.ne.s32.totalorder %s4649_s30, 1 }
 0x1c7   : > { %1739 = vmatpush.msra.mxu0 %v1708_v31  ;;  %1768 = vmatpush.msra.mxu1 %v1709_v32  ;;  %v1698_v42 = vld [vmem:[%s5037_s16 + $0x10] sm:$0xff]  ;;  %v1699_v43 = vld [vmem:[%s5037_s16 + $0x18] sm:$0xff]  ;;  %v1696_v44 = vld [vmem:[%s5037_s16] sm:$0xff] }
 0x1c8   : > { %v1552_v62 = vld [vmem:[#allocation2 + $0x8] sm:$0xff] }
 0x1c9   : > { %v1559_v0 = vsel %vm1555_vm2, %v1552_v62, 0.0  ;;  %v4091_v2 = vpop.eup %4090  ;;  %1740 = vmatpush.msra.mxu0 %v1706_v27  ;;  %1769 = vmatpush.msra.mxu1 %v1707_v33  ;;  %v1697_v45 = vld [vmem:[%s5037_s16 + $0x8] sm:$0xff]  ;;  %s5771_s16 = scalar_lea.vmem [#allocation9], %s4990_s24  ;;  %s4676_s24 = smov 64  }
 0x1ca   : > { %v1569_v3 = vmul.f32 64.0, %v4091_v2  ;;  %vm1573_vm3 = vweird.f32 %v4091_v2 }
 0x1cb   : > { %1741 = vmatpush.msra.mxu0 %v1704_v34  ;;  %1770 = vmatpush.msra.mxu1 %v1705_v35 }
 0x1cc   : > { %1566 = vadd.xlane.f32.xlu1 %v1565_v63  ;;  %1560 = vadd.xlane.f32.xlu0 %v1559_v0  ;;  %v1570_v4 = vsub.f32 1.0, %v1569_v3 }
 0x1cd   : > { %1742 = vmatpush.msra.mxu0 %v1702_v36  ;;  %1771 = vmatpush.msra.mxu1 %v1703_v39 }
 0x1ce   : > { %v1571_v5 = vmul.f32 %v4091_v2, %v1570_v4 }
 0x1cf   : > { %1743 = vmatpush.msra.mxu0 %v1700_v40  ;;  %1772 = vmatpush.msra.mxu1 %v1701_v41 }
 0x1d0   : > { %v1572_v6 = vadd.f32 %v4091_v2, %v1571_v5 }
 0x1d1   : > { %1744 = vmatpush.msra.mxu0 %v1698_v42  ;;  %1773 = vmatpush.msra.mxu1 %v1699_v43 }
 0x1d2   : > { %v5132_v7 = vsel %vm1573_vm3, %v4091_v2, %v1572_v6  ;;  %vm2326_vm3 = vcmask 261248  }
 0x1d3   : > { %1745 = vmatpush.msra.mxu0 %v1696_v44  ;;  %1774 = vmatpush.msra.mxu1 %v1697_v45 }
 0x237   : > { %v1564_v8 = vpop.xlane.xlu1 %1563  ;;  %v1558_v9 = vpop.xlane.xlu0 %1557 }
 0x238   : > { %v1577_v10 = vmul.f32 %v5132_v7, %v1564_v8  ;;  %v1575_v11 = vmul.f32 %v5132_v7, %v1558_v9 }
 0x23a   : > { %v5136_v12 = vsub.f32 %v1553_v57, %v1577_v10  ;;  %v5138_v14 = vsub.f32 %v1551_v58, %v1575_v11  ;;  %v1652_v11 = vld [vmem:[%s5032_s11] sm:$0xf]  ;;  %s4677_s11 = smov 112  }
 0x23b   : > { %v1681_v30 = vrot.slane %v1652_v11, 1  ;;  %v1682_v45 = vrot.slane %v1652_v11, 2 }
 0x23c   : > { %v1585_v15 = vmul.f32 %v5136_v12, %v5136_v12  ;;  %v1583_v16 = vmul.f32 %v5138_v14, %v5138_v14 }
 0x23d   : > { %v1685_v36 = vperm.slane %v1681_v30, 0 }
 0x23e   : > { %v1593_v17 = vsel %vm1555_vm2, %v1585_v15, 0.0  ;;  %v1587_v18 = vsel %vm1555_vm2, %v1583_v16, 0.0 }
 0x23f   : > { %v1567_v19 = vpop.xlane.xlu1 %1566  ;;  %1594 = vadd.xlane.f32.xlu0 %v1593_v17  ;;  %1588 = vadd.xlane.f32.xlu2 %v1587_v18  ;;  %v1561_v20 = vpop.xlane.xlu0 %1560  ;;  %v1684_v18 = vperm.slane %v1652_v11, 0 }
 0x240   : > { %v1578_v21 = vmul.f32 %v5132_v7, %v1567_v19  ;;  %v1576_v13 = vmul.f32 %v5132_v7, %v1561_v20 }
 0x242   : > { %v5148_v23 = vsub.f32 %v1554_v61, %v1578_v21  ;;  %v5150_v24 = vsub.f32 %v1552_v62, %v1576_v13  ;;  %v1651_v62 = vld [vmem:[%s5771_s16] sm:$0xf] }
 0x243   : > { %v1660_v0 = vadd.f32 1.0, %v1651_v62  ;;  %v1654_v15 = vrot.slane %v1651_v62, 1 }
 0x244   : > { %v1586_v26 = vmul.f32 %v5148_v23, %v5148_v23  ;;  %v1584_v28 = vmul.f32 %v5150_v24, %v5150_v24 }
 0x245   : > { %v1668_v9 = vperm.slane %v1660_v0, 0 }
 0x246   : > { %v1596_v22 = vsel %vm1555_vm2, %v1586_v26, 0.0  ;;  %v1590_v29 = vsel %vm1555_vm2, %v1584_v28, 0.0  ;;  %v1661_v26 = vadd.f32 1.0, %v1654_v15 }
 0x247   : > { %1597 = vadd.xlane.f32.xlu1 %v1596_v22  ;;  %1591 = vadd.xlane.f32.xlu2 %v1590_v29  ;;  %v1655_v29 = vrot.slane %v1651_v62, 2 }
 0x248   : > { %v1669_v27 = vperm.slane %v1661_v26, 0 }
 0x249   : > { %v1662_v34 = vadd.f32 1.0, %v1655_v29 }
 0x24b   : > { %v1670_v42 = vperm.slane %v1662_v34, 0 }
 0x2b2   : > { %v1589_v37 = vpop.xlane.xlu2 %1588  ;;  %v1595_v38 = vpop.xlane.xlu0 %1594 }
 0x2b3   : > { %v1599_v46 = vmul.f32 %v1589_v37, %v5132_v7  ;;  %v1601_v48 = vmul.f32 %v1595_v38, %v5132_v7  ;;  %v1656_v37 = vrot.slane %v1651_v62, 3 }
 0x2b5   : > { %v1603_v49 = vadd.f32 1e-05, %v1599_v46  ;;  %v1605_v47 = vadd.f32 1e-05, %v1601_v48  ;;  %v1686_v46 = vperm.slane %v1682_v45, 0  ;;  %v1663_v48 = vadd.f32 1.0, %v1656_v37 }
 0x2b7   : > { %4092 = vrsqrt.f32 %v1603_v49  ;;  %vm1613_vm5 = vweird.f32 %v1603_v49  ;;  %vm1633_vm7 = vweird.f32 %v1605_v47 }
 0x2b8   : > { %4094 = vrsqrt.f32 %v1605_v47 }
 0x2ba   : > { %v1598_v50 = vpop.xlane.xlu1 %1597  ;;  %v1592_v51 = vpop.xlane.xlu2 %1591 }
 0x2bb   : > { %v1602_v52 = vmul.f32 %v1598_v50, %v5132_v7  ;;  %v1600_v53 = vmul.f32 %v1592_v51, %v5132_v7  ;;  %v1683_v51 = vrot.slane %v1652_v11, 3 }
 0x2bd   : > { %v4093_v54 = vpop.eup %4092  ;;  %v5178_v55 = vadd.f32 1e-05, %v1602_v52  ;;  %v1604_v56 = vadd.f32 1e-05, %v1600_v53  ;;  %v1687_v53 = vperm.slane %v1683_v51, 0 }
 0x2be   : > { %v4095_v57 = vpop.eup %4094  ;;  %v1608_v58 = vmul.f32 %v4093_v54, %v1603_v49  ;;  %vm1614_vm4 = vweird.f32 %v4093_v54 }
 0x2bf   : > { %v1628_v59 = vmul.f32 %v4095_v57, %v1605_v47  ;;  %4096 = vrsqrt.f32 %v5178_v55  ;;  %vm1615_vm6 = vmor %vm1613_vm5, %vm1614_vm4  ;;  %vm1634_vm8 = vweird.f32 %v4095_v57  ;;  %vm1623_vm11 = vweird.f32 %v1604_v56 }
 0x2c0   : > { %v1609_v60 = vmul.f32 %v4093_v54, %v1608_v58  ;;  %4098 = vrsqrt.f32 %v1604_v56  ;;  %vm5188_vm10 = vmor %vm1633_vm7, %vm1634_vm8  ;;  %vm1643_vm13 = vweird.f32 %v5178_v55  ;;  %vm2611_vm4 = vcmask 392448  }
 0x2c1   : > { %v1629_v63 = vmul.f32 %v4095_v57, %v1628_v59  ;;  %vm2896_vm5 = vcmask 523648  }
 0x2c2   : > { %v1610_v61 = vmul.f32 0.5, %v1609_v60 }
 0x2c3   : > { %v1630_v5 = vmul.f32 0.5, %v1629_v63 }
 0x2c4   : > { %v1611_v1 = vsub.f32 1.5, %v1610_v61 }
 0x2c5   : > { %v4097_v2 = vpop.eup %4096  ;;  %v1631_v19 = vsub.f32 1.5, %v1630_v5 }
 0x2c6   : > { %v4099_v3 = vpop.eup %4098  ;;  %v1612_v4 = vmul.f32 %v4093_v54, %v1611_v1  ;;  %v1638_v6 = vmul.f32 %v4097_v2, %v5178_v55  ;;  %vm1644_vm14 = vweird.f32 %v4097_v2  ;;  %v1712_v55 = vld [vmem:[%s5044_s23] sm:$0x3]  ;;  %s4678_s23 = smov 48  }
 0x2c7   : > { %v1618_v8 = vmul.f32 %v4099_v3, %v1604_v56  ;;  %vm1624_vm9 = vweird.f32 %v4099_v3  ;;  %v1632_v25 = vmul.f32 %v4095_v57, %v1631_v19  ;;  %vm1645_vm15 = vmor %vm1643_vm13, %vm1644_vm14  ;;  %v1715_v5 = vperm.slane %v1712_v55, 1 }
 0x2c8   : > { %v1616_v10 = vsel %vm1615_vm6, %v4093_v54, %v1612_v4  ;;  %v1639_v20 = vmul.f32 %v4097_v2, %v1638_v6  ;;  %vm1625_vm12 = vmor %vm1623_vm11, %vm1624_vm9 }
 0x2c9   : > { %v1619_v16 = vmul.f32 %v4099_v3, %v1618_v8  ;;  %v1647_v17 = vmul.f32 %v1616_v10, %v5138_v14  ;;  %v1636_v39 = vsel %vm5188_vm10, %v4095_v57, %v1632_v25 }
 0x2ca   : > { %v1640_v14 = vmul.f32 0.5, %v1639_v20  ;;  %v1649_v44 = vmul.f32 %v1636_v39, %v5136_v12  ;;  %v1671_v12 = vperm.slane %v1663_v48, 0 }
 0x2cb   : > { %v1620_v21 = vmul.f32 0.5, %v1619_v16  ;;  %v1676_v13 = vmul.f32 %v1668_v9, %v1647_v17 }
 0x2cc   : > { %v1641_v40 = vsub.f32 1.5, %v1640_v14 }
 0x2cd   : > { %v1621_v28 = vsub.f32 1.5, %v1620_v21  ;;  %v5186_v22 = vadd.f32 %v1684_v18, %v1676_v13 }
 0x2ce   : > { %v1642_v38 = vmul.f32 %v4097_v2, %v1641_v40 }
 0x2cf   : > { %v1622_v32 = vmul.f32 %v4099_v3, %v1621_v28  ;;  %3730 = vmatmul.msk.f32.vlgmr.msra.gmra.mxu0 %vm1555_vm2, %v5186_v22  ;;  %3734 = vmatmul.msk.f32.vlgmr.msra.gmra.mxu1 %vm1555_vm2, %v5186_v22 }
 0x2d0   : > { %v1646_v49 = vsel %vm1645_vm15, %v4097_v2, %v1642_v38 }
 0x2d1   : > { %v1626_v33 = vsel %vm1625_vm12, %v4099_v3, %v1622_v32  ;;  %v1650_v50 = vmul.f32 %v1646_v49, %v5148_v23  ;;  %v1714_v23 = vperm.slane %v1712_v55, 0 }
 0x2d2   : > { %v1648_v35 = vmul.f32 %v1626_v33, %v5150_v24  ;;  %v1678_v24 = vmul.f32 %v1670_v42, %v1649_v44 }
 0x2d3   : > { %v1679_v52 = vmul.f32 %v1671_v12, %v1650_v50 }
 0x2d4   : > { %v1677_v41 = vmul.f32 %v1669_v27, %v1648_v35  ;;  %v5207_v47 = vadd.f32 %v1686_v46, %v1678_v24 }
 0x2d5   : > { %v5214_v54 = vadd.f32 %v1687_v53, %v1679_v52 }
 0x2d6   : > { %v5200_v43 = vadd.f32 %v1685_v36, %v1677_v41 }
 0x2d8   : > { %3731 = vmatmul.msk.f32.gmra.mxu0 %vm1555_vm2, %v5200_v43  ;;  %3735 = vmatmul.msk.f32.gmra.mxu1 %vm1555_vm2, %v5200_v43 }
 0x2e0   : > { %3732 = vmatmul.msk.f32.gmra.mxu0 %vm1555_vm2, %v5207_v47  ;;  %3736 = vmatmul.msk.f32.gmra.mxu1 %vm1555_vm2, %v5207_v47 }
 0x2e8   : > { %3733 = vmatmul.msk.f32.gmra.mxu0 %vm1555_vm2, %v5214_v54  ;;  %3737 = vmatmul.msk.f32.gmra.mxu1 %vm1555_vm2, %v5214_v54 }
 0x34c   : > { %v1747_v56 = vpop.f32.mrf.mxu0  ;;  %v1776_v1 = vpop.f32.mrf.mxu1 }
 0x34d   : > { %v5221_v57 = vadd.f32 %v1747_v56, %v1714_v23  ;;  %v5247_v9 = vadd.f32 %v1776_v1, %v1715_v5 }
 0x34f   : > { %1789 = vrot.lane.b32.xlu2 %v5221_v57, %s4676_s24 }
 0x355   : > { %v1750_v58 = vpop.f32.mrf.mxu0  ;;  %v1779_v2 = vpop.f32.mrf.mxu1 }
 0x356   : > { %v5224_v59 = vadd.f32 %v1750_v58, %v1714_v23  ;;  %v5242_v8 = vadd.f32 %v1779_v2, %v1715_v5 }
 0x358   : > { %1817 = vrot.lane.b32.xlu0 %v5224_v59, %s4676_s24 }
 0x35d   : > { %v1753_v60 = vpop.f32.mrf.mxu0  ;;  %v1782_v3 = vpop.f32.mrf.mxu1 }
 0x35e   : > { %v5227_v61 = vadd.f32 %v1753_v60, %v1714_v23  ;;  %v5251_v15 = vadd.f32 %v1782_v3, %v1715_v5 }
 0x360   : > { %2042 = vrot.lane.b32.xlu0 %v5221_v57, %s4677_s11  ;;  %1844 = vrot.lane.b32.xlu1 %v5227_v61, %s4676_s24  ;;  %v4060_v53 = vpack.i.bf16 %v5247_v9, %v5251_v15 }
 0x365   : > { %v1756_v62 = vpop.f32.mrf.mxu0  ;;  %v1785_v10 = vpop.f32.mrf.mxu1 }
 0x366   : > { %v5232_v63 = vadd.f32 %v1756_v62, %v1714_v23  ;;  %v5253_v16 = vadd.f32 %v1785_v10, %v1715_v5 }
 0x368   : > { %1871 = vrot.lane.b32.xlu2 %v5232_v63, %s4676_s24  ;;  %2044 = vrot.lane.b32.xlu1 %v5221_v57, %s4678_s23  ;;  %v4065_v52 = vpack.i.bf16 %v5242_v8, %v5253_v16 }
 0x3a9   : > { %v1790_v0 = vpop.permute.xlu2 %1789 }
 0x3aa   : > { %3738 = vmatpush.xpose.msk.msra.mxu2 %vm1791_vm0, %v1790_v0 }
 0x3ad   : > { %3739 = vmatmul.msk.f32.vlgmr.msra.gmra.mxu2 %vm1791_vm0, %v5221_v57 }
 0x3c2   : > { %v1872_v6 = vpop.permute.xlu2 %1871 }
 0x3ca   : > { %v1818_v4 = vpop.permute.xlu0 %1817 }
 0x3cb   : > { %3740 = vmatpush.xpose.msk.msra.mxu3 %vm1791_vm0, %v1818_v4 }
 0x3ce   : > { %3741 = vmatmul.msk.f32.vlgmr.msra.gmra.mxu3 %vm1791_vm0, %v5224_v59 }
 0x3cf   : > { %3744 = vmatpush.xpose.msk.msrb.mxu3 %vm1791_vm0, %v1872_v6 }
 0x3d2   : > { %v1845_v11 = vpop.permute.xlu1 %1844  ;;  %v5271_v14 = vpop.permute.xlu0 %2042 }
 0x3d3   : > { %1987 = vmatpush.msra.mxu3 %v5242_v8  ;;  %3742 = vmatpush.xpose.msk.msrb.mxu2 %vm1791_vm0, %v1845_v11 }
 0x3d6   : > { %3743 = vmatmul.msk.f32.vlgmr.msrb.gmra.mxu2 %vm1791_vm0, %v5227_v61  ;;  %3745 = vmatmul.msk.f32.vlgmr.msrb.gmra.mxu3 %vm1791_vm0, %v5232_v63 }
 0x3d7   : > { %1964 = vmatpush.msra.mxu2 %v5247_v9  ;;  %2033 = vmatpush.msrb.mxu3 %v5253_v16 }
 0x3d9   : > { %2010 = vmatpush.msrb.mxu2 %v5251_v15 }
 0x3da   : > { %v2045_v36 = vpop.permute.xlu1 %2044 }
 0x430   : > { %v1813_v17 = vpop.f32.mrf.mxu2 }
 0x431   : > { %v1897_v18 = vmul.f32 0.25, %v1813_v17 }
 0x433   : > { %v1902_v19 = vsel %vm1901_vm1, %v1897_v18, -inf }
 0x434   : > { %1903 = vmax.xlane.f32.xlu0 %v1902_v19 }
 0x451   : > { %v1840_v20 = vpop.f32.mrf.mxu3 }
 0x452   : > { %v1898_v21 = vmul.f32 0.25, %v1840_v20 }
 0x454   : > { %v1905_v13 = vsel %vm1901_vm1, %v1898_v21, -inf }
 0x455   : > { %1906 = vmax.xlane.f32.xlu2 %v1905_v13 }
 0x459   : > { %v1867_v26 = vpop.f32.mrf.mxu2  ;;  %v1894_v28 = vpop.f32.mrf.mxu3 }
 0x45a   : > { %v1899_v29 = vmul.f32 0.25, %v1867_v26  ;;  %v1900_v30 = vmul.f32 0.25, %v1894_v28 }
 0x45c   : > { %v1908_v25 = vsel %vm1901_vm1, %v1899_v29, -inf  ;;  %v1911_v31 = vsel %vm1901_vm1, %v1900_v30, -inf }
 0x45d   : > { %1909 = vmax.xlane.f32.xlu1 %v1908_v25  ;;  %1912 = vmax.xlane.f32.xlu0 %v1911_v31 }
 0x46d   : > { %2072 = vrot.lane.b32.xlu2 %v5224_v59, %s4678_s23 }
 0x471   : > { %2100 = vrot.lane.b32.xlu0 %v5227_v61, %s4678_s23 }
 0x476   : > { %2070 = vrot.lane.b32.xlu1 %v5224_v59, %s4677_s11 }
 0x4a7   : > { %v1904_v32 = vpop.xlane.xlu0 %1903 }
 0x4a8   : > { %v1914_v27 = vsub.f32 %v1897_v18, %v1904_v32 }
 0x4aa   : > { %v1918_v33 = vmul.f32 1.442695, %v1914_v27 }
 0x4ac   : > { %4100 = vpow2.f32 %v1918_v33 }
 0x4b2   : > { %v4101_v34 = vpop.eup %4100 }
 0x4b3   : > { %v1926_v35 = vsel %vm1901_vm1, %v4101_v34, 0.0 }
 0x4b4   : > { %1927 = vadd.xlane.f32.xlu2 %v1926_v35 }
 0x4c8   : > { %v1907_v39 = vpop.xlane.xlu2 %1906 }
 0x4c9   : > { %v1915_v40 = vsub.f32 %v1898_v21, %v1907_v39 }
 0x4cb   : > { %v1920_v41 = vmul.f32 1.442695, %v1915_v40 }
 0x4cd   : > { %4102 = vpow2.f32 %v1920_v41 }
 0x4d0   : > { %v1910_v42 = vpop.xlane.xlu1 %1909  ;;  %v1913_v45 = vpop.xlane.xlu0 %1912 }
 0x4d1   : > { %v1916_v44 = vsub.f32 %v1899_v29, %v1910_v42  ;;  %v1917_v37 = vsub.f32 %v1900_v30, %v1913_v45  ;;  %v2073_v55 = vpop.permute.xlu2 %2072 }
 0x4d3   : > { %v4103_v38 = vpop.eup %4102  ;;  %v1922_v24 = vmul.f32 1.442695, %v1916_v44  ;;  %v1924_v46 = vmul.f32 1.442695, %v1917_v37 }
 0x4d4   : > { %v1929_v48 = vsel %vm1901_vm1, %v4103_v38, 0.0 }
 0x4d5   : > { %4104 = vpow2.f32 %v1922_v24  ;;  %1930 = vadd.xlane.f32.xlu1 %v1929_v48 }
 0x4d6   : > { %4106 = vpow2.f32 %v1924_v46 }
 0x4db   : > { %v4105_v49 = vpop.eup %4104 }
 0x4dc   : > { %v4107_v50 = vpop.eup %4106  ;;  %v1932_v12 = vsel %vm1901_vm1, %v4105_v49, 0.0 }
 0x4dd   : > { %1933 = vadd.xlane.f32.xlu0 %v1932_v12  ;;  %v1935_v51 = vsel %vm1901_vm1, %v4107_v50, 0.0 }
 0x4de   : > { %1936 = vadd.xlane.f32.xlu2 %v1935_v51 }
 0x4e3   : > { %v2101_v62 = vpop.permute.xlu0 %2100 }
 0x4e8   : > { %v2071_v60 = vpop.permute.xlu1 %2070 }
 0x4ee   : > { %2126 = vrot.lane.b32.xlu1 %v5232_v63, %s4677_s11 }
 0x4f1   : > { %2128 = vrot.lane.b32.xlu0 %v5232_v63, %s4678_s23 }
 0x4f6   : > { %2098 = vrot.lane.b32.xlu2 %v5227_v61, %s4677_s11  ;;  %4066 = vrot.lane.b32.xlu1 %v4065_v52, %s4677_s11 }
 0x4f9   : > { %4061 = vrot.lane.b32.xlu0 %v4060_v53, %s4677_s11 }
 0x4fe   : > { %2389 = vrot.lane.b32.xlu2 %v5227_v61, %s4679_s8 }
 0x501   : > { %2333 = vrot.lane.b32.xlu0 %v5221_v57, %s4679_s8 }
 0x527   : > { %v1928_v23 = vpop.xlane.xlu2 %1927 }
 0x528   : > { %4108 = vrcp.f32 %v1928_v23 }
 0x52e   : > { %v4109_v56 = vpop.eup %4108 }
 0x52f   : > { %v1942_v58 = vmul.f32 %v4109_v56, %v4101_v34 }
 0x531   : > { %3746 = vmatmul.msk.f32.vlgmr.msra.gmra.mxu2 %vm1901_vm1, %v1942_v58 }
 0x532   : > { %3750 = vmatpush.xpose.msk.msra.mxu2 %vm1791_vm0, %v2045_v36 }
 0x548   : > { %v1931_v0 = vpop.xlane.xlu1 %1930 }
 0x549   : > { %4110 = vrcp.f32 %v1931_v0 }
 0x54f   : > { %v4111_v1 = vpop.eup %4110 }
 0x550   : > { %v1943_v2 = vmul.f32 %v4111_v1, %v4103_v38  ;;  %v1934_v3 = vpop.xlane.xlu0 %1933 }
 0x551   : > { %v1937_v4 = vpop.xlane.xlu2 %1936  ;;  %4112 = vrcp.f32 %v1934_v3 }
 0x552   : > { %4114 = vrcp.f32 %v1937_v4  ;;  %3747 = vmatmul.msk.f32.vlgmr.msra.gmra.mxu3 %vm1901_vm1, %v1943_v2 }
 0x553   : > { %3752 = vmatpush.xpose.msk.msra.mxu3 %vm1791_vm0, %v2073_v55 }
 0x557   : > { %v4113_v5 = vpop.eup %4112 }
 0x558   : > { %v4115_v6 = vpop.eup %4114  ;;  %v1944_v10 = vmul.f32 %v4113_v5, %v4105_v49 }
 0x559   : > { %v1945_v11 = vmul.f32 %v4115_v6, %v4107_v50  ;;  %v2099_v19 = vpop.permute.xlu2 %2098  ;;  %v4070_v6 = vpack.i.bf16 %v5251_v15, %v5247_v9 }
 0x55a   : > { %3748 = vmatmul.msk.f32.vlgmr.msrb.gmra.mxu2 %vm1901_vm1, %v1944_v10 }
 0x55b   : > { %3749 = vmatmul.msk.f32.vlgmr.msrb.gmra.mxu3 %vm1901_vm1, %v1945_v11  ;;  %3754 = vmatpush.xpose.msk.msrb.mxu2 %vm1791_vm0, %v2101_v62 }
 0x560   : > { %v2127_v17 = vpop.permute.xlu1 %2126 }
 0x561   : > { %v2390_v30 = vpop.permute.xlu2 %2389 }
 0x562   : > { %3751 = vmatmul.msk.f32.vlgmr.msra.gmra.mxu2 %vm1791_vm0, %v5271_v14 }
 0x563   : > { %3753 = vmatmul.msk.f32.vlgmr.msra.gmra.mxu3 %vm1791_vm0, %v2071_v60  ;;  %v2129_v18 = vpop.permute.xlu0 %2128 }
 0x564   : > { %3756 = vmatpush.xpose.msk.msrb.mxu3 %vm1791_vm0, %v2129_v18 }
 0x568   : > { %v4067_v20 = vpop.permute.xlu1 %4066 }
 0x569   : > { %v4068_v21 = vunpack.i.l.bf16 %v4067_v20  ;;  %v4069_v13 = vunpack.i.h.bf16 %v4067_v20 }
 0x56a   : > { %3755 = vmatmul.msk.f32.vlgmr.msrb.gmra.mxu2 %vm1791_vm0, %v2099_v19 }
 0x56b   : > { %3757 = vmatmul.msk.f32.vlgmr.msrb.gmra.mxu3 %vm1791_vm0, %v2127_v17  ;;  %2251 = vmatpush.msrb.mxu1 %v4069_v13  ;;  %v4062_v26 = vpop.permute.xlu0 %4061 }
 0x56c   : > { %2305 = vmatpush.msra.mxu3 %v4068_v21  ;;  %v4063_v28 = vunpack.i.l.bf16 %v4062_v26  ;;  %v4064_v29 = vunpack.i.h.bf16 %v4062_v26 }
 0x56e   : > { %2224 = vmatpush.msrb.mxu0 %v4064_v29  ;;  %2278 = vmatpush.msra.mxu2 %v4063_v28 }
 0x570   : > { %3766 = vmatpush.xpose.msk.msrb.mxu2 %vm1791_vm0, %v2390_v30 }
 0x573   : > { %v2334_v25 = vpop.permute.xlu0 %2333 }
 0x574   : > { %3762 = vmatpush.xpose.msk.msra.mxu0 %vm1791_vm0, %v2334_v25 }
 0x5b4   : > { %v1966_v31 = vpop.f32.mrf.mxu2 }
 0x5b5   : > { %2038 = vst.msk [vmem:[#allocation3] sm:$0xff] %vm1791_vm0, %v1966_v31 }
 0x5d5   : > { %v1989_v14 = vpop.f32.mrf.mxu3 }
 0x5d6   : > { %2039 = vst.msk [vmem:[#allocation3 + $0x8] sm:$0xff] %vm1791_vm0, %v1989_v14 }
 0x5dd   : > { %v2012_v32 = vpop.f32.mrf.mxu2 }
 0x5de   : > { %2040 = vst.msk [vmem:[#allocation3 + $0x10] sm:$0xff] %vm1791_vm0, %v2012_v32  ;;  %v2035_v27 = vpop.f32.mrf.mxu3 }
 0x5df   : > { %2041 = vst.msk [vmem:[#allocation3 + $0x18] sm:$0xff] %vm1791_vm0, %v2035_v27 }
 0x5e5   : > { %v2067_v33 = vpop.f32.mrf.mxu2 }
 0x5e6   : > { %v2154_v34 = vmul.f32 0.25, %v2067_v33  ;;  %v2095_v35 = vpop.f32.mrf.mxu3 }
 0x5e7   : > { %v2155_v37 = vmul.f32 0.25, %v2095_v35 }
 0x5e8   : > { %v2158_v36 = vsel %vm1901_vm1, %v2154_v34, -inf }
 0x5e9   : > { %2159 = vmax.xlane.f32.xlu0 %v2158_v36  ;;  %v2161_v38 = vsel %vm1901_vm1, %v2155_v37, -inf }
 0x5ed   : > { %v2123_v39 = vpop.f32.mrf.mxu2 }
 0x5ee   : > { %v2156_v40 = vmul.f32 0.25, %v2123_v39  ;;  %v2151_v41 = vpop.f32.mrf.mxu3 }
 0x5ef   : > { %v2157_v42 = vmul.f32 0.25, %v2151_v41 }
 0x5f0   : > { %v2164_v44 = vsel %vm1901_vm1, %v2156_v40, -inf }
 0x5f1   : > { %2165 = vmax.xlane.f32.xlu2 %v2164_v44  ;;  %v2167_v45 = vsel %vm1901_vm1, %v2157_v42, -inf }
 0x5f2   : > { %2168 = vmax.xlane.f32.xlu1 %v2167_v45 }
 0x5f9   : > { %2162 = vmax.xlane.f32.xlu2 %v2161_v38 }
 0x5fd   : > { %2387 = vrot.lane.b32.xlu0 %v5227_v61, %s4680_s9 }
 0x60b   : > { %2417 = vrot.lane.b32.xlu1 %v5232_v63, %s4679_s8 }
 0x611   : > { %2331 = vrot.lane.b32.xlu2 %v5221_v57, %s4680_s9 }
 0x65c   : > { %v2160_v24 = vpop.xlane.xlu0 %2159 }
 0x65d   : > { %v2170_v46 = vsub.f32 %v2154_v34, %v2160_v24 }
 0x65f   : > { %v2174_v48 = vmul.f32 1.442695, %v2170_v46 }
 0x661   : > { %4116 = vpow2.f32 %v2174_v48 }
 0x664   : > { %v2166_v49 = vpop.xlane.xlu2 %2165 }
 0x665   : > { %v2172_v50 = vsub.f32 %v2156_v40, %v2166_v49  ;;  %v2169_v12 = vpop.xlane.xlu1 %2168 }
 0x666   : > { %v2173_v51 = vsub.f32 %v2157_v42, %v2169_v12 }
 0x667   : > { %v4117_v52 = vpop.eup %4116  ;;  %v2178_v53 = vmul.f32 1.442695, %v2172_v50  ;;  %v4075_v50 = vpack.i.bf16 %v5253_v16, %v5242_v8 }
 0x668   : > { %v2180_v55 = vmul.f32 1.442695, %v2173_v51  ;;  %v2182_v23 = vsel %vm1901_vm1, %v4117_v52, 0.0 }
 0x669   : > { %4118 = vpow2.f32 %v2178_v53  ;;  %2183 = vadd.xlane.f32.xlu1 %v2182_v23 }
 0x66a   : > { %4120 = vpow2.f32 %v2180_v55 }
 0x66c   : > { %v2163_v56 = vpop.xlane.xlu2 %2162 }
 0x66d   : > { %v2171_v58 = vsub.f32 %v2155_v37, %v2163_v56 }
 0x66f   : > { %v4119_v60 = vpop.eup %4118  ;;  %v2176_v62 = vmul.f32 1.442695, %v2171_v58  ;;  %v2388_v10 = vpop.permute.xlu0 %2387 }
 0x670   : > { %v4121_v0 = vpop.eup %4120  ;;  %v2188_v1 = vsel %vm1901_vm1, %v4119_v60, 0.0 }
 0x671   : > { %4122 = vpow2.f32 %v2176_v62  ;;  %2189 = vadd.xlane.f32.xlu0 %v2188_v1  ;;  %v2191_v2 = vsel %vm1901_vm1, %v4121_v0, 0.0 }
 0x672   : > { %2192 = vadd.xlane.f32.xlu2 %v2191_v2 }
 0x674   : > { %v2332_v17 = vpop.permute.xlu2 %2331 }
 0x677   : > { %v4123_v3 = vpop.eup %4122 }
 0x678   : > { %v2185_v4 = vsel %vm1901_vm1, %v4123_v3, 0.0 }
 0x679   : > { %2186 = vadd.xlane.f32.xlu1 %v2185_v4 }
 0x67d   : > { %v2418_v5 = vpop.permute.xlu1 %2417 }
 0x67e   : > { %3768 = vmatpush.xpose.msk.msrb.mxu3 %vm1791_vm0, %v2418_v5 }
 0x685   : > { %2361 = vrot.lane.b32.xlu0 %v5224_v59, %s4679_s8 }
 0x68a   : > { %2415 = vrot.lane.b32.xlu2 %v5232_v63, %s4680_s9 }
 0x68d   : > { %2618 = vrot.lane.b32.xlu0 %v5221_v57, %s4681_s5 }
 0x692   : > { %4071 = vrot.lane.b32.xlu2 %v4070_v6, %s4680_s9  ;;  %2359 = vrot.lane.b32.xlu1 %v5224_v59, %s4680_s9 }
 0x69a   : > { %2616 = vrot.lane.b32.xlu2 %v5221_v57, %s4682_s1 }
 0x6dc   : > { %v2184_v11 = vpop.xlane.xlu1 %2183 }
 0x6dd   : > { %4124 = vrcp.f32 %v2184_v11 }
 0x6e3   : > { %v4125_v18 = vpop.eup %4124 }
 0x6e4   : > { %v2190_v19 = vpop.xlane.xlu0 %2189  ;;  %v2198_v20 = vmul.f32 %v4125_v18, %v4117_v52 }
 0x6e5   : > { %v2193_v21 = vpop.xlane.xlu2 %2192  ;;  %4126 = vrcp.f32 %v2190_v19 }
 0x6e6   : > { %4128 = vrcp.f32 %v2193_v21  ;;  %3758 = vmatmul.msk.f32.vlgmr.msrb.gmra.mxu0 %vm1901_vm1, %v2198_v20 }
 0x6eb   : > { %v4127_v13 = vpop.eup %4126 }
 0x6ec   : > { %v4129_v26 = vpop.eup %4128  ;;  %v2200_v28 = vmul.f32 %v4127_v13, %v4119_v60  ;;  %v2187_v29 = vpop.xlane.xlu1 %2186 }
 0x6ed   : > { %v2201_v30 = vmul.f32 %v4129_v26, %v4121_v0  ;;  %v2416_v25 = vpop.permute.xlu2 %2415  ;;  %4130 = vrcp.f32 %v2187_v29 }
 0x6ee   : > { %3760 = vmatmul.msk.f32.vlgmr.msra.gmra.mxu2 %vm1901_vm1, %v2200_v28  ;;  %3763 = vmatmul.msk.f32.vlgmr.msra.gmra.mxu0 %vm1791_vm0, %v2332_v17 }
 0x6ef   : > { %3761 = vmatmul.msk.f32.vlgmr.msra.gmra.mxu3 %vm1901_vm1, %v2201_v30 }
 0x6f3   : > { %v4131_v57 = vpop.eup %4130 }
 0x6f4   : > { %v2199_v31 = vmul.f32 %v4131_v57, %v4123_v3 }
 0x6f5   : > { %v4072_v14 = vpop.permute.xlu2 %4071 }
 0x6f6   : > { %v4074_v32 = vunpack.i.h.bf16 %v4072_v14  ;;  %v4073_v27 = vunpack.i.l.bf16 %v4072_v14  ;;  %3759 = vmatmul.msk.f32.vlgmr.msrb.gmra.mxu1 %vm1901_vm1, %v2199_v31  ;;  %3767 = vmatmul.msk.f32.vlgmr.msrb.gmra.mxu2 %vm1791_vm0, %v2388_v10 }
 0x6f7   : > { %3769 = vmatmul.msk.f32.vlgmr.msrb.gmra.mxu3 %vm1791_vm0, %v2416_v25  ;;  %v2362_v33 = vpop.permute.xlu0 %2361 }
 0x6f8   : > { %2512 = vmatpush.msrb.mxu0 %v4073_v27  ;;  %2564 = vmatpush.msra.mxu2 %v4074_v32 }
 0x6f9   : > { %3764 = vmatpush.xpose.msk.msra.mxu1 %vm1791_vm0, %v2362_v33 }
 0x6ff   : > { %v2619_v34 = vpop.permute.xlu0 %2618 }
 0x700   : > { %3774 = vmatpush.xpose.msk.msra.mxu0 %vm1791_vm0, %v2619_v34 }
 0x704   : > { %v2360_v35 = vpop.permute.xlu1 %2359 }
 0x705   : > { %3765 = vmatmul.msk.f32.vlgmr.msra.gmra.mxu1 %vm1791_vm0, %v2360_v35 }
 0x763   : > { %v5350_v36 = vpop.f32.mrf.mxu0 }
 0x76b   : > { %v2356_v39 = vpop.f32.mrf.mxu0 }
 0x76c   : > { %v2443_v40 = vmul.f32 0.25, %v2356_v39 }
 0x76e   : > { %v2447_v41 = vsel %vm1901_vm1, %v2443_v40, -inf }
 0x76f   : > { %2448 = vmax.xlane.f32.xlu0 %v2447_v41 }
 0x771   : > { %v5353_v42 = vpop.f32.mrf.mxu2 }
 0x772   : > { %v5363_v49 = vpop.f32.mrf.mxu3 }
 0x773   : > { %v5355_v45 = vpop.f32.mrf.mxu1 }
 0x779   : > { %v2412_v44 = vpop.f32.mrf.mxu2 }
 0x77a   : > { %v2445_v37 = vmul.f32 0.25, %v2412_v44  ;;  %v2440_v12 = vpop.f32.mrf.mxu3 }
 0x77b   : > { %v2446_v51 = vmul.f32 0.25, %v2440_v12 }
 0x77c   : > { %v2453_v38 = vsel %vm1901_vm1, %v2445_v37, -inf }
 0x77d   : > { %2454 = vmax.xlane.f32.xlu2 %v2453_v38  ;;  %v2456_v52 = vsel %vm1901_vm1, %v2446_v51, -inf }
 0x782   : > { %v2384_v24 = vpop.f32.mrf.mxu1 }
 0x783   : > { %v2444_v46 = vmul.f32 0.25, %v2384_v24  ;;  %2674 = vrot.lane.b32.xlu0 %v5227_v61, %s4681_s5 }
 0x785   : > { %v2450_v48 = vsel %vm1901_vm1, %v2444_v46, -inf }
 0x786   : > { %2451 = vmax.xlane.f32.xlu1 %v2450_v48 }
 0x795   : > { %2672 = vrot.lane.b32.xlu2 %v5227_v61, %s4682_s1  ;;  %v2617_v61 = vpop.permute.xlu2 %2616 }
 0x79f   : > { %4076 = vrot.lane.b32.xlu1 %v4075_v50, %s4680_s9 }
 0x7ad   : > { %2457 = vmax.xlane.f32.xlu0 %v2456_v52 }
 0x7c1   : > { %2646 = vrot.lane.b32.xlu0 %v5224_v59, %s4681_s5 }
 0x7e2   : > { %v2449_v53 = vpop.xlane.xlu0 %2448 }
 0x7e3   : > { %v2459_v55 = vsub.f32 %v2443_v40, %v2449_v53 }
 0x7e5   : > { %v2463_v23 = vmul.f32 1.442695, %v2459_v55 }
 0x7e7   : > { %4132 = vpow2.f32 %v2463_v23 }
 0x7ed   : > { %v4133_v56 = vpop.eup %4132 }
 0x7ee   : > { %v2471_v58 = vsel %vm1901_vm1, %v4133_v56, 0.0 }
 0x7ef   : > { %2472 = vadd.xlane.f32.xlu2 %v2471_v58 }
 0x7f0   : > { %v2455_v60 = vpop.xlane.xlu2 %2454 }
 0x7f1   : > { %v2461_v62 = vsub.f32 %v2445_v37, %v2455_v60 }
 0x7f3   : > { %v2467_v0 = vmul.f32 1.442695, %v2461_v62  ;;  %v4080_v62 = vpack.i.bf16 %v5242_v8, %v5247_v9 }
 0x7f5   : > { %4134 = vpow2.f32 %v2467_v0  ;;  %v2675_v1 = vpop.permute.xlu0 %2674 }
 0x7f6   : > { %3778 = vmatpush.xpose.msk.msrb.mxu2 %vm1791_vm0, %v2675_v1 }
 0x7f8   : > { %v2673_v30 = vpop.permute.xlu2 %2672 }
 0x7f9   : > { %v2452_v2 = vpop.xlane.xlu1 %2451 }
 0x7fa   : > { %v2460_v3 = vsub.f32 %v2444_v46, %v2452_v2 }
 0x7fb   : > { %v4135_v4 = vpop.eup %4134 }
 0x7fc   : > { %v2465_v5 = vmul.f32 1.442695, %v2460_v3  ;;  %v2477_v6 = vsel %vm1901_vm1, %v4135_v4, 0.0 }
 0x7fd   : > { %2478 = vadd.xlane.f32.xlu1 %v2477_v6 }
 0x7fe   : > { %4136 = vpow2.f32 %v2465_v5 }
 0x804   : > { %v4137_v10 = vpop.eup %4136 }
 0x805   : > { %v2474_v11 = vsel %vm1901_vm1, %v4137_v10, 0.0 }
 0x806   : > { %2475 = vadd.xlane.f32.xlu0 %v2474_v11 }
 0x807   : > { %2702 = vrot.lane.b32.xlu2 %v5232_v63, %s4681_s5 }
 0x811   : > { %v4077_v17 = vpop.permute.xlu1 %4076 }
 0x812   : > { %v4079_v18 = vunpack.i.h.bf16 %v4077_v17  ;;  %v4078_v19 = vunpack.i.l.bf16 %v4077_v17 }
 0x814   : > { %2538 = vmatpush.msrb.mxu1 %v4078_v19  ;;  %2590 = vmatpush.msra.mxu3 %v4079_v18 }
 0x81a   : > { %2700 = vrot.lane.b32.xlu0 %v5232_v63, %s4682_s1 }
 0x820   : > { %v2458_v20 = vpop.xlane.xlu0 %2457 }
 0x821   : > { %v2462_v21 = vsub.f32 %v2446_v51, %v2458_v20 }
 0x823   : > { %v2469_v13 = vmul.f32 1.442695, %v2462_v21 }
 0x825   : > { %4138 = vpow2.f32 %v2469_v13 }
 0x82b   : > { %v4139_v26 = vpop.eup %4138 }
 0x82c   : > { %v2480_v28 = vsel %vm1901_vm1, %v4139_v26, 0.0 }
 0x82d   : > { %2481 = vadd.xlane.f32.xlu1 %v2480_v28 }
 0x833   : > { %v2647_v29 = vpop.permute.xlu0 %2646 }
 0x834   : > { %3776 = vmatpush.xpose.msk.msra.mxu1 %vm1791_vm0, %v2647_v29 }
 0x846   : > { %2644 = vrot.lane.b32.xlu1 %v5224_v59, %s4682_s1 }
 0x862   : > { %v2473_v25 = vpop.xlane.xlu2 %2472 }
 0x863   : > { %4140 = vrcp.f32 %v2473_v25 }
 0x869   : > { %v4141_v57 = vpop.eup %4140 }
 0x86a   : > { %v2487_v31 = vmul.f32 %v4141_v57, %v4133_v56  ;;  %v2703_v63 = vpop.permute.xlu2 %2702 }
 0x86b   : > { %3780 = vmatpush.xpose.msk.msrb.mxu3 %vm1791_vm0, %v2703_v63 }
 0x86c   : > { %3770 = vmatmul.msk.f32.vlgmr.msrb.gmra.mxu0 %vm1901_vm1, %v2487_v31 }
 0x870   : > { %v2479_v14 = vpop.xlane.xlu1 %2478 }
 0x871   : > { %4142 = vrcp.f32 %v2479_v14 }
 0x874   : > { %3775 = vmatmul.msk.f32.vlgmr.msra.gmra.mxu0 %vm1791_vm0, %v2617_v61 }
 0x877   : > { %v4143_v32 = vpop.eup %4142 }
 0x878   : > { %v2489_v27 = vmul.f32 %v4143_v32, %v4135_v4 }
 0x879   : > { %v2476_v33 = vpop.xlane.xlu0 %2475 }
 0x87a   : > { %4144 = vrcp.f32 %v2476_v33  ;;  %3772 = vmatmul.msk.f32.vlgmr.msra.gmra.mxu2 %vm1901_vm1, %v2489_v27 }
 0x880   : > { %v4145_v59 = vpop.eup %4144 }
 0x881   : > { %v2488_v34 = vmul.f32 %v4145_v59, %v4137_v10 }
 0x882   : > { %3779 = vmatmul.msk.f32.vlgmr.msrb.gmra.mxu2 %vm1791_vm0, %v2673_v30 }
 0x883   : > { %3771 = vmatmul.msk.f32.vlgmr.msrb.gmra.mxu1 %vm1901_vm1, %v2488_v34 }
 0x88c   : > { %v2701_v41 = vpop.permute.xlu0 %2700 }
 0x8a0   : > { %v2482_v35 = vpop.xlane.xlu1 %2481 }
 0x8a1   : > { %4146 = vrcp.f32 %v2482_v35 }
 0x8a7   : > { %v4147_v39 = vpop.eup %4146 }
 0x8a8   : > { %v2490_v40 = vmul.f32 %v4147_v39, %v4139_v26 }
 0x8aa   : > { %3773 = vmatmul.msk.f32.vlgmr.msra.gmra.mxu3 %vm1901_vm1, %v2490_v40 }
 0x8b2   : > { %3781 = vmatmul.msk.f32.vlgmr.msrb.gmra.mxu3 %vm1791_vm0, %v2701_v41 }
 0x8b8   : > { %v2645_v44 = vpop.permute.xlu1 %2644 }
 0x8b9   : > { %3777 = vmatmul.msk.f32.vlgmr.msra.gmra.mxu1 %vm1791_vm0, %v2645_v44 }
 0x8e9   : > { %v5392_v37 = vpop.f32.mrf.mxu0 }
 0x8f1   : > { %v2641_v38 = vpop.f32.mrf.mxu0 }
 0x8f2   : > { %v2728_v24 = vmul.f32 0.25, %v2641_v38 }
 0x8f4   : > { %v2732_v46 = vsel %vm1901_vm1, %v2728_v24, -inf }
 0x8f5   : > { %2733 = vmax.xlane.f32.xlu1 %v2732_v46 }
 0x8fd   : > { %v5395_v48 = vpop.f32.mrf.mxu2 }
 0x900   : > { %v2540_v53 = vpop.f32.mrf.mxu1 }
 0x905   : > { %v2697_v50 = vpop.f32.mrf.mxu2 }
 0x906   : > { %v2730_v12 = vmul.f32 0.25, %v2697_v50  ;;  %v2911_v50 = vld [vmem:[%s5049_s15 + $0x30] sm:$0xff] }
 0x908   : > { %v2738_v51 = vsel %vm1901_vm1, %v2730_v12, -inf }
 0x909   : > { %2739 = vmax.xlane.f32.xlu0 %v2738_v51  ;;  %v2909_v51 = vld [vmem:[%s5049_s15 + $0x20] sm:$0xff] }
 0x92d   : > { %v5398_v52 = vpop.f32.mrf.mxu3 }
 0x935   : > { %v2725_v55 = vpop.f32.mrf.mxu3 }
 0x936   : > { %v2731_v23 = vmul.f32 0.25, %v2725_v55  ;;  %v2669_v61 = vpop.f32.mrf.mxu1  ;;  %v2906_v55 = vld [vmem:[%s5049_s15 + $0x8] sm:$0xff] }
 0x937   : > { %v2729_v56 = vmul.f32 0.25, %v2669_v61 }
 0x938   : > { %v2741_v58 = vsel %vm1901_vm1, %v2731_v23, -inf }
 0x939   : > { %2742 = vmax.xlane.f32.xlu1 %v2741_v58  ;;  %v2735_v60 = vsel %vm1901_vm1, %v2729_v56, -inf }
 0x93a   : > { %2736 = vmax.xlane.f32.xlu2 %v2735_v60 }
 0x952   : > { %4081 = vrot.lane.b32.xlu1 %v4080_v62, %s4682_s1 }
 0x95a   : > { %2314 = vrot.lane.b32.xlu1 %v5350_v36, %s4681_s5 }
 0x962   : > { %2316 = vrot.lane.b32.xlu1 %v5355_v45, %s4681_s5 }
 0x968   : > { %v2734_v0 = vpop.xlane.xlu1 %2733 }
 0x969   : > { %v2744_v1 = vsub.f32 %v2728_v24, %v2734_v0 }
 0x96a   : > { %2318 = vrot.lane.b32.xlu1 %v5353_v42, %s4681_s5 }
 0x96b   : > { %v2748_v2 = vmul.f32 1.442695, %v2744_v1 }
 0x96d   : > { %4148 = vpow2.f32 %v2748_v2 }
 0x972   : > { %2320 = vrot.lane.b32.xlu1 %v5363_v49, %s4681_s5 }
 0x973   : > { %v4149_v3 = vpop.eup %4148 }
 0x974   : > { %v2756_v8 = vsel %vm1901_vm1, %v4149_v3, 0.0 }
 0x975   : > { %2757 = vadd.xlane.f32.xlu2 %v2756_v8 }
 0x97c   : > { %v2740_v9 = vpop.xlane.xlu0 %2739 }
 0x97d   : > { %v2746_v4 = vsub.f32 %v2730_v12, %v2740_v9  ;;  %v2910_v12 = vld [vmem:[%s5049_s15 + $0x28] sm:$0xff] }
 0x97f   : > { %v2752_v36 = vmul.f32 1.442695, %v2746_v4  ;;  %v4085_v4 = vld [vmem:[%s1255_s2] ss:$0 sm:$0xff] }
 0x981   : > { %4150 = vpow2.f32 %v2752_v36 }
 0x987   : > { %v4151_v5 = vpop.eup %4150 }
 0x988   : > { %v2762_v45 = vsel %vm1901_vm1, %v4151_v5, 0.0 }
 0x989   : > { %2763 = vadd.xlane.f32.xlu2 %v2762_v45 }
 0x9a1   : > { %2828 = vrot.lane.b32.xlu2 %v5251_v15, %s4682_s1 }
 0x9ac   : > { %v2743_v42 = vpop.xlane.xlu1 %2742 }
 0x9ad   : > { %v2737_v6 = vpop.xlane.xlu2 %2736  ;;  %v2747_v11 = vsub.f32 %v2731_v23, %v2743_v42  ;;  %v2905_v23 = vld [vmem:[%s5049_s15] sm:$0xff] }
 0x9ae   : > { %v2745_v10 = vsub.f32 %v2729_v56, %v2737_v6 }
 0x9af   : > { %v2754_v17 = vmul.f32 1.442695, %v2747_v11 }
 0x9b0   : > { %v2750_v49 = vmul.f32 1.442695, %v2745_v10 }
 0x9b2   : > { %4152 = vpow2.f32 %v2750_v49 }
 0x9b3   : > { %4154 = vpow2.f32 %v2754_v17 }
 0x9b8   : > { %v4153_v18 = vpop.eup %4152 }
 0x9b9   : > { %v2759_v19 = vsel %vm1901_vm1, %v4153_v18, 0.0  ;;  %v4155_v20 = vpop.eup %4154 }
 0x9ba   : > { %2760 = vadd.xlane.f32.xlu0 %v2759_v19  ;;  %v2765_v21 = vsel %vm1901_vm1, %v4155_v20, 0.0 }
 0x9c2   : > { %2766 = vadd.xlane.f32.xlu0 %v2765_v21 }
 0x9c4   : > { %v4082_v13 = vpop.permute.xlu1 %4081 }
 0x9c5   : > { %v4084_v26 = vunpack.i.h.bf16 %v4082_v13  ;;  %v4083_v28 = vunpack.i.l.bf16 %v4082_v13 }
 0x9c7   : > { %2797 = vmatpush.msrb.mxu0 %v4083_v28  ;;  %2823 = vmatpush.msrb.mxu1 %v4084_v26 }
 0x9cc   : > { %v2315_v15 = vpop.permute.xlu1 %2314 }
 0x9cd   : > { %2327 = vst.msk [vmem:[#allocation3] sm:$0xff] %vm2326_vm3, %v2315_v15 }
 0x9d4   : > { %v2317_v29 = vpop.permute.xlu1 %2316 }
 0x9d5   : > { %2328 = vst.msk [vmem:[#allocation3 + $0x8] sm:$0xff] %vm2326_vm3, %v2317_v29 }
 0x9d6   : > { %2854 = vrot.lane.b32.xlu0 %v5253_v16, %s4682_s1 }
 0x9dc   : > { %v2319_v30 = vpop.permute.xlu1 %2318 }
 0x9dd   : > { %2329 = vst.msk [vmem:[#allocation3 + $0x10] sm:$0xff] %vm2326_vm3, %v2319_v30 }
 0x9de   : > { %2599 = vrot.lane.b32.xlu0 %v5392_v37, %s4679_s8 }
 0x9e4   : > { %v2321_v25 = vpop.permute.xlu1 %2320 }
 0x9e5   : > { %2330 = vst.msk [vmem:[#allocation3 + $0x18] sm:$0xff] %vm2326_vm3, %v2321_v25 }
 0x9e6   : > { %2601 = vrot.lane.b32.xlu0 %v2540_v53, %s4679_s8  ;;  %v2907_v53 = vld [vmem:[%s5049_s15 + $0x10] sm:$0xff] }
 0x9e8   : > { %v2758_v57 = vpop.xlane.xlu2 %2757 }
 0x9e9   : > { %4156 = vrcp.f32 %v2758_v57 }
 0x9ee   : > { %2603 = vrot.lane.b32.xlu0 %v5395_v48, %s4679_s8  ;;  %v2912_v48 = vld [vmem:[%s5049_s15 + $0x38] sm:$0xff] }
 0x9ef   : > { %v4157_v31 = vpop.eup %4156  ;;  %2937 = vmatpush.msra.mxu0 %v2912_v48  ;;  %v3066_v48 = vld [vmem:[%s5013_s18] sm:$0xff] }
 0x9f0   : > { %v2772_v63 = vmul.f32 %v4157_v31, %v4149_v3 }
 0x9f1   : > { %2938 = vmatpush.msra.mxu0 %v2911_v50 }
 0x9f2   : > { %3782 = vmatmul.msk.f32.vlgmr.msrb.gmra.mxu0 %vm1901_vm1, %v2772_v63 }
 0x9f3   : > { %2939 = vmatpush.msra.mxu0 %v2910_v12 }
 0x9f5   : > { %2940 = vmatpush.msra.mxu0 %v2909_v51 }
 0x9f6   : > { %2605 = vrot.lane.b32.xlu0 %v5398_v52, %s4679_s8  ;;  %v2908_v52 = vld [vmem:[%s5049_s15 + $0x18] sm:$0xff] }
 0x9f7   : > { %2941 = vmatpush.msra.mxu0 %v2908_v52 }
 0x9f9   : > { %2942 = vmatpush.msra.mxu0 %v2907_v53 }
 0x9fb   : > { %2943 = vmatpush.msra.mxu0 %v2906_v55 }
 0x9fc   : > { %v2764_v16 = vpop.xlane.xlu2 %2763 }
 0x9fd   : > { %4158 = vrcp.f32 %v2764_v16  ;;  %2944 = vmatpush.msra.mxu0 %v2905_v23 }
 0xa03   : > { %v4159_v14 = vpop.eup %4158 }
 0xa04   : > { %v2774_v32 = vmul.f32 %v4159_v14, %v4151_v5  ;;  %v2829_v27 = vpop.permute.xlu2 %2828 }
 0xa05   : > { %2849 = vmatpush.msra.mxu2 %v2829_v27 }
 0xa06   : > { %3784 = vmatmul.msk.f32.vlgmr.msra.gmra.mxu2 %vm1901_vm1, %v2774_v32 }
 0xa2d   : > { %v2761_v33 = vpop.xlane.xlu0 %2760 }
 0xa2e   : > { %4160 = vrcp.f32 %v2761_v33 }
 0xa34   : > { %v4161_v59 = vpop.eup %4160 }
 0xa35   : > { %v2773_v34 = vmul.f32 %v4161_v59, %v4153_v18  ;;  %v2767_v35 = vpop.xlane.xlu0 %2766 }
 0xa36   : > { %4162 = vrcp.f32 %v2767_v35 }
 0xa37   : > { %3783 = vmatmul.msk.f32.vlgmr.msrb.gmra.mxu1 %vm1901_vm1, %v2773_v34 }
 0xa3c   : > { %v4163_v39 = vpop.eup %4162 }
 0xa3d   : > { %v2775_v40 = vmul.f32 %v4163_v39, %v4155_v20 }
 0xa48   : > { %v2855_v41 = vpop.permute.xlu0 %2854 }
 0xa49   : > { %2875 = vmatpush.msra.mxu3 %v2855_v41  ;;  %v3072_v41 = vld [vmem:[%s5013_s18 + $0x30] sm:$0xff] }
 0xa4a   : > { %3785 = vmatmul.msk.f32.vlgmr.msra.gmra.mxu3 %vm1901_vm1, %v2775_v40  ;;  %v3073_v40 = vld [vmem:[%s5013_s18 + $0x38] sm:$0xff] }
 0xa4b   : > { %3098 = vmatpush.msra.mxu1 %v3073_v40 }
 0xa4d   : > { %3099 = vmatpush.msra.mxu1 %v3072_v41  ;;  %v3131_v41 = vld [vmem:[%s5070_s6 + $0x40] sm:$0xff] }
 0xa50   : > { %v2600_v44 = vpop.permute.xlu0 %2599 }
 0xa51   : > { %2612 = vst.msk [vmem:[#allocation3] sm:$0xff] %vm2611_vm4, %v2600_v44  ;;  %v3071_v44 = vld [vmem:[%s5013_s18 + $0x28] sm:$0xff] }
 0xa52   : > { %3100 = vmatpush.msra.mxu1 %v3071_v44 }
 0xa58   : > { %v2602_v37 = vpop.permute.xlu0 %2601 }
 0xa59   : > { %2613 = vst.msk [vmem:[#allocation3 + $0x8] sm:$0xff] %vm2611_vm4, %v2602_v37  ;;  %v3070_v37 = vld [vmem:[%s5013_s18 + $0x20] sm:$0xff] }
 0xa5a   : > { %3101 = vmatpush.msra.mxu1 %v3070_v37 }
 0xa60   : > { %v2604_v38 = vpop.permute.xlu0 %2603 }
 0xa61   : > { %2614 = vst.msk [vmem:[#allocation3 + $0x10] sm:$0xff] %vm2611_vm4, %v2604_v38  ;;  %v3069_v38 = vld [vmem:[%s5013_s18 + $0x18] sm:$0xff] }
 0xa62   : > { %3102 = vmatpush.msra.mxu1 %v3069_v38  ;;  %v3130_v38 = vld [vmem:[%s5070_s6 + $0x38] sm:$0xff] }
 0xa68   : > { %v2606_v24 = vpop.permute.xlu0 %2605 }
 0xa69   : > { %2615 = vst.msk [vmem:[#allocation3 + $0x18] sm:$0xff] %vm2611_vm4, %v2606_v24  ;;  %v3068_v24 = vld [vmem:[%s5013_s18 + $0x10] sm:$0xff] }
 0xa6a   : > { %3103 = vmatpush.msra.mxu1 %v3068_v24 }
 0xa6f   : > { %v2799_v46 = vpop.f32.mrf.mxu0 }
 0xa70   : > { %2884 = vrot.lane.b32.xlu2 %v2799_v46, %s4678_s23  ;;  %v3067_v46 = vld [vmem:[%s5013_s18 + $0x8] sm:$0xff]  ;;  %s5780_s18 = sld [smem:[#allocation63_spill]] (!%p3794_p3) }
 0xa71   : > { %3104 = vmatpush.msra.mxu1 %v3067_v46 }
 0xa73   : > { %3105 = vmatpush.msra.mxu1 %v3066_v48  ;;  %v3128_v48 = vld [vmem:[%s5070_s6 + $0x28] sm:$0xff] }
 0xa89   : > { %v2851_v56 = vpop.f32.mrf.mxu2 }
 0xab4   : > { %v2825_v61 = vpop.f32.mrf.mxu1 }
 0xab5   : > { %2886 = vrot.lane.b32.xlu2 %v2825_v61, %s4678_s23 }
 0xabd   : > { %2888 = vrot.lane.b32.xlu2 %v2851_v56, %s4678_s23 }
 0xaca   : > { %v2885_v58 = vpop.permute.xlu2 %2884 }
 0xacb   : > { %2897 = vst.msk [vmem:[#allocation3] sm:$0xff] %vm2896_vm5, %v2885_v58  ;;  %v5515_v58 = vld [vmem:[%s1258_s13] ss:$0 sm:$0xff]  ;;  %s5781_s13 = sld [smem:[#allocation66_spill]] (!%p3794_p3) }
 0xacd   : > { %v2877_v60 = vpop.f32.mrf.mxu3 }
 0xace   : > { %2890 = vrot.lane.b32.xlu2 %v2877_v60, %s4678_s23 }
 0xad2   : > { %v2901_v62 = vld [vmem:[#allocation3] sm:$0xff] }
 0xad3   : > { %3786 = vmatmul.msk.f32.vlgmr.msra.gmra.mxu0 %vm1555_vm2, %v2901_v62 }
 0xb0f   : > { %v2887_v0 = vpop.permute.xlu2 %2886 }
 0xb10   : > { %2898 = vst.msk [vmem:[#allocation3 + $0x8] sm:$0xff] %vm2896_vm5, %v2887_v0  ;;  %v5522_v0 = vld [vmem:[%s1261_s4] ss:$0 sm:$0xff] }
 0xb17   : > { %v2889_v1 = vpop.permute.xlu2 %2888  ;;  %v2902_v2 = vld [vmem:[#allocation3 + $0x8] sm:$0xff] }
 0xb18   : > { %2899 = vst.msk [vmem:[#allocation3 + $0x10] sm:$0xff] %vm2896_vm5, %v2889_v1  ;;  %3787 = vmatmul.msk.f32.gmra.mxu0 %vm1555_vm2, %v2902_v2 }
 0xb1f   : > { %v2903_v3 = vld [vmem:[#allocation3 + $0x10] sm:$0xff] }
 0xb20   : > { %3788 = vmatmul.msk.f32.gmra.mxu0 %vm1555_vm2, %v2903_v3 }
 0xb28   : > { %v2891_v8 = vpop.permute.xlu2 %2890 }
 0xb29   : > { %2900 = vst.msk [vmem:[#allocation3 + $0x18] sm:$0xff] %vm2896_vm5, %v2891_v8 }
 0xb30   : > { %v2904_v9 = vld [vmem:[#allocation3 + $0x18] sm:$0xff] }
 0xb31   : > { %3789 = vmatmul.msk.f32.gmra.mxu0 %vm1555_vm2, %v2904_v9 }
 0xb50   : > { %v2946_v36 = vpop.f32.mrf.mxu0 }
 0xb51   : > { %v2947_v5 = vadd.f32 %v4085_v4, %v2946_v36 }
 0xb53   : > { %v5458_v45 = vadd.f32 %v2947_v5, %v5186_v22 }
 0xb55   : > { %v2962_v42 = vsel %vm1555_vm2, %v5458_v45, 0.0 }
 0xb56   : > { %2963 = vadd.xlane.f32.xlu1 %v2962_v42 }
 0xb95   : > { %v2949_v6 = vpop.f32.mrf.mxu0 }
 0xb96   : > { %v2950_v10 = vadd.f32 %v4085_v4, %v2949_v6 }
 0xb98   : > { %v5463_v11 = vadd.f32 %v2950_v10, %v5200_v43 }
 0xb9a   : > { %v2965_v49 = vsel %vm1555_vm2, %v5463_v11, 0.0 }
 0xb9b   : > { %2966 = vadd.xlane.f32.xlu0 %v2965_v49 }
 0xb9d   : > { %v2952_v17 = vpop.f32.mrf.mxu0 }
 0xb9e   : > { %v2953_v18 = vadd.f32 %v4085_v4, %v2952_v17 }
 0xba0   : > { %v5468_v19 = vadd.f32 %v2953_v18, %v5207_v47 }
 0xba2   : > { %v2968_v22 = vsel %vm1555_vm2, %v5468_v19, 0.0 }
 0xba3   : > { %2969 = vadd.xlane.f32.xlu2 %v2968_v22 }
 0xbae   : > { %v2955_v20 = vpop.f32.mrf.mxu0 }
 0xbaf   : > { %v2956_v21 = vadd.f32 %v4085_v4, %v2955_v20 }
 0xbb1   : > { %v5473_v13 = vadd.f32 %v2956_v21, %v5214_v54 }
 0xbb3   : > { %v2971_v43 = vsel %vm1555_vm2, %v5473_v13, 0.0 }
 0xbb4   : > { %2972 = vadd.xlane.f32.xlu1 %v2971_v43 }
 0xbc9   : > { %v2964_v26 = vpop.xlane.xlu1 %2963 }
 0xbca   : > { %v2974_v28 = vmul.f32 %v2964_v26, %v5132_v7  ;;  %v3138_v26 = vld [vmem:[%s5070_s6 + $0x78] sm:$0xff] }
 0xbcb   : > { %3143 = vmatpush.msrb.mxu2 %v3138_v26  ;;  %3815 = vmatpush.msrb.mxu3 %v3138_v26 }
 0xbcc   : > { %v2978_v15 = vsub.f32 %v5458_v45, %v2974_v28  ;;  %v3137_v28 = vld [vmem:[%s5070_s6 + $0x70] sm:$0xff] }
 0xbcd   : > { %3144 = vmatpush.msrb.mxu2 %v3137_v28  ;;  %3816 = vmatpush.msrb.mxu3 %v3137_v28 }
 0xbce   : > { %v2982_v47 = vmul.f32 %v2978_v15, %v2978_v15 }
 0xbd0   : > { %v2986_v29 = vsel %vm1555_vm2, %v2982_v47, 0.0 }
 0xbd1   : > { %2987 = vadd.xlane.f32.xlu2 %v2986_v29  ;;  %v3136_v29 = vld [vmem:[%s5070_s6 + $0x68] sm:$0xff] }
 0xbd2   : > { %3145 = vmatpush.msrb.mxu2 %v3136_v29  ;;  %3817 = vmatpush.msrb.mxu3 %v3136_v29 }
 0xc0e   : > { %v2967_v30 = vpop.xlane.xlu0 %2966 }
 0xc0f   : > { %v2975_v25 = vmul.f32 %v2967_v30, %v5132_v7 }
 0xc11   : > { %v5482_v57 = vsub.f32 %v5463_v11, %v2975_v25 }
 0xc13   : > { %v2983_v54 = vmul.f32 %v5482_v57, %v5482_v57 }
 0xc15   : > { %v2989_v31 = vsel %vm1555_vm2, %v2983_v54, 0.0 }
 0xc16   : > { %2990 = vadd.xlane.f32.xlu0 %v2989_v31  ;;  %v2970_v63 = vpop.xlane.xlu2 %2969 }
 0xc17   : > { %v2976_v16 = vmul.f32 %v2970_v63, %v5132_v7  ;;  %v3135_v63 = vld [vmem:[%s5070_s6 + $0x60] sm:$0xff] }
 0xc18   : > { %3146 = vmatpush.msrb.mxu2 %v3135_v63  ;;  %3818 = vmatpush.msrb.mxu3 %v3135_v63 }
 0xc19   : > { %v5489_v14 = vsub.f32 %v5468_v19, %v2976_v16 }
 0xc1b   : > { %v2984_v32 = vmul.f32 %v5489_v14, %v5489_v14 }
 0xc1d   : > { %v2992_v27 = vsel %vm1555_vm2, %v2984_v32, 0.0 }
 0xc1e   : > { %2993 = vadd.xlane.f32.xlu1 %v2992_v27  ;;  %v3134_v27 = vld [vmem:[%s5070_s6 + $0x58] sm:$0xff] }
 0xc1f   : > { %3147 = vmatpush.msrb.mxu2 %v3134_v27  ;;  %3819 = vmatpush.msrb.mxu3 %v3134_v27 }
 0xc27   : > { %v2973_v33 = vpop.xlane.xlu1 %2972 }
 0xc28   : > { %v2977_v59 = vmul.f32 %v2973_v33, %v5132_v7 }
 0xc2a   : > { %v5496_v34 = vsub.f32 %v5473_v13, %v2977_v59  ;;  %v3133_v59 = vld [vmem:[%s5070_s6 + $0x50] sm:$0xff] }
 0xc2b   : > { %3148 = vmatpush.msrb.mxu2 %v3133_v59  ;;  %3820 = vmatpush.msrb.mxu3 %v3133_v59 }
 0xc2c   : > { %v2985_v35 = vmul.f32 %v5496_v34, %v5496_v34 }
 0xc2e   : > { %v2995_v39 = vsel %vm1555_vm2, %v2985_v35, 0.0 }
 0xc2f   : > { %2996 = vadd.xlane.f32.xlu2 %v2995_v39  ;;  %v3132_v39 = vld [vmem:[%s5070_s6 + $0x48] sm:$0xff] }
 0xc30   : > { %3149 = vmatpush.msrb.mxu2 %v3132_v39  ;;  %3821 = vmatpush.msrb.mxu3 %v3132_v39 }
 0xc32   : > { %3150 = vmatpush.msrb.mxu2 %v3131_v41  ;;  %3822 = vmatpush.msrb.mxu3 %v3131_v41 }
 0xc34   : > { %3151 = vmatpush.msrb.mxu2 %v3130_v38  ;;  %3823 = vmatpush.msrb.mxu3 %v3130_v38 }
 0xc44   : > { %v2988_v50 = vpop.xlane.xlu2 %2987 }
 0xc45   : > { %v2998_v12 = vmul.f32 %v2988_v50, %v5132_v7 }
 0xc47   : > { %v3002_v51 = vadd.f32 1e-05, %v2998_v12  ;;  %v3127_v12 = vld [vmem:[%s5070_s6 + $0x20] sm:$0xff] }
 0xc49   : > { %4164 = vrsqrt.f32 %v3002_v51  ;;  %vm3012_vm7 = vweird.f32 %v3002_v51 }
 0xc4f   : > { %v4165_v52 = vpop.eup %4164 }
 0xc50   : > { %v3007_v53 = vmul.f32 %v4165_v52, %v3002_v51  ;;  %vm3013_vm6 = vweird.f32 %v4165_v52 }
 0xc51   : > { %vm3014_vm8 = vmor %vm3012_vm7, %vm3013_vm6 }
 0xc52   : > { %v3008_v55 = vmul.f32 %v4165_v52, %v3007_v53 }
 0xc54   : > { %v3009_v23 = vmul.f32 0.5, %v3008_v55 }
 0xc56   : > { %v3010_v61 = vsub.f32 1.5, %v3009_v23 }
 0xc58   : > { %v3011_v56 = vmul.f32 %v4165_v52, %v3010_v61 }
 0xc5a   : > { %v3015_v60 = vsel %vm3014_vm8, %v4165_v52, %v3011_v56  ;;  %v3126_v52 = vld [vmem:[%s5070_s6 + $0x18] sm:$0xff] }
 0xc5b   : > { %v3046_v62 = vmul.f32 %v3015_v60, %v2978_v15  ;;  %v3125_v60 = vld [vmem:[%s5070_s6 + $0x10] sm:$0xff] }
 0xc5d   : > { %v3054_v1 = vmul.f32 %v5515_v58, %v3046_v62  ;;  %v3124_v62 = vld [vmem:[%s5070_s6 + $0x8] sm:$0xff] }
 0xc5f   : > { %v3062_v2 = vadd.f32 %v5522_v0, %v3054_v1  ;;  %v3123_v1 = vld [vmem:[%s5070_s6] sm:$0xff] }
 0xc61   : > { %3790 = vmatmul.msk.f32.vlgmr.msra.gmra.mxu1 %vm1555_vm2, %v3062_v2 }
 0xc89   : > { %v2991_v3 = vpop.xlane.xlu0 %2990 }
 0xc8a   : > { %v2999_v8 = vmul.f32 %v2991_v3, %v5132_v7 }
 0xc8c   : > { %v3003_v9 = vadd.f32 1e-05, %v2999_v8 }
 0xc8e   : > { %4166 = vrsqrt.f32 %v3003_v9  ;;  %vm3022_vm10 = vweird.f32 %v3003_v9 }
 0xc91   : > { %v2994_v4 = vpop.xlane.xlu1 %2993 }
 0xc92   : > { %v3000_v36 = vmul.f32 %v2994_v4, %v5132_v7 }
 0xc94   : > { %v4167_v5 = vpop.eup %4166  ;;  %v3004_v42 = vadd.f32 1e-05, %v3000_v36 }
 0xc95   : > { %v3017_v6 = vmul.f32 %v4167_v5, %v3003_v9  ;;  %vm3023_vm9 = vweird.f32 %v4167_v5 }
 0xc96   : > { %4168 = vrsqrt.f32 %v3004_v42  ;;  %vm3024_vm11 = vmor %vm3022_vm10, %vm3023_vm9  ;;  %vm3032_vm13 = vweird.f32 %v3004_v42 }
 0xc97   : > { %v3018_v10 = vmul.f32 %v4167_v5, %v3017_v6 }
 0xc99   : > { %v3019_v49 = vmul.f32 0.5, %v3018_v10 }
 0xc9b   : > { %v3020_v17 = vsub.f32 1.5, %v3019_v49  ;;  %v4089_v49 = vld [vmem:[%s1272_s20] ss:$0 sm:$0xff]  ;;  %s5779_s20 = sld [smem:[#allocation65_spill]] (!%p3794_p3) }
 0xc9c   : > { %v4169_v18 = vpop.eup %4168 }
 0xc9d   : > { %v3021_v22 = vmul.f32 %v4167_v5, %v3020_v17  ;;  %v3027_v20 = vmul.f32 %v4169_v18, %v3004_v42  ;;  %vm3033_vm12 = vweird.f32 %v4169_v18 }
 0xc9e   : > { %vm3034_vm14 = vmor %vm3032_vm13, %vm3033_vm12 }
 0xc9f   : > { %v3025_v21 = vsel %vm3024_vm11, %v4167_v5, %v3021_v22  ;;  %v3028_v43 = vmul.f32 %v4169_v18, %v3027_v20 }
 0xca0   : > { %v3047_v15 = vmul.f32 %v3025_v21, %v5482_v57 }
 0xca1   : > { %v3029_v47 = vmul.f32 0.5, %v3028_v43 }
 0xca2   : > { %v2997_v30 = vpop.xlane.xlu2 %2996  ;;  %v3055_v25 = vmul.f32 %v5515_v58, %v3047_v15 }
 0xca3   : > { %v3030_v54 = vsub.f32 1.5, %v3029_v47  ;;  %v3001_v31 = vmul.f32 %v2997_v30, %v5132_v7 }
 0xca4   : > { %v3063_v16 = vadd.f32 %v5522_v0, %v3055_v25 }
 0xca5   : > { %v3031_v57 = vmul.f32 %v4169_v18, %v3030_v54  ;;  %v3005_v32 = vadd.f32 1e-05, %v3001_v31 }
 0xca6   : > { %3791 = vmatmul.msk.f32.gmra.mxu1 %vm1555_vm2, %v3063_v16 }
 0xca7   : > { %v3035_v33 = vsel %vm3034_vm14, %v4169_v18, %v3031_v57  ;;  %4170 = vrsqrt.f32 %v3005_v32  ;;  %vm3042_vm0 = vweird.f32 %v3005_v32 }
 0xca8   : > { %v3048_v35 = vmul.f32 %v3035_v33, %v5489_v14  ;;  %v3129_v14 = vld [vmem:[%s5070_s6 + $0x30] sm:$0xff] }
 0xca9   : > { %3152 = vmatpush.msrb.mxu2 %v3129_v14  ;;  %3824 = vmatpush.msrb.mxu3 %v3129_v14 }
 0xcaa   : > { %v3056_v40 = vmul.f32 %v5515_v58, %v3048_v35 }
 0xcab   : > { %3153 = vmatpush.msrb.mxu2 %v3128_v48  ;;  %3825 = vmatpush.msrb.mxu3 %v3128_v48 }
 0xcac   : > { %v3064_v44 = vadd.f32 %v5522_v0, %v3056_v40 }
 0xcad   : > { %v4171_v37 = vpop.eup %4170  ;;  %3154 = vmatpush.msrb.mxu2 %v3127_v12  ;;  %3826 = vmatpush.msrb.mxu3 %v3127_v12 }
 0xcae   : > { %v3037_v24 = vmul.f32 %v4171_v37, %v3005_v32  ;;  %3792 = vmatmul.msk.f32.gmra.mxu1 %vm1555_vm2, %v3064_v44  ;;  %vm3043_vm15 = vweird.f32 %v4171_v37 }
 0xcaf   : > { %vm3044_vm1 = vmor %vm3042_vm0, %vm3043_vm15  ;;  %3155 = vmatpush.msrb.mxu2 %v3126_v52  ;;  %3827 = vmatpush.msrb.mxu3 %v3126_v52 }
 0xcb0   : > { %v3038_v46 = vmul.f32 %v4171_v37, %v3037_v24 }
 0xcb1   : > { %3156 = vmatpush.msrb.mxu2 %v3125_v60  ;;  %3828 = vmatpush.msrb.mxu3 %v3125_v60 }
 0xcb2   : > { %v3039_v50 = vmul.f32 0.5, %v3038_v46 }
 0xcb3   : > { %3157 = vmatpush.msrb.mxu2 %v3124_v62  ;;  %3829 = vmatpush.msrb.mxu3 %v3124_v62 }
 0xcb4   : > { %v3040_v51 = vsub.f32 1.5, %v3039_v50 }
 0xcb5   : > { %3158 = vmatpush.msrb.mxu2 %v3123_v1  ;;  %3830 = vmatpush.msrb.mxu3 %v3123_v1 }
 0xcb6   : > { %v3041_v53 = vmul.f32 %v4171_v37, %v3040_v51 }
 0xcb8   : > { %v3045_v55 = vsel %vm3044_vm1, %v4171_v37, %v3041_v53 }
 0xcb9   : > { %v3049_v23 = vmul.f32 %v3045_v55, %v5496_v34  ;;  %v4088_v34 = vld [vmem:[%s1264_s14] ss:$0 sm:$0xff] }
 0xcbb   : > { %v3057_v61 = vmul.f32 %v5515_v58, %v3049_v23 }
 0xcbd   : > { %v3065_v56 = vadd.f32 %v5522_v0, %v3057_v61 }
 0xcbf   : > { %3793 = vmatmul.msk.f32.gmra.mxu1 %vm1555_vm2, %v3065_v56 }
 0xcde   : > { %v3107_v2 = vpop.f32.mrf.mxu1 }
 0xcdf   : > { %v3108_v58 = vadd.f32 %v4088_v34, %v3107_v2 }
 0xce1   : > { %v3119_v0 = vmax.f32 %v3108_v58, 0.0 }
 0xce3   : > { %3159 = vmatmul.f32.vlgmr.msrb.gmra.mxu2 %v3119_v0 }
 0xd23   : > { %v3110_v3 = vpop.f32.mrf.mxu1 }
 0xd24   : > { %v3111_v8 = vadd.f32 %v4088_v34, %v3110_v3 }
 0xd26   : > { %v3120_v9 = vmax.f32 %v3111_v8, 0.0 }
 0xd28   : > { %3162 = vmatmul.f32.gmra.mxu2 %v3120_v9 }
 0xd2b   : > { %v3113_v4 = vpop.f32.mrf.mxu1 }
 0xd2c   : > { %v3114_v36 = vadd.f32 %v4088_v34, %v3113_v4 }
 0xd2e   : > { %v3121_v5 = vmax.f32 %v3114_v36, 0.0 }
 0xd30   : > { %3165 = vmatmul.f32.vlgmr.msrb.gmra.mxu3 %v3121_v5 }
 0xd3c   : > { %v3116_v42 = vpop.f32.mrf.mxu1 }
 0xd3d   : > { %v3117_v6 = vadd.f32 %v4088_v34, %v3116_v42 }
 0xd3f   : > { %v3122_v10 = vmax.f32 %v3117_v6, 0.0 }
 0xd41   : > { %3168 = vmatmul.f32.gmra.mxu3 %v3122_v10 }
 0xd66   : > { %v3160_v17 = vpop.f32.mrf.mxu2 }
 0xd67   : > { %v3161_v18 = vadd.f32 %v4089_v49, %v3160_v17 }
 0xd69   : > { %v3172_v22 = vadd.f32 %v3161_v18, %v5458_v45 }
 0xd6b   : > { %3176 = vst.msk [vmem:[#allocation2] sm:$0xff] %vm1555_vm2, %v3172_v22 }
 0xdab   : > { %v3163_v20 = vpop.f32.mrf.mxu2 }
 0xdac   : > { %v3164_v21 = vadd.f32 %v4089_v49, %v3163_v20 }
 0xdae   : > { %v3173_v43 = vadd.f32 %v3164_v21, %v5463_v11 }
 0xdb0   : > { %3177 = vst.msk [vmem:[#allocation2 + $0x8] sm:$0xff] %vm1555_vm2, %v3173_v43 }
 0xdb3   : > { %v3166_v26 = vpop.f32.mrf.mxu3 }
 0xdb4   : > { %v3167_v28 = vadd.f32 %v4089_v49, %v3166_v26 }
 0xdb6   : > { %v3174_v15 = vadd.f32 %v3167_v28, %v5468_v19 }
 0xdb8   : > { %3178 = vst.msk [vmem:[#allocation2 + $0x10] sm:$0xff] %vm1555_vm2, %v3174_v15 }
 0xdc4   : > { %v3169_v47 = vpop.f32.mrf.mxu3 }
 0xdc5   : > { %v3170_v29 = vadd.f32 %v4089_v49, %v3169_v47  ;;  %3183 = sbr.rel (%p3794_p3) target bundleno = 3941 (0xf65), region = 184 }
 0xdc7   : > { %v3175_v30 = vadd.f32 %v3170_v29, %v5473_v13 }
 0xdc9   : > { %3179 = vst.msk [vmem:[#allocation2 + $0x18] sm:$0xff] %vm1555_vm2, %v3175_v30 }
 0xdca   : > { %v3190_v45 = vsel %vm1555_vm2, %v3174_v15, 0.0  ;;  %v3184_v11 = vsel %vm1555_vm2, %v3172_v22, 0.0  ;;  %v3193_v25 = vsel %vm1555_vm2, %v3175_v30, 0.0  ;;  %v3187_v19 = vsel %vm1555_vm2, %v3173_v43, 0.0  ;;  %v3295_v48 = vld [vmem:[%s5779_s20 + $0x38] sm:$0xff]  ;;  %v3294_v50 = vld [vmem:[%s5779_s20 + $0x30] sm:$0xff] }
 0xdcb   : > { %3191 = vadd.xlane.f32.xlu0 %v3190_v45  ;;  %3185 = vadd.xlane.f32.xlu1 %v3184_v11  ;;  %v3293_v12 = vld [vmem:[%s5779_s20 + $0x28] sm:$0xff]  ;;  %v3292_v51 = vld [vmem:[%s5779_s20 + $0x20] sm:$0xff]  ;;  %v3291_v52 = vld [vmem:[%s5779_s20 + $0x18] sm:$0xff] }
 0xdcc   : > { %3320 = vmatpush.msra.mxu0 %v3295_v48  ;;  %3832 = vmatpush.msra.mxu2 %v3295_v48  ;;  %v3290_v53 = vld [vmem:[%s5779_s20 + $0x10] sm:$0xff]  ;;  %v3289_v55 = vld [vmem:[%s5779_s20 + $0x8] sm:$0xff]  ;;  %v3288_v23 = vld [vmem:[%s5779_s20] sm:$0xff] }
 0xdcd   : > { %3831 = vmatpush.msra.mxu1 %v3295_v48  ;;  %3833 = vmatpush.msra.mxu3 %v3295_v48  ;;  %v4173_v11 = vld [vmem:[#allocation22] ss:$0 sm:$0xff]  ;;  %v4174_v48 = vld [vmem:[%s5781_s13] ss:$0 sm:$0xff] }
 0xdce   : > { %3321 = vmatpush.msra.mxu0 %v3294_v50  ;;  %3835 = vmatpush.msra.mxu2 %v3294_v50 }
 0xdcf   : > { %3834 = vmatpush.msra.mxu1 %v3294_v50  ;;  %3836 = vmatpush.msra.mxu3 %v3294_v50 }
 0xdd0   : > { %3322 = vmatpush.msra.mxu0 %v3293_v12  ;;  %3838 = vmatpush.msra.mxu2 %v3293_v12 }
 0xdd1   : > { %3837 = vmatpush.msra.mxu1 %v3293_v12  ;;  %3839 = vmatpush.msra.mxu3 %v3293_v12 }
 0xdd2   : > { %3323 = vmatpush.msra.mxu0 %v3292_v51  ;;  %3841 = vmatpush.msra.mxu2 %v3292_v51 }
 0xdd3   : > { %3194 = vadd.xlane.f32.xlu0 %v3193_v25  ;;  %3188 = vadd.xlane.f32.xlu1 %v3187_v19 }
 0xdd4   : > { %3840 = vmatpush.msra.mxu1 %v3292_v51  ;;  %3842 = vmatpush.msra.mxu3 %v3292_v51 }
 0xdd5   : > { %3324 = vmatpush.msra.mxu0 %v3291_v52  ;;  %3844 = vmatpush.msra.mxu2 %v3291_v52 }
 0xdd6   : > { %3843 = vmatpush.msra.mxu1 %v3291_v52  ;;  %3845 = vmatpush.msra.mxu3 %v3291_v52 }
 0xdd7   : > { %3325 = vmatpush.msra.mxu0 %v3290_v53  ;;  %3847 = vmatpush.msra.mxu2 %v3290_v53 }
 0xdd8   : > { %3846 = vmatpush.msra.mxu1 %v3290_v53  ;;  %3848 = vmatpush.msra.mxu3 %v3290_v53 }
 0xdd9   : > { %3326 = vmatpush.msra.mxu0 %v3289_v55  ;;  %3850 = vmatpush.msra.mxu2 %v3289_v55 }
 0xdda   : > { %3849 = vmatpush.msra.mxu1 %v3289_v55  ;;  %3851 = vmatpush.msra.mxu3 %v3289_v55 }
 0xddb   : > { %3327 = vmatpush.msra.mxu0 %v3288_v23  ;;  %3853 = vmatpush.msra.mxu2 %v3288_v23 }
 0xddc   : > { %3852 = vmatpush.msra.mxu1 %v3288_v23  ;;  %3854 = vmatpush.msra.mxu3 %v3288_v23 }
 0xe3e   : > { %v3192_v54 = vpop.xlane.xlu0 %3191  ;;  %v3186_v31 = vpop.xlane.xlu1 %3185 }
 0xe3f   : > { %v3198_v13 = vmul.f32 %v3192_v54, %v5132_v7  ;;  %v3196_v63 = vmul.f32 %v3186_v31, %v5132_v7 }
 0xe41   : > { %v5583_v16 = vsub.f32 %v3174_v15, %v3198_v13  ;;  %v5585_v57 = vsub.f32 %v3172_v22, %v3196_v63  ;;  %v4172_v15 = vld [vmem:[%s5780_s18] ss:$0 sm:$0xff] }
 0xe43   : > { %v3206_v32 = vmul.f32 %v5583_v16, %v5583_v16  ;;  %v3204_v27 = vmul.f32 %v5585_v57, %v5585_v57 }
 0xe45   : > { %v3214_v33 = vsel %vm1555_vm2, %v3206_v32, 0.0  ;;  %v3208_v59 = vsel %vm1555_vm2, %v3204_v27, 0.0 }
 0xe46   : > { %3215 = vadd.xlane.f32.xlu2 %v3214_v33  ;;  %v3195_v35 = vpop.xlane.xlu0 %3194  ;;  %3209 = vadd.xlane.f32.xlu0 %v3208_v59  ;;  %v3189_v39 = vpop.xlane.xlu1 %3188 }
 0xe47   : > { %v3199_v40 = vmul.f32 %v3195_v35, %v5132_v7  ;;  %v3197_v41 = vmul.f32 %v3189_v39, %v5132_v7 }
 0xe49   : > { %v5595_v44 = vsub.f32 %v3175_v30, %v3199_v40  ;;  %v5597_v37 = vsub.f32 %v3173_v43, %v3197_v41 }
 0xe4b   : > { %v3207_v38 = vmul.f32 %v5595_v44, %v5595_v44  ;;  %v3205_v24 = vmul.f32 %v5597_v37, %v5597_v37 }
 0xe4d   : > { %v3217_v14 = vsel %vm1555_vm2, %v3207_v38, 0.0  ;;  %v3211_v46 = vsel %vm1555_vm2, %v3205_v24, 0.0 }
 0xe4e   : > { %3218 = vadd.xlane.f32.xlu2 %v3217_v14  ;;  %3212 = vadd.xlane.f32.xlu1 %v3211_v46 }
 0xeb9   : > { %v3216_v61 = vpop.xlane.xlu2 %3215  ;;  %v3210_v56 = vpop.xlane.xlu0 %3209 }
 0xeba   : > { %v3222_v60 = vmul.f32 %v3216_v61, %v5132_v7  ;;  %v3220_v62 = vmul.f32 %v3210_v56, %v5132_v7 }
 0xebc   : > { %v3226_v1 = vadd.f32 1e-05, %v3222_v60  ;;  %v3224_v34 = vadd.f32 1e-05, %v3220_v62 }
 0xebe   : > { %4175 = vrsqrt.f32 %v3226_v1  ;;  %vm3234_vm4 = vweird.f32 %v3224_v34  ;;  %vm3254_vm6 = vweird.f32 %v3226_v1 }
 0xebf   : > { %4177 = vrsqrt.f32 %v3224_v34 }
 0xec1   : > { %v3219_v2 = vpop.xlane.xlu2 %3218  ;;  %v3213_v58 = vpop.xlane.xlu1 %3212 }
 0xec2   : > { %v3223_v0 = vmul.f32 %v3219_v2, %v5132_v7  ;;  %v3221_v3 = vmul.f32 %v3213_v58, %v5132_v7 }
 0xec4   : > { %v4176_v8 = vpop.eup %4175  ;;  %v3227_v9 = vadd.f32 1e-05, %v3223_v0  ;;  %v3225_v4 = vadd.f32 1e-05, %v3221_v3 }
 0xec5   : > { %v4178_v36 = vpop.eup %4177  ;;  %v3249_v5 = vmul.f32 %v4176_v8, %v3226_v1  ;;  %vm3255_vm3 = vweird.f32 %v4176_v8 }
 0xec6   : > { %v3229_v42 = vmul.f32 %v4178_v36, %v3224_v34  ;;  %4179 = vrsqrt.f32 %v3227_v9  ;;  %vm3235_vm5 = vweird.f32 %v4178_v36  ;;  %vm3256_vm7 = vmor %vm3254_vm6, %vm3255_vm3  ;;  %vm3244_vm10 = vweird.f32 %v3225_v4 }
 0xec7   : > { %v3250_v6 = vmul.f32 %v4176_v8, %v3249_v5  ;;  %4181 = vrsqrt.f32 %v3225_v4  ;;  %vm3236_vm8 = vmor %vm3234_vm4, %vm3235_vm5  ;;  %vm3264_vm12 = vweird.f32 %v3227_v9 }
 0xec8   : > { %v3230_v10 = vmul.f32 %v4178_v36, %v3229_v42 }
 0xec9   : > { %v3251_v49 = vmul.f32 0.5, %v3250_v6 }
 0xeca   : > { %v3231_v17 = vmul.f32 0.5, %v3230_v10 }
 0xecb   : > { %v3252_v18 = vsub.f32 1.5, %v3251_v49 }
 0xecc   : > { %v4180_v22 = vpop.eup %4179  ;;  %v3232_v20 = vsub.f32 1.5, %v3231_v17 }
 0xecd   : > { %v4182_v21 = vpop.eup %4181  ;;  %v3253_v7 = vmul.f32 %v4176_v8, %v3252_v18  ;;  %v3259_v43 = vmul.f32 %v4180_v22, %v3227_v9  ;;  %vm3265_vm9 = vweird.f32 %v4180_v22 }
 0xece   : > { %v3233_v26 = vmul.f32 %v4178_v36, %v3232_v20  ;;  %v3239_v28 = vmul.f32 %v4182_v21, %v3225_v4  ;;  %vm3245_vm11 = vweird.f32 %v4182_v21  ;;  %vm3266_vm13 = vmor %vm3264_vm12, %vm3265_vm9 }
 0xecf   : > { %v3260_v47 = vmul.f32 %v4180_v22, %v3259_v43  ;;  %v3257_v29 = vsel %vm3256_vm7, %v4176_v8, %v3253_v7  ;;  %vm3246_vm14 = vmor %vm3244_vm10, %vm3245_vm11 }
 0xed0   : > { %v3240_v30 = vmul.f32 %v4182_v21, %v3239_v28  ;;  %v3237_v45 = vsel %vm3236_vm8, %v4178_v36, %v3233_v26  ;;  %v3270_v25 = vmul.f32 %v3257_v29, %v5583_v16 }
 0xed1   : > { %v3261_v19 = vmul.f32 0.5, %v3260_v47  ;;  %v3268_v54 = vmul.f32 %v3237_v45, %v5585_v57 }
 0xed2   : > { %v3241_v31 = vmul.f32 0.5, %v3240_v30  ;;  %v3278_v13 = vmul.f32 %v4172_v15, %v3270_v25 }
 0xed3   : > { %v3262_v63 = vsub.f32 1.5, %v3261_v19  ;;  %v3276_v32 = vmul.f32 %v4172_v15, %v3268_v54 }
 0xed4   : > { %v3242_v27 = vsub.f32 1.5, %v3241_v31  ;;  %v3286_v33 = vadd.f32 %v4173_v11, %v3278_v13 }
 0xed5   : > { %v3263_v59 = vmul.f32 %v4180_v22, %v3262_v63  ;;  %v3284_v35 = vadd.f32 %v4173_v11, %v3276_v32 }
 0xed6   : > { %v3243_v39 = vmul.f32 %v4182_v21, %v3242_v27  ;;  %3797 = vmatmul.msk.f32.vlgmr.msra.gmra.mxu2 %vm1555_vm2, %v3286_v33 }
 0xed7   : > { %3795 = vmatmul.msk.f32.vlgmr.msra.gmra.mxu0 %vm1555_vm2, %v3284_v35  ;;  %v3267_v16 = vsel %vm3266_vm13, %v4180_v22, %v3263_v59 }
 0xed8   : > { %v3247_v57 = vsel %vm3246_vm14, %v4182_v21, %v3243_v39  ;;  %v3271_v40 = vmul.f32 %v3267_v16, %v5595_v44 }
 0xed9   : > { %v3269_v41 = vmul.f32 %v3247_v57, %v5597_v37 }
 0xeda   : > { %v3279_v38 = vmul.f32 %v4172_v15, %v3271_v40 }
 0xedb   : > { %v3277_v24 = vmul.f32 %v4172_v15, %v3269_v41 }
 0xedc   : > { %v3287_v14 = vadd.f32 %v4173_v11, %v3279_v38 }
 0xedd   : > { %v3285_v46 = vadd.f32 %v4173_v11, %v3277_v24 }
 0xede   : > { %3798 = vmatmul.msk.f32.vlgmr.msra.gmra.mxu3 %vm1555_vm2, %v3287_v14 }
 0xedf   : > { %3796 = vmatmul.msk.f32.vlgmr.msra.gmra.mxu1 %vm1555_vm2, %v3285_v46 }
 0xf54   : > { %v3329_v50 = vpop.f32.mrf.mxu0 }
 0xf55   : > { %v3330_v12 = vadd.f32 %v4174_v48, %v3329_v50 }
 0xf57   : > { %3341 = vst [vmem:[#allocation23] sm:$0xff] %v3330_v12 }
 0xf59   : > { %v3335_v51 = vpop.f32.mrf.mxu2 }
 0xf5a   : > { %v3336_v52 = vadd.f32 %v4174_v48, %v3335_v51 }
 0xf5c   : > { %3343 = vst [vmem:[#allocation23 + $0x10] sm:$0xff] %v3336_v52  ;;  %v3332_v44 = vpop.f32.mrf.mxu1 }
 0xf5d   : > { %v3333_v37 = vadd.f32 %v4174_v48, %v3332_v44 }
 0xf5f   : > { %3342 = vst [vmem:[#allocation23 + $0x8] sm:$0xff] %v3333_v37 }
 0xf61   : > { %v3338_v53 = vpop.f32.mrf.mxu3 }
 0xf62   : > { %v3339_v55 = vadd.f32 %v4174_v48, %v3338_v53 }
 0xf64   : > { %3344 = vst [vmem:[#allocation23 + $0x18] sm:$0xff] %v3339_v55 }
 0xf65 PF: > { %p3962_p4 = scmp.eq.s32.totalorder %s4857_s28, 1  ;;  %s5782_s6 = sld [smem:[#allocation67_spill]] }
 0xf66   : > { %s4683_s14 = smov [#allocation23]   ;;  %s4684_s7 = smov 128  }
 0xf67   : > { %s3353_s30 = sshll.u32 %s4683_s14, 4  ;;  %s4685_s29 = smov 8   ;;  %s3354_s30 = int_to_ptr.vmem [resolvable:$true] %s3353_s30 }
 0xf6b   : > { %s3355_s3 = sshll.u32 %s5782_s6, 4  ;;  %s3356_s3 = int_to_ptr.hbm [resolvable:$true] %s3355_s3 }
 0xf6c   : > { %3900 = dma.vmem_to_hbm [thread:$0]  (%p3962_p4), %s3354_s30, 512, %s3356_s3, [#allocation6], %s4684_s7, %s4684_s7, %s4685_s29  }
 0xf6d   : > { %4632 = dma.done.wait (%p3962_p4), [#allocation6], 512  }
 0xf6e   : > { %4634 = vsyncadd (%p3962_p4), [#allocation6], 4294966784 }
 0xf6f PF: > { %s5783_s25 = sld [smem:[#allocation37_spill]] }
 0xf70   : > { %s5784_s7 = sld [smem:[#allocation34_spill]] }
 0xf71   : > { %s5785_s4 = sld [smem:[#allocation35_spill]] }
 0xf72   : > { %s5786_s8 = sld [smem:[#allocation39_spill]] }
 0xf73   : > { %s5787_s30 = sld [smem:[#allocation36_spill]] }
 0xf74   : > { %s5788_s9 = sld [smem:[#allocation38_spill]] }
 0xf75   : > { %s46_s5 = sadd.s32 1, %s5783_s25  }
 0xf76   : > { %p43_p5 = scmp.ge.s32.totalorder %s46_s5, 4  }
 0xf78   :  { %45 = sbr.rel (!%p43_p5) target bundleno = 39 (0x27), region = 264 }
 0xf7d   :  { %3372 = vsyncpa [#allocation5], 1 }
 0xf7e   :  { %3374 = vsyncpa [#allocation5 + $0x1], 1 }
 0xf7f   :  { %3375 = vsyncpa [#allocation8], 1 }
 0xf80   :  { %3376 = vsyncpa [#allocation12], 1 }
 0xf81   :  { %3377 = vsyncpa [#allocation15], 1 }
 0xf82   :  { %3378 = vsyncpa [#allocation18], 1 }
 0xf83   :  { %3379 = vsyncpa [#allocation21], 1 }
 0xf84   :  { %3381 = vsyncpa [#allocation21 + $0x1], 1 }
 0xf85   :  { %3382 = vsyncpa [#allocation6], 1 }
 0xf86   :  { %3384 = vsyncpa [#allocation6 + $0x1], 1 }

</bundles_post_ra>
